<compile_context>
chip_gen: v7x
topology: tpu7x:2x2x1
jax: 0.10.0
libtpu: 0.0.40
codegen_flags: <defaults>
</compile_context>

<pallas_src>
import jax
import jax.numpy as jnp
import numpy as np
from jax import lax
from jax.experimental import pallas as pl
from jax.experimental.pallas import tpu as pltpu

LANE = 128  # TPU lane width; channels are padded to this


def _basic_block_kernel(x_ref, w1_ref, w2_ref, wr_ref, shift_ref,
                        out_ref, pad1_ref, pad2_ref, acc_ref):
    # x_ref     : (BB, H, W, C)      f32   NHWC input block (channels padded to C)
    # w1_ref    : (3, 3C, C)         bf16  conv1 weights, BN scale folded
    # w2_ref    : (3, 3C, C)         bf16  conv2 weights, BN scale folded
    # wr_ref    : (C, C)             bf16  residual 1x1 conv weights, BN scale folded
    # shift_ref : (3, C)             f32   folded shifts [conv1, conv2, residual]
    # out_ref   : (BB, H, W, C)      f32
    # pad1_ref  : (BB, H+2, W, 3C)   bf16  column-expanded, row-padded im2col scratch
    # pad2_ref  : (BB, H+2, W, 3C)   bf16  same, for conv2's input
    # acc_ref   : (BB*H*W, C)        f32   VMEM matmul accumulator
    BB, H, W, C = x_ref.shape
    M = BB * H * W
    bf16 = jnp.bfloat16

    sh = shift_ref[...]                                    # (3, C)

    # x-coordinate (column within an image) of every flattened (M, C) row.
    col = lax.broadcasted_iota(jnp.int32, (BB * H, W, C), 1).reshape(M, C)

    # Only the two spatial-halo rows of each scratch need zeroing; the interior
    # rows are fully overwritten by the aligned, full-width band stores below.
    zrow = jnp.zeros((BB, 1, W, 3 * C), bf16)
    for scr in (pad1_ref, pad2_ref):
        scr[:, 0:1, :, :] = zrow
        scr[:, H + 1:H + 2, :, :] = zrow

    def stage(src2, pad_ref):
        # src2: (M, C) f32.  Writes the column-expanded padded representation
        #   pad[b, y+1, x, kx*C:(kx+1)*C] = src[b, y, x+kx-1]   (0 outside image)
        # A +-1 column shift of an image equals a +-1 row shift of the flattened
        # (M, C) view; the wrap-around rows are exactly the x==0 / x==W-1 rows
        # and are masked to zero, so the shift is a sublane roll (XLU) and all
        # three band stores are full-width, lane- and sublane-aligned.
        left = jnp.where(col >= 1, pltpu.roll(src2, shift=1, axis=0), 0.0)
        right = jnp.where(col <= W - 2, pltpu.roll(src2, shift=M - 1, axis=0), 0.0)
        pad_ref[:, 1:H + 1, :, 0:C] = left.astype(bf16).reshape(BB, H, W, C)
        pad_ref[:, 1:H + 1, :, C:2 * C] = src2.astype(bf16).reshape(BB, H, W, C)
        pad_ref[:, 1:H + 1, :, 2 * C:3 * C] = right.astype(bf16).reshape(BB, H, W, C)

    def conv3x3(pad_ref, w_ref):
        # One K = 3C bf16 MXU matmul per kernel row; the LHS is a free row
        # slice of the column-expanded scratch.  Accumulate in VMEM (f32).
        for ky in range(3):
            lhs = pad_ref[:, ky:ky + H, :, :].reshape(M, 3 * C)
            part = jnp.dot(lhs, w_ref[ky], preferred_element_type=jnp.float32)
            if ky == 0:
                acc_ref[...] = part
            else:
                acc_ref[...] += part

    x2 = x_ref[...].reshape(M, C)                          # (M, C) f32

    # ---- conv1 (3x3, pad 1) + folded BN/bias + ReLU ----
    stage(x2, pad1_ref)
    conv3x3(pad1_ref, w1_ref)
    out1 = jnp.maximum(acc_ref[...] + sh[0:1], 0.0)        # (M, C) f32

    # ---- conv2 (3x3, pad 1) + folded BN/bias ----
    stage(out1, pad2_ref)
    conv3x3(pad2_ref, w2_ref)

    # ---- residual branch: 1x1 conv + folded BN/bias ----
    res = jnp.dot(x2.astype(bf16), wr_ref[...],
                  preferred_element_type=jnp.float32) + sh[2:3]

    # ---- add + final ReLU (lane-dense store) ----
    out = jnp.maximum(acc_ref[...] + sh[1:2] + res, 0.0)
    out_ref[...] = out.reshape(BB, H, W, C)


def basic_block(x_nchw, w1, w2, wr, s1, b1, s2, b2, sr, br, *, batch_block=1):
    """Fused BasicBlock forward.

    x_nchw : (N, Cin, H, W) float32 (PyTorch layout).
    w1     : (3, 3, Cin, Cout) HWIO conv1 weights.
    w2     : (3, 3, Cout, Cout) HWIO conv2 weights.
    wr     : (Cin, Cout) residual 1x1 conv weights.
    s*, b* : per-channel folded (BN + conv bias) scale / shift, i.e. each
             branch computes  scale * conv(x) + shift.
    Returns (N, Cout, H, W).
    """
    x = jnp.transpose(x_nchw, (0, 2, 3, 1)).astype(jnp.float32)   # NCHW -> NHWC
    N, H, W, cin = x.shape
    cout = w1.shape[-1]
    C = LANE
    assert cin <= C and cout <= C, "channel tiling for >128 channels not implemented"
    assert W % 8 == 0, "W must be a multiple of 8 for aligned staging stores"
    assert N % batch_block == 0
    BB = batch_block

    s1v, s2v, srv = (jnp.ravel(v) for v in (s1, s2, sr))
    b1v, b2v, brv = (jnp.ravel(v) for v in (b1, b2, br))

    # Fold the BN/bias scale into the conv weights; only the shift adds stay
    # in-kernel.
    w1s = w1.astype(jnp.float32) * s1v[None, None, None, :]
    w2s = w2.astype(jnp.float32) * s2v[None, None, None, :]
    wrs = wr.astype(jnp.float32) * srv[None, :]

    # Zero-pad channels to the lane width, flatten each kernel row to (3C, C),
    # and pre-cast to bf16 so every matmul is a native bf16 MXU op.
    w1p = jnp.pad(w1s, ((0, 0), (0, 0), (0, C - cin), (0, C - cout))
                  ).reshape(3, 3 * C, C).astype(jnp.bfloat16)
    w2p = jnp.pad(w2s, ((0, 0), (0, 0), (0, C - cout), (0, C - cout))
                  ).reshape(3, 3 * C, C).astype(jnp.bfloat16)
    wrp = jnp.pad(wrs, ((0, C - cin), (0, C - cout))).astype(jnp.bfloat16)

    shifts = jnp.stack([jnp.pad(b1v, (0, C - cout)),
                        jnp.pad(b2v, (0, C - cout)),
                        jnp.pad(brv, (0, C - cout))], axis=0)      # (3, C) f32

    # Lane-dense input (channel pad only; spatial padding happens in-kernel).
    x_p = jnp.pad(x, ((0, 0), (0, 0), (0, 0), (0, C - cin)))

    # Advisory cost estimate for XLA scheduling around the custom call.
    m_img = H * W
    flops = N * (2 * 2 * 3 * m_img * (3 * C) * C + 2 * m_img * C * C)
    bytes_accessed = int(x_p.size * 4 + w1p.size * 2 + w2p.size * 2
                         + wrp.size * 2 + shifts.size * 4 + N * H * W * C * 4)

    out_p = pl.pallas_call(
        _basic_block_kernel,
        out_shape=jax.ShapeDtypeStruct((N, H, W, C), jnp.float32),
        grid_spec=pltpu.PrefetchScalarGridSpec(
            num_scalar_prefetch=0,
            grid=(N // BB,),
            in_specs=[
                pl.BlockSpec((BB, H, W, C), lambda n: (n, 0, 0, 0)),
                pl.BlockSpec((3, 3 * C, C), lambda n: (0, 0, 0)),
                pl.BlockSpec((3, 3 * C, C), lambda n: (0, 0, 0)),
                pl.BlockSpec((C, C), lambda n: (0, 0)),
                pl.BlockSpec((3, C), lambda n: (0, 0)),
            ],
            out_specs=pl.BlockSpec((BB, H, W, C), lambda n: (n, 0, 0, 0)),
            scratch_shapes=[
                pltpu.VMEM((BB, H + 2, W, 3 * C), jnp.bfloat16),
                pltpu.VMEM((BB, H + 2, W, 3 * C), jnp.bfloat16),
                pltpu.VMEM((BB * H * W, C), jnp.float32),
            ],
        ),
        compiler_params=pltpu.CompilerParams(dimension_semantics=("parallel",)),
        cost_estimate=pl.CostEstimate(flops=flops, transcendentals=0,
                                      bytes_accessed=bytes_accessed),
    )(x_p, w1p, w2p, wrp, shifts)

    return jnp.transpose(out_p[..., :cout], (0, 3, 1, 2))          # -> NCHW


def _ref_forward(x_nchw, w1, w2, wr, s1, b1, s2, b2, sr, br):
    """Pure-JAX f32 reference (lax.conv) with the same folded parameters."""
    dn = ('NHWC', 'HWIO', 'NHWC')
    x = jnp.transpose(x_nchw, (0, 2, 3, 1)).astype(jnp.float32)
    y = lax.conv_general_dilated(x, w1, (1, 1), 'SAME', dimension_numbers=dn)
    y = jnp.maximum(y * s1 + b1, 0.0)
    y = lax.conv_general_dilated(y, w2, (1, 1), 'SAME', dimension_numbers=dn)
    y = y * s2 + b2
    r = lax.conv_general_dilated(x, wr.reshape(1, 1, *wr.shape), (1, 1), 'SAME',
                                 dimension_numbers=dn)
    r = r * sr + br
    out = jnp.maximum(y + r, 0.0)
    return jnp.transpose(out, (0, 3, 1, 2))


if __name__ == "__main__":
    N, Cin, Cout, H, W = 2, 4, 8, 16, 16
    eps = 1e-5

    key = jax.random.PRNGKey(0)
    ks = jax.random.split(key, 13)

    # Conv weights / biases (deterministic synthetic init; PyTorch-equivalent shapes).
    w1 = jax.random.normal(ks[0], (3, 3, Cin, Cout), jnp.float32) * 0.1   # HWIO
    cb1 = jax.random.normal(ks[1], (Cout,), jnp.float32) * 0.1
    w2 = jax.random.normal(ks[2], (3, 3, Cout, Cout), jnp.float32) * 0.1
    cb2 = jax.random.normal(ks[3], (Cout,), jnp.float32) * 0.1
    wr = jax.random.normal(ks[4], (Cin, Cout), jnp.float32) * 0.1          # 1x1 conv
    cbr = jax.random.normal(ks[5], (Cout,), jnp.float32) * 0.1

    # BatchNorm params (eval mode; running_mean=0, running_var=1).
    g1 = 1.0 + 0.1 * jax.random.normal(ks[6], (Cout,), jnp.float32)
    be1 = 0.1 * jax.random.normal(ks[7], (Cout,), jnp.float32)
    g2 = 1.0 + 0.1 * jax.random.normal(ks[8], (Cout,), jnp.float32)
    be2 = 0.1 * jax.random.normal(ks[9], (Cout,), jnp.float32)
    gr = 1.0 + 0.1 * jax.random.normal(ks[10], (Cout,), jnp.float32)
    ber = 0.1 * jax.random.normal(ks[11], (Cout,), jnp.float32)

    # Fold conv bias + BN into per-channel scale/shift: y = scale*conv(x) + shift.
    def fold(gamma, beta, conv_bias, mean=0.0, var=1.0):
        scale = gamma / jnp.sqrt(var + eps)
        shift = scale * (conv_bias - mean) + beta
        return scale.reshape(1, Cout), shift.reshape(1, Cout)

    s1, b1 = fold(g1, be1, cb1)
    s2, b2 = fold(g2, be2, cb2)
    sr, br = fold(gr, ber, cbr)

    x = jax.random.normal(ks[12], (N, Cin, H, W), jnp.float32)

    out = jax.block_until_ready(
        basic_block(x, w1, w2, wr, s1, b1, s2, b2, sr, br, batch_block=1))
    ref = jax.block_until_ready(_ref_forward(x, w1, w2, wr, s1, b1, s2, b2, sr, br))

    # Kernel matmuls run in bf16 with f32 accumulation; tolerance relaxed vs. f32.
    np.testing.assert_allclose(np.asarray(out), np.asarray(ref), rtol=5e-2, atol=5e-2)

    print("KERNEL_OK")
</pallas_src>

<mosaic_0001>
module attributes {stable_mosaic.version = 11 : i64} {
  func.func @_basic_block_kernel(%arg0: i32, %arg1: memref<1x16x16x128xf32, #tpu.memory_space<vmem>>, %arg2: memref<3x384x128xbf16, #tpu.memory_space<vmem>>, %arg3: memref<3x384x128xbf16, #tpu.memory_space<vmem>>, %arg4: memref<128x128xbf16, #tpu.memory_space<vmem>>, %arg5: memref<3x128xf32, #tpu.memory_space<vmem>>, %arg6: memref<1x16x16x128xf32, #tpu.memory_space<vmem>>, %arg7: memref<1x18x16x384xbf16, #tpu.memory_space<vmem>>, %arg8: memref<1x18x16x384xbf16, #tpu.memory_space<vmem>>, %arg9: memref<256x128xf32, #tpu.memory_space<vmem>>) attributes {dimension_semantics = [#tpu.dimension_semantics<parallel>], iteration_bounds = array<i64: 2>, scalar_prefetch = 0 : i64, scratch_operands = 3 : i64, tpu.core_type = #tpu.core_type<tc>, window_params = [{transform_indices = @transform_0, window_bounds = array<i64: 1, 16, 16, 128>}, {pipeline_mode = #tpu.pipeline_mode<synchronous>, transform_indices = @transform_1, window_bounds = array<i64: 3, 384, 128>}, {pipeline_mode = #tpu.pipeline_mode<synchronous>, transform_indices = @transform_2, window_bounds = array<i64: 3, 384, 128>}, {pipeline_mode = #tpu.pipeline_mode<synchronous>, transform_indices = @transform_3, window_bounds = array<i64: 128, 128>}, {pipeline_mode = #tpu.pipeline_mode<synchronous>, transform_indices = @transform_4, window_bounds = array<i64: 3, 128>}, {transform_indices = @transform_5, window_bounds = array<i64: 1, 16, 16, 128>}]} {
    %c0 = arith.constant 0 : index
    %c0_0 = arith.constant 0 : index
    %0 = vector.load %arg5[%c0, %c0_0] : memref<3x128xf32, #tpu.memory_space<vmem>>, vector<3x128xf32>
    %1 = tpu.iota {dimensions = array<i32: 1>} : vector<16x16x128xi32>
    %2 = vector.shape_cast %1 : vector<16x16x128xi32> to vector<256x128xi32>
    %cst = arith.constant 0.000000e+00 : bf16
    %3 = vector.broadcast %cst : bf16 to vector<1x1x16x384xbf16>
    %c0_1 = arith.constant 0 : index
    %c0_2 = arith.constant 0 : index
    %c0_3 = arith.constant 0 : index
    %c0_4 = arith.constant 0 : index
    %4 = vector.load %arg7[%c0_1, %c0_2, %c0_3, %c0_4] : memref<1x18x16x384xbf16, #tpu.memory_space<vmem>>, vector<1x1x16x384xbf16>
    tpu.vector_store %arg7[%c0_1, %c0_2, %c0_3, %c0_4], %3 {strides = array<i32>} : memref<1x18x16x384xbf16, #tpu.memory_space<vmem>>, vector<1x1x16x384xbf16>,
    %c0_5 = arith.constant 0 : index
    %c17 = arith.constant 17 : index
    %c0_6 = arith.constant 0 : index
    %c0_7 = arith.constant 0 : index
    %5 = vector.load %arg7[%c0_5, %c17, %c0_6, %c0_7] : memref<1x18x16x384xbf16, #tpu.memory_space<vmem>>, vector<1x1x16x384xbf16>
    tpu.vector_store %arg7[%c0_5, %c17, %c0_6, %c0_7], %3 {strides = array<i32>} : memref<1x18x16x384xbf16, #tpu.memory_space<vmem>>, vector<1x1x16x384xbf16>,
    %c0_8 = arith.constant 0 : index
    %c0_9 = arith.constant 0 : index
    %c0_10 = arith.constant 0 : index
    %c0_11 = arith.constant 0 : index
    %6 = vector.load %arg8[%c0_8, %c0_9, %c0_10, %c0_11] : memref<1x18x16x384xbf16, #tpu.memory_space<vmem>>, vector<1x1x16x384xbf16>
    tpu.vector_store %arg8[%c0_8, %c0_9, %c0_10, %c0_11], %3 {strides = array<i32>} : memref<1x18x16x384xbf16, #tpu.memory_space<vmem>>, vector<1x1x16x384xbf16>,
    %c0_12 = arith.constant 0 : index
    %c17_13 = arith.constant 17 : index
    %c0_14 = arith.constant 0 : index
    %c0_15 = arith.constant 0 : index
    %7 = vector.load %arg8[%c0_12, %c17_13, %c0_14, %c0_15] : memref<1x18x16x384xbf16, #tpu.memory_space<vmem>>, vector<1x1x16x384xbf16>
    tpu.vector_store %arg8[%c0_12, %c17_13, %c0_14, %c0_15], %3 {strides = array<i32>} : memref<1x18x16x384xbf16, #tpu.memory_space<vmem>>, vector<1x1x16x384xbf16>,
    %c0_16 = arith.constant 0 : index
    %c0_17 = arith.constant 0 : index
    %c0_18 = arith.constant 0 : index
    %c0_19 = arith.constant 0 : index
    %8 = vector.load %arg1[%c0_16, %c0_17, %c0_18, %c0_19] : memref<1x16x16x128xf32, #tpu.memory_space<vmem>>, vector<1x16x16x128xf32>
    %9 = vector.shape_cast %8 : vector<1x16x16x128xf32> to vector<256x128xf32>
    %c1_i32 = arith.constant 1 : i32
    %10 = vector.broadcast %c1_i32 : i32 to vector<256x128xi32>
    %11 = arith.cmpi sge, %2, %10 : vector<256x128xi32>
    %c1_i32_20 = arith.constant 1 : i32
    %12 = tpu.dynamic_rotate %9 by %c1_i32_20 dim 0 : vector<256x128xf32>, i32 -> vector<256x128xf32>
    %cst_21 = arith.constant 0.000000e+00 : f32
    %13 = vector.broadcast %cst_21 : f32 to vector<256x128xf32>
    %14 = arith.select %11, %12, %13 : vector<256x128xi1>, vector<256x128xf32>
    %c14_i32 = arith.constant 14 : i32
    %15 = vector.broadcast %c14_i32 : i32 to vector<256x128xi32>
    %16 = arith.cmpi sle, %2, %15 : vector<256x128xi32>
    %c255_i32 = arith.constant 255 : i32
    %17 = tpu.dynamic_rotate %9 by %c255_i32 dim 0 : vector<256x128xf32>, i32 -> vector<256x128xf32>
    %cst_22 = arith.constant 0.000000e+00 : f32
    %18 = vector.broadcast %cst_22 : f32 to vector<256x128xf32>
    %19 = arith.select %16, %17, %18 : vector<256x128xi1>, vector<256x128xf32>
    %20 = arith.truncf %14 : vector<256x128xf32> to vector<256x128xbf16>
    %21 = vector.shape_cast %20 : vector<256x128xbf16> to vector<1x16x16x128xbf16>
    %c0_23 = arith.constant 0 : index
    %c1 = arith.constant 1 : index
    %c0_24 = arith.constant 0 : index
    %c0_25 = arith.constant 0 : index
    %22 = vector.load %arg7[%c0_23, %c1, %c0_24, %c0_25] : memref<1x18x16x384xbf16, #tpu.memory_space<vmem>>, vector<1x16x16x128xbf16>
    tpu.vector_store %arg7[%c0_23, %c1, %c0_24, %c0_25], %21 {strides = array<i32>} : memref<1x18x16x384xbf16, #tpu.memory_space<vmem>>, vector<1x16x16x128xbf16>,
    %23 = arith.truncf %9 : vector<256x128xf32> to vector<256x128xbf16>
    %24 = vector.shape_cast %23 : vector<256x128xbf16> to vector<1x16x16x128xbf16>
    %c0_26 = arith.constant 0 : index
    %c1_27 = arith.constant 1 : index
    %c0_28 = arith.constant 0 : index
    %c128 = arith.constant 128 : index
    %25 = vector.load %arg7[%c0_26, %c1_27, %c0_28, %c128] : memref<1x18x16x384xbf16, #tpu.memory_space<vmem>>, vector<1x16x16x128xbf16>
    tpu.vector_store %arg7[%c0_26, %c1_27, %c0_28, %c128], %24 {strides = array<i32>} : memref<1x18x16x384xbf16, #tpu.memory_space<vmem>>, vector<1x16x16x128xbf16>,
    %26 = arith.truncf %19 : vector<256x128xf32> to vector<256x128xbf16>
    %27 = vector.shape_cast %26 : vector<256x128xbf16> to vector<1x16x16x128xbf16>
    %c0_29 = arith.constant 0 : index
    %c1_30 = arith.constant 1 : index
    %c0_31 = arith.constant 0 : index
    %c256 = arith.constant 256 : index
    %28 = vector.load %arg7[%c0_29, %c1_30, %c0_31, %c256] : memref<1x18x16x384xbf16, #tpu.memory_space<vmem>>, vector<1x16x16x128xbf16>
    tpu.vector_store %arg7[%c0_29, %c1_30, %c0_31, %c256], %27 {strides = array<i32>} : memref<1x18x16x384xbf16, #tpu.memory_space<vmem>>, vector<1x16x16x128xbf16>,
    %c0_32 = arith.constant 0 : index
    %c0_33 = arith.constant 0 : index
    %c0_34 = arith.constant 0 : index
    %c0_35 = arith.constant 0 : index
    %29 = vector.load %arg7[%c0_32, %c0_33, %c0_34, %c0_35] : memref<1x18x16x384xbf16, #tpu.memory_space<vmem>>, vector<1x16x16x384xbf16>
    %30 = vector.shape_cast %29 : vector<1x16x16x384xbf16> to vector<256x384xbf16>
    %c0_36 = arith.constant 0 : index
    %c0_37 = arith.constant 0 : index
    %c0_38 = arith.constant 0 : index
    %31 = vector.load %arg2[%c0_36, %c0_37, %c0_38] : memref<3x384x128xbf16, #tpu.memory_space<vmem>>, vector<1x384x128xbf16>
    %32 = vector.shape_cast %31 : vector<1x384x128xbf16> to vector<384x128xbf16>
    %cst_39 = arith.constant dense<0.000000e+00> : vector<256x128xf32>
    %33 = tpu.matmul %30, %32, %cst_39 {dimension_numbers = #tpu.dot_dimension_numbers<[1], [0], [0], [1], [0, 0, 1, 1], [], []>} : vector<256x384xbf16>, vector<384x128xbf16>, vector<256x128xf32> -> vector<256x128xf32>
    %c0_40 = arith.constant 0 : index
    %c0_41 = arith.constant 0 : index
    %34 = vector.load %arg9[%c0_40, %c0_41] : memref<256x128xf32, #tpu.memory_space<vmem>>, vector<256x128xf32>
    tpu.vector_store %arg9[%c0_40, %c0_41], %33 {strides = array<i32>} : memref<256x128xf32, #tpu.memory_space<vmem>>, vector<256x128xf32>,
    %c0_42 = arith.constant 0 : index
    %c1_43 = arith.constant 1 : index
    %c0_44 = arith.constant 0 : index
    %c0_45 = arith.constant 0 : index
    %35 = vector.load %arg7[%c0_42, %c1_43, %c0_44, %c0_45] : memref<1x18x16x384xbf16, #tpu.memory_space<vmem>>, vector<1x16x16x384xbf16>
    %36 = vector.shape_cast %35 : vector<1x16x16x384xbf16> to vector<256x384xbf16>
    %c1_46 = arith.constant 1 : index
    %c0_47 = arith.constant 0 : index
    %c0_48 = arith.constant 0 : index
    %37 = vector.load %arg2[%c1_46, %c0_47, %c0_48] : memref<3x384x128xbf16, #tpu.memory_space<vmem>>, vector<1x384x128xbf16>
    %38 = vector.shape_cast %37 : vector<1x384x128xbf16> to vector<384x128xbf16>
    %cst_49 = arith.constant dense<0.000000e+00> : vector<256x128xf32>
    %39 = tpu.matmul %36, %38, %cst_49 {dimension_numbers = #tpu.dot_dimension_numbers<[1], [0], [0], [1], [0, 0, 1, 1], [], []>} : vector<256x384xbf16>, vector<384x128xbf16>, vector<256x128xf32> -> vector<256x128xf32>
    %c0_50 = arith.constant 0 : index
    %c0_51 = arith.constant 0 : index
    %40 = vector.load %arg9[%c0_50, %c0_51] : memref<256x128xf32, #tpu.memory_space<vmem>>, vector<256x128xf32>
    %41 = arith.addf %40, %39 : vector<256x128xf32>
    %c0_52 = arith.constant 0 : index
    %c0_53 = arith.constant 0 : index
    %42 = vector.load %arg9[%c0_52, %c0_53] : memref<256x128xf32, #tpu.memory_space<vmem>>, vector<256x128xf32>
    tpu.vector_store %arg9[%c0_52, %c0_53], %41 {strides = array<i32>} : memref<256x128xf32, #tpu.memory_space<vmem>>, vector<256x128xf32>,
    %c0_54 = arith.constant 0 : index
    %c2 = arith.constant 2 : index
    %c0_55 = arith.constant 0 : index
    %c0_56 = arith.constant 0 : index
    %43 = vector.load %arg7[%c0_54, %c2, %c0_55, %c0_56] : memref<1x18x16x384xbf16, #tpu.memory_space<vmem>>, vector<1x16x16x384xbf16>
    %44 = vector.shape_cast %43 : vector<1x16x16x384xbf16> to vector<256x384xbf16>
    %c2_57 = arith.constant 2 : index
    %c0_58 = arith.constant 0 : index
    %c0_59 = arith.constant 0 : index
    %45 = vector.load %arg2[%c2_57, %c0_58, %c0_59] : memref<3x384x128xbf16, #tpu.memory_space<vmem>>, vector<1x384x128xbf16>
    %46 = vector.shape_cast %45 : vector<1x384x128xbf16> to vector<384x128xbf16>
    %cst_60 = arith.constant dense<0.000000e+00> : vector<256x128xf32>
    %47 = tpu.matmul %44, %46, %cst_60 {dimension_numbers = #tpu.dot_dimension_numbers<[1], [0], [0], [1], [0, 0, 1, 1], [], []>} : vector<256x384xbf16>, vector<384x128xbf16>, vector<256x128xf32> -> vector<256x128xf32>
    %c0_61 = arith.constant 0 : index
    %c0_62 = arith.constant 0 : index
    %48 = vector.load %arg9[%c0_61, %c0_62] : memref<256x128xf32, #tpu.memory_space<vmem>>, vector<256x128xf32>
    %49 = arith.addf %48, %47 : vector<256x128xf32>
    %c0_63 = arith.constant 0 : index
    %c0_64 = arith.constant 0 : index
    %50 = vector.load %arg9[%c0_63, %c0_64] : memref<256x128xf32, #tpu.memory_space<vmem>>, vector<256x128xf32>
    tpu.vector_store %arg9[%c0_63, %c0_64], %49 {strides = array<i32>} : memref<256x128xf32, #tpu.memory_space<vmem>>, vector<256x128xf32>,
    %c0_65 = arith.constant 0 : index
    %c0_66 = arith.constant 0 : index
    %51 = vector.load %arg9[%c0_65, %c0_66] : memref<256x128xf32, #tpu.memory_space<vmem>>, vector<256x128xf32>
    %52 = vector.extract_strided_slice %0 {offsets = [0, 0], sizes = [1, 128], strides = [1, 1]} : vector<3x128xf32> to vector<1x128xf32>
    %53 = vector.broadcast %52 : vector<1x128xf32> to vector<256x128xf32>
    %54 = arith.addf %51, %53 : vector<256x128xf32>
    %cst_67 = arith.constant 0.000000e+00 : f32
    %55 = vector.broadcast %cst_67 : f32 to vector<256x128xf32>
    %56 = arith.maximumf %54, %55 : vector<256x128xf32>
    %c1_i32_68 = arith.constant 1 : i32
    %57 = vector.broadcast %c1_i32_68 : i32 to vector<256x128xi32>
    %58 = arith.cmpi sge, %2, %57 : vector<256x128xi32>
    %c1_i32_69 = arith.constant 1 : i32
    %59 = tpu.dynamic_rotate %56 by %c1_i32_69 dim 0 : vector<256x128xf32>, i32 -> vector<256x128xf32>
    %cst_70 = arith.constant 0.000000e+00 : f32
    %60 = vector.broadcast %cst_70 : f32 to vector<256x128xf32>
    %61 = arith.select %58, %59, %60 : vector<256x128xi1>, vector<256x128xf32>
    %c14_i32_71 = arith.constant 14 : i32
    %62 = vector.broadcast %c14_i32_71 : i32 to vector<256x128xi32>
    %63 = arith.cmpi sle, %2, %62 : vector<256x128xi32>
    %c255_i32_72 = arith.constant 255 : i32
    %64 = tpu.dynamic_rotate %56 by %c255_i32_72 dim 0 : vector<256x128xf32>, i32 -> vector<256x128xf32>
    %cst_73 = arith.constant 0.000000e+00 : f32
    %65 = vector.broadcast %cst_73 : f32 to vector<256x128xf32>
    %66 = arith.select %63, %64, %65 : vector<256x128xi1>, vector<256x128xf32>
    %67 = arith.truncf %61 : vector<256x128xf32> to vector<256x128xbf16>
    %68 = vector.shape_cast %67 : vector<256x128xbf16> to vector<1x16x16x128xbf16>
    %c0_74 = arith.constant 0 : index
    %c1_75 = arith.constant 1 : index
    %c0_76 = arith.constant 0 : index
    %c0_77 = arith.constant 0 : index
    %69 = vector.load %arg8[%c0_74, %c1_75, %c0_76, %c0_77] : memref<1x18x16x384xbf16, #tpu.memory_space<vmem>>, vector<1x16x16x128xbf16>
    tpu.vector_store %arg8[%c0_74, %c1_75, %c0_76, %c0_77], %68 {strides = array<i32>} : memref<1x18x16x384xbf16, #tpu.memory_space<vmem>>, vector<1x16x16x128xbf16>,
    %70 = arith.truncf %56 : vector<256x128xf32> to vector<256x128xbf16>
    %71 = vector.shape_cast %70 : vector<256x128xbf16> to vector<1x16x16x128xbf16>
    %c0_78 = arith.constant 0 : index
    %c1_79 = arith.constant 1 : index
    %c0_80 = arith.constant 0 : index
    %c128_81 = arith.constant 128 : index
    %72 = vector.load %arg8[%c0_78, %c1_79, %c0_80, %c128_81] : memref<1x18x16x384xbf16, #tpu.memory_space<vmem>>, vector<1x16x16x128xbf16>
    tpu.vector_store %arg8[%c0_78, %c1_79, %c0_80, %c128_81], %71 {strides = array<i32>} : memref<1x18x16x384xbf16, #tpu.memory_space<vmem>>, vector<1x16x16x128xbf16>,
    %73 = arith.truncf %66 : vector<256x128xf32> to vector<256x128xbf16>
    %74 = vector.shape_cast %73 : vector<256x128xbf16> to vector<1x16x16x128xbf16>
    %c0_82 = arith.constant 0 : index
    %c1_83 = arith.constant 1 : index
    %c0_84 = arith.constant 0 : index
    %c256_85 = arith.constant 256 : index
    %75 = vector.load %arg8[%c0_82, %c1_83, %c0_84, %c256_85] : memref<1x18x16x384xbf16, #tpu.memory_space<vmem>>, vector<1x16x16x128xbf16>
    tpu.vector_store %arg8[%c0_82, %c1_83, %c0_84, %c256_85], %74 {strides = array<i32>} : memref<1x18x16x384xbf16, #tpu.memory_space<vmem>>, vector<1x16x16x128xbf16>,
    %c0_86 = arith.constant 0 : index
    %c0_87 = arith.constant 0 : index
    %c0_88 = arith.constant 0 : index
    %c0_89 = arith.constant 0 : index
    %76 = vector.load %arg8[%c0_86, %c0_87, %c0_88, %c0_89] : memref<1x18x16x384xbf16, #tpu.memory_space<vmem>>, vector<1x16x16x384xbf16>
    %77 = vector.shape_cast %76 : vector<1x16x16x384xbf16> to vector<256x384xbf16>
    %c0_90 = arith.constant 0 : index
    %c0_91 = arith.constant 0 : index
    %c0_92 = arith.constant 0 : index
    %78 = vector.load %arg3[%c0_90, %c0_91, %c0_92] : memref<3x384x128xbf16, #tpu.memory_space<vmem>>, vector<1x384x128xbf16>
    %79 = vector.shape_cast %78 : vector<1x384x128xbf16> to vector<384x128xbf16>
    %cst_93 = arith.constant dense<0.000000e+00> : vector<256x128xf32>
    %80 = tpu.matmul %77, %79, %cst_93 {dimension_numbers = #tpu.dot_dimension_numbers<[1], [0], [0], [1], [0, 0, 1, 1], [], []>} : vector<256x384xbf16>, vector<384x128xbf16>, vector<256x128xf32> -> vector<256x128xf32>
    %c0_94 = arith.constant 0 : index
    %c0_95 = arith.constant 0 : index
    %81 = vector.load %arg9[%c0_94, %c0_95] : memref<256x128xf32, #tpu.memory_space<vmem>>, vector<256x128xf32>
    tpu.vector_store %arg9[%c0_94, %c0_95], %80 {strides = array<i32>} : memref<256x128xf32, #tpu.memory_space<vmem>>, vector<256x128xf32>,
    %c0_96 = arith.constant 0 : index
    %c1_97 = arith.constant 1 : index
    %c0_98 = arith.constant 0 : index
    %c0_99 = arith.constant 0 : index
    %82 = vector.load %arg8[%c0_96, %c1_97, %c0_98, %c0_99] : memref<1x18x16x384xbf16, #tpu.memory_space<vmem>>, vector<1x16x16x384xbf16>
    %83 = vector.shape_cast %82 : vector<1x16x16x384xbf16> to vector<256x384xbf16>
    %c1_100 = arith.constant 1 : index
    %c0_101 = arith.constant 0 : index
    %c0_102 = arith.constant 0 : index
    %84 = vector.load %arg3[%c1_100, %c0_101, %c0_102] : memref<3x384x128xbf16, #tpu.memory_space<vmem>>, vector<1x384x128xbf16>
    %85 = vector.shape_cast %84 : vector<1x384x128xbf16> to vector<384x128xbf16>
    %cst_103 = arith.constant dense<0.000000e+00> : vector<256x128xf32>
    %86 = tpu.matmul %83, %85, %cst_103 {dimension_numbers = #tpu.dot_dimension_numbers<[1], [0], [0], [1], [0, 0, 1, 1], [], []>} : vector<256x384xbf16>, vector<384x128xbf16>, vector<256x128xf32> -> vector<256x128xf32>
    %c0_104 = arith.constant 0 : index
    %c0_105 = arith.constant 0 : index
    %87 = vector.load %arg9[%c0_104, %c0_105] : memref<256x128xf32, #tpu.memory_space<vmem>>, vector<256x128xf32>
    %88 = arith.addf %87, %86 : vector<256x128xf32>
    %c0_106 = arith.constant 0 : index
    %c0_107 = arith.constant 0 : index
    %89 = vector.load %arg9[%c0_106, %c0_107] : memref<256x128xf32, #tpu.memory_space<vmem>>, vector<256x128xf32>
    tpu.vector_store %arg9[%c0_106, %c0_107], %88 {strides = array<i32>} : memref<256x128xf32, #tpu.memory_space<vmem>>, vector<256x128xf32>,
    %c0_108 = arith.constant 0 : index
    %c2_109 = arith.constant 2 : index
    %c0_110 = arith.constant 0 : index
    %c0_111 = arith.constant 0 : index
    %90 = vector.load %arg8[%c0_108, %c2_109, %c0_110, %c0_111] : memref<1x18x16x384xbf16, #tpu.memory_space<vmem>>, vector<1x16x16x384xbf16>
    %91 = vector.shape_cast %90 : vector<1x16x16x384xbf16> to vector<256x384xbf16>
    %c2_112 = arith.constant 2 : index
    %c0_113 = arith.constant 0 : index
    %c0_114 = arith.constant 0 : index
    %92 = vector.load %arg3[%c2_112, %c0_113, %c0_114] : memref<3x384x128xbf16, #tpu.memory_space<vmem>>, vector<1x384x128xbf16>
    %93 = vector.shape_cast %92 : vector<1x384x128xbf16> to vector<384x128xbf16>
    %cst_115 = arith.constant dense<0.000000e+00> : vector<256x128xf32>
    %94 = tpu.matmul %91, %93, %cst_115 {dimension_numbers = #tpu.dot_dimension_numbers<[1], [0], [0], [1], [0, 0, 1, 1], [], []>} : vector<256x384xbf16>, vector<384x128xbf16>, vector<256x128xf32> -> vector<256x128xf32>
    %c0_116 = arith.constant 0 : index
    %c0_117 = arith.constant 0 : index
    %95 = vector.load %arg9[%c0_116, %c0_117] : memref<256x128xf32, #tpu.memory_space<vmem>>, vector<256x128xf32>
    %96 = arith.addf %95, %94 : vector<256x128xf32>
    %c0_118 = arith.constant 0 : index
    %c0_119 = arith.constant 0 : index
    %97 = vector.load %arg9[%c0_118, %c0_119] : memref<256x128xf32, #tpu.memory_space<vmem>>, vector<256x128xf32>
    tpu.vector_store %arg9[%c0_118, %c0_119], %96 {strides = array<i32>} : memref<256x128xf32, #tpu.memory_space<vmem>>, vector<256x128xf32>,
    %98 = arith.truncf %9 : vector<256x128xf32> to vector<256x128xbf16>
    %c0_120 = arith.constant 0 : index
    %c0_121 = arith.constant 0 : index
    %99 = vector.load %arg4[%c0_120, %c0_121] : memref<128x128xbf16, #tpu.memory_space<vmem>>, vector<128x128xbf16>
    %cst_122 = arith.constant dense<0.000000e+00> : vector<256x128xf32>
    %100 = tpu.matmul %98, %99, %cst_122 {dimension_numbers = #tpu.dot_dimension_numbers<[1], [0], [0], [1], [0, 0, 1, 1], [], []>} : vector<256x128xbf16>, vector<128x128xbf16>, vector<256x128xf32> -> vector<256x128xf32>
    %101 = vector.extract_strided_slice %0 {offsets = [2, 0], sizes = [1, 128], strides = [1, 1]} : vector<3x128xf32> to vector<1x128xf32>
    %102 = vector.broadcast %101 : vector<1x128xf32> to vector<256x128xf32>
    %103 = arith.addf %100, %102 : vector<256x128xf32>
    %c0_123 = arith.constant 0 : index
    %c0_124 = arith.constant 0 : index
    %104 = vector.load %arg9[%c0_123, %c0_124] : memref<256x128xf32, #tpu.memory_space<vmem>>, vector<256x128xf32>
    %105 = vector.extract_strided_slice %0 {offsets = [1, 0], sizes = [1, 128], strides = [1, 1]} : vector<3x128xf32> to vector<1x128xf32>
    %106 = vector.broadcast %105 : vector<1x128xf32> to vector<256x128xf32>
    %107 = arith.addf %104, %106 : vector<256x128xf32>
    %108 = arith.addf %107, %103 : vector<256x128xf32>
    %cst_125 = arith.constant 0.000000e+00 : f32
    %109 = vector.broadcast %cst_125 : f32 to vector<256x128xf32>
    %110 = arith.maximumf %108, %109 : vector<256x128xf32>
    %111 = vector.shape_cast %110 : vector<256x128xf32> to vector<1x16x16x128xf32>
    %c0_126 = arith.constant 0 : index
    %c0_127 = arith.constant 0 : index
    %c0_128 = arith.constant 0 : index
    %c0_129 = arith.constant 0 : index
    %112 = vector.load %arg6[%c0_126, %c0_127, %c0_128, %c0_129] : memref<1x16x16x128xf32, #tpu.memory_space<vmem>>, vector<1x16x16x128xf32>
    tpu.vector_store %arg6[%c0_126, %c0_127, %c0_128, %c0_129], %111 {strides = array<i32>} : memref<1x16x16x128xf32, #tpu.memory_space<vmem>>, vector<1x16x16x128xf32>,
    return
  }
  func.func @transform_0(%arg0: i32) -> (i32, i32, i32, i32) {
    %c0_i32 = arith.constant 0 : i32
    %c0_i32_0 = arith.constant 0 : i32
    %c0_i32_1 = arith.constant 0 : i32
    %c0_i32_2 = arith.constant 0 : i32
    return %arg0, %c0_i32, %c0_i32_0, %c0_i32_1 : i32, i32, i32, i32
  }
  func.func @transform_1(%arg0: i32) -> (i32, i32, i32) {
    %c0_i32 = arith.constant 0 : i32
    %c0_i32_0 = arith.constant 0 : i32
    %c0_i32_1 = arith.constant 0 : i32
    %c0_i32_2 = arith.constant 0 : i32
    return %c0_i32, %c0_i32_0, %c0_i32_1 : i32, i32, i32
  }
  func.func @transform_2(%arg0: i32) -> (i32, i32, i32) {
    %c0_i32 = arith.constant 0 : i32
    %c0_i32_0 = arith.constant 0 : i32
    %c0_i32_1 = arith.constant 0 : i32
    %c0_i32_2 = arith.constant 0 : i32
    return %c0_i32, %c0_i32_0, %c0_i32_1 : i32, i32, i32
  }
  func.func @transform_3(%arg0: i32) -> (i32, i32) {
    %c0_i32 = arith.constant 0 : i32
    %c0_i32_0 = arith.constant 0 : i32
    %c0_i32_1 = arith.constant 0 : i32
    return %c0_i32, %c0_i32_0 : i32, i32
  }
  func.func @transform_4(%arg0: i32) -> (i32, i32) {
    %c0_i32 = arith.constant 0 : i32
    %c0_i32_0 = arith.constant 0 : i32
    %c0_i32_1 = arith.constant 0 : i32
    return %c0_i32, %c0_i32_0 : i32, i32
  }
  func.func @transform_5(%arg0: i32) -> (i32, i32, i32, i32) {
    %c0_i32 = arith.constant 0 : i32
    %c0_i32_0 = arith.constant 0 : i32
    %c0_i32_1 = arith.constant 0 : i32
    %c0_i32_2 = arith.constant 0 : i32
    return %arg0, %c0_i32, %c0_i32_0, %c0_i32_1 : i32, i32, i32, i32
  }
}

</mosaic_0001>

<bundles_post_ra>
// kernel: tpu_custom_call.1
= control target key start
LH: loop header
LB: loop body
LE: loop exit
PB: predicated region body
PF: predicated region fallthrough
CT: control target
= control target key end

     0   :  { %10 = vsyncpa [#allocation6], 0  ;;  %s10525_s0 = inlined_call_operand.hbm [shape: f32[2,16,16,128], index: 0, kind: input, shape index: {}]   ;;  %s10526_s1 = inlined_call_operand.hbm [shape: bf16[3,384,128], index: 1, kind: input, shape index: {}]   ;;  %s10527_s2 = inlined_call_operand.hbm [shape: bf16[3,384,128], index: 2, kind: input, shape index: {}]   ;;  %s10528_s3 = inlined_call_operand.hbm [shape: bf16[128,128], index: 3, kind: input, shape index: {}]   ;;  %s10529_s4 = inlined_call_operand.vmem [shape: f32[3,128], index: 4, kind: input, shape index: {}]   ;;  %s10530_s5 = inlined_call_operand.hbm [shape: f32[2,16,16,128], index: 5, kind: output, shape index: {}]  }
   0x1   :  { %12 = vsyncpa [#allocation6 + $0x1], 0 }
   0x2   :  { %13 = vsyncpa [#allocation9], 0 }
   0x3   :  { %14 = vsyncpa [#allocation12], 0 }
   0x4   :  { %15 = vsyncpa [#allocation7], 0 }
   0x5   :  { %17 = vsyncpa [#allocation7 + $0x1], 0  ;;  %s8162_s18 = smov 0   ;;  %s8164_s19 = smov 0  }
   0x6   :  { %s8166_s20 = smov 0   ;;  %s8168_s21 = smov 0  }
   0x7 LB: > { %s8183_s22 = sadd.s32 4294967295, %s8117_s21   ;;  %s5357_s23 = sadd.s32 4294967294, %s8117_s21   ;;  %s8117_s21 = sphi %s8168_s21, %s10718_s21   ;;  %s8113_s20 = sphi %s8166_s20, %s10717_s20   ;;  %s8109_s19 = sphi %s8164_s19, %s10716_s19   ;;  %s8105_s18 = sphi %s8162_s18, %s10715_s18  }
   0x8   : > { %p43_p0 = scmp.ne.s32.totalorder %s8109_s19, %s8105_s18  ;;  %p10531_p1 = scmp.eq.s32.totalorder %s8183_s22, 0 }
   0x9   : > { %p157_p3 = scmp.eq.s32.totalorder %s5357_s23, 1  ;;  %p5358_p5 = scmp.ge.s32.totalorder %s8117_s21, 1 }
   0xa   : > { %p8192_p4 = por %p10531_p1, %p43_p0  ;;  %p164_p7 = scmp.lt.s32.totalorder %s8117_s21, 3 }
   0xb   : > { %p8197_p6 = por %p157_p3, %p43_p0  ;;  %s8119_s27 = smov [#allocation8]  }
   0xc   : > { %s10583_s24 = scalar_select %p8192_p4, 1, 0 }
   0xd   : > { %s10584_s25 = scalar_select %p8197_p6, 1, 0 }
   0xe   : > { %p8202_p8 = pnand %p5358_p5, %p164_p7  ;;  %s176_s28 = sshll.u32 %s8119_s27, 4  ;;  %s8206_s28 = int_to_ptr.vmem [resolvable:$true] %s176_s28 }
   0xf   : > { %s8120_s30 = smov [#allocation10]   ;;  %s8121_s7 = smov [#allocation11]  }
  0x10   : > { %s10585_s26 = scalar_select %p8202_p8, 1, 0 }
  0x11   : > { %p7707_p9 = pneg %p8202_p8  ;;  %s189_s6 = sshll.u32 %s8120_s30, 4  ;;  %s8217_s6 = int_to_ptr.vmem [resolvable:$true] %s189_s6 }
  0x12   : > { %s8219_s8 = sshll.u32 %s8121_s7, 4  ;;  %s7929_s11 = scalar_lea.hbm %s10526_s1, 9216  ;;  %s203_s8 = int_to_ptr.vmem [resolvable:$true] %s8219_s8 }
  0x13   : > { %p8213_p11 = pnand %p7707_p9, %p10531_p1  ;;  %p7930_p12 = scmp.ne.s32.totalorder %s10526_s1, %s7929_s11 }
  0x14   : > { %p7936_p5 = scmp.lt.u32.totalorder %s7929_s11, %s10526_s1 }
  0x15   : > { %p8229_p13 = pneg %p8213_p11 }
  0x17   : > { %p7932_p0 = pnand %p8229_p13, %p7930_p12 }
  0x19   : > { %p7933_p3 = pneg %p7932_p0 }
  0x1b   : > { %p7938_p7 = pnand %p7936_p5, %p7933_p3 }
  0x1d   : > { %7941 = shalt.err (!%p7938_p7)
}
  0x1e   : > { %s7942_s17 = scalar_lea.vmem %s8206_s28, 9216  ;;  %p7950_p2 = scmp.lt.s32.totalorder %s8206_s28, %s8206_s28 }
  0x1f   : > { %p7943_p9 = scmp.ne.s32.totalorder %s8206_s28, %s7942_s17  ;;  %p7951_p6 = scmp.lt.s32.totalorder %s7942_s17, %s7942_s17 }
  0x21   : > { %p7945_p10 = pnand %p7943_p9, %p8229_p13  ;;  %p7952_p12 = por %p7951_p6, %p7950_p2 }
  0x23   : > { %p7946_p1 = pneg %p7945_p10 }
  0x25   : > { %p7953_p0 = pnand %p7952_p12, %p7946_p1 }
  0x27   : > { %7956 = shalt.err (!%p7953_p0)
}
  0x28   : > { %s8122_s23 = smov 64   ;;  %s8123_s27 = smov 4  }
  0x29   : > { %7710 = dma.hbm_to_vmem [thread:$0]  (!%p8213_p11), %s10526_s1, 9216, %s8206_s28, [#allocation9], %s8122_s23, %s8122_s23, %s8123_s27  }
  0x2a   : > { %s7957_s11 = scalar_lea.hbm %s10527_s2, 9216 }
  0x2b   : > { %p7958_p1 = scmp.ne.s32.totalorder %s10527_s2, %s7957_s11  ;;  %p7964_p10 = scmp.lt.u32.totalorder %s7957_s11, %s10527_s2 }
  0x2d   : > { %p7960_p2 = pnand %p7958_p1, %p8229_p13 }
  0x2f   : > { %p7961_p6 = pneg %p7960_p2 }
  0x31   : > { %p7966_p3 = pnand %p7964_p10, %p7961_p6 }
  0x33   : > { %7969 = shalt.err (!%p7966_p3)
}
  0x34   : > { %s7970_s28 = scalar_lea.vmem %s8217_s6, 9216  ;;  %p7978_p12 = scmp.lt.s32.totalorder %s8217_s6, %s8217_s6 }
  0x35   : > { %p7971_p5 = scmp.ne.s32.totalorder %s8217_s6, %s7970_s28  ;;  %p7979_p0 = scmp.lt.s32.totalorder %s7970_s28, %s7970_s28 }
  0x37   : > { %p7973_p7 = pnand %p7971_p5, %p8229_p13  ;;  %p7980_p1 = por %p7979_p0, %p7978_p12 }
  0x39   : > { %p7974_p9 = pneg %p7973_p7 }
  0x3b   : > { %p7981_p2 = pnand %p7980_p1, %p7974_p9 }
  0x3d   : > { %7984 = shalt.err (!%p7981_p2)
}
  0x3e   : > { %7713 = dma.hbm_to_vmem [thread:$0]  (!%p8213_p11), %s10527_s2, 9216, %s8217_s6, [#allocation9], %s8122_s23, %s8122_s23, %s8123_s27  }
  0x3f   : > { %s7985_s10 = scalar_lea.hbm %s10528_s3, 1024 }
  0x40   : > { %p7986_p6 = scmp.ne.s32.totalorder %s10528_s3, %s7985_s10  ;;  %p7992_p5 = scmp.lt.u32.totalorder %s7985_s10, %s10528_s3 }
  0x42   : > { %p7988_p10 = pnand %p7986_p6, %p8229_p13 }
  0x44   : > { %p7989_p3 = pneg %p7988_p10 }
  0x46   : > { %p7994_p7 = pnand %p7992_p5, %p7989_p3 }
  0x48   : > { %7997 = shalt.err (!%p7994_p7)
}
  0x49   : > { %s7998_s16 = scalar_lea.vmem %s203_s8, 1024  ;;  %p8006_p1 = scmp.lt.s32.totalorder %s203_s8, %s203_s8 }
  0x4a   : > { %p7999_p9 = scmp.ne.s32.totalorder %s203_s8, %s7998_s16  ;;  %p8007_p2 = scmp.lt.s32.totalorder %s7998_s16, %s7998_s16 }
  0x4c   : > { %p8001_p12 = pnand %p7999_p9, %p8229_p13  ;;  %p8008_p4 = por %p8007_p2, %p8006_p1 }
  0x4e   : > { %p8002_p0 = pneg %p8001_p12 }
  0x50   : > { %p8009_p8 = pnand %p8008_p4, %p8002_p0 }
  0x52   : > { %8012 = shalt.err (!%p8009_p8)
}
  0x53   : > { %7716 = dma.hbm_to_vmem [thread:$0]  (!%p8213_p11), %s10528_s3, 1024, %s203_s8, [#allocation12], %s8122_s23, %s8122_s23, %s8123_s27  }
  0x54   : > { %s8302_s14 = sadd.s32 1, %s8117_s21   ;;  %s30_s17 = sadd.s32 1, %s8113_s20 }
  0x55   : > { %s27_s29 = ssub.s32 %s8117_s21, %s8302_s14  ;;  %p37_p8 = scmp.ne.s32.totalorder %s8113_s20, %s8109_s19 }
  0x56   : > { %p28_p4 = scmp.eq.s32.totalorder %s27_s29, 0  ;;  %p38_p13 = scmp.eq.s32.totalorder %s8117_s21, 0 }
  0x57   : > { %p7728_p6 = scmp.lt.s32.totalorder %s8117_s21, 2  ;;  %p10588_p3 = scmp.eq.s32.totalorder %s8183_s22, 1 }
  0x58   : > { %s8312_s30 = scalar_select %p28_p4, %s8113_s20, %s30_s17  }
  0x59   : > { %p39_p10 = por %p38_p13, %p37_p8  ;;  %p8316_p5 = por %p10588_p3, %p37_p8 }
  0x5a   : > { %s219_s9 = sand.u32 1, %s8113_s20   ;;  %s5529_s10 = sshll.u32 %s8117_s21, 12 }
  0x5b   : > { %s5363_s8 = sshll.u32 %s219_s9, 8  ;;  %s8325_s11 = scalar_lea.hbm %s10525_s0, %s5529_s10 }
  0x5c   : > { %s223_s12 = scalar_lea.vmem [#allocation5], %s5363_s8  ;;  %p8327_p11 = pnand %p7728_p6, %p39_p10 }
  0x5d   : > { %s230_s13 = sshll.u32 %s223_s12, 4  ;;  %s8333_s16 = scalar_lea.sflag [#allocation6], %s219_s9  ;;  %s8331_s13 = int_to_ptr.vmem [resolvable:$true] %s230_s13 }
  0x5e   : > { %s8013_s6 = scalar_lea.hbm %s8325_s11, 4096  ;;  %p8015_p9 = pneg %p8327_p11 }
  0x5f   : > { %p8014_p7 = scmp.ne.s32.totalorder %s8325_s11, %s8013_s6  ;;  %s8018_s17 = scalar_lea.hbm %s10525_s0, 8192 }
  0x60   : > { %p8019_p1 = scmp.lt.u32.totalorder %s8325_s11, %s10525_s0  ;;  %p8020_p2 = scmp.lt.u32.totalorder %s8018_s17, %s8013_s6 }
  0x61   : > { %p8016_p12 = pnand %p8015_p9, %p8014_p7  ;;  %p8022_p8 = scmp.lt.u32.totalorder %s8013_s6, %s8325_s11 }
  0x62   : > { %p8021_p4 = por %p8020_p2, %p8019_p1 }
  0x63   : > { %p8017_p0 = pneg %p8016_p12 }
  0x64   : > { %p8023_p13 = por %p8022_p8, %p8021_p4 }
  0x66   : > { %p8024_p6 = pnand %p8023_p13, %p8017_p0 }
  0x68   : > { %8027 = shalt.err (!%p8024_p6)
}
  0x69   : > { %s8028_s9 = scalar_lea.vmem %s8331_s13, 4096  ;;  %s8124_s23 = smov [#allocation5]  }
  0x6a   : > { %p8029_p10 = scmp.ne.s32.totalorder %s8331_s13, %s8028_s9  ;;  %s8033_s27 = sshll.u32 %s8124_s23, 4  ;;  %s8034_s27 = int_to_ptr.vmem [resolvable:$false] %s8033_s27 }
  0x6b   : > { %s8035_s12 = scalar_lea.vmem %s8034_s27, 8192  ;;  %p8036_p12 = scmp.lt.s32.totalorder %s8331_s13, %s8034_s27 }
  0x6c   : > { %p8031_p3 = pnand %p8029_p10, %p8015_p9  ;;  %p8037_p1 = scmp.lt.s32.totalorder %s8035_s12, %s8028_s9 }
  0x6e   : > { %p8032_p7 = pneg %p8031_p3  ;;  %p8038_p2 = por %p8037_p1, %p8036_p12 }
  0x70   : > { %p8039_p4 = pnand %p8038_p2, %p8032_p7 }
  0x72   : > { %8042 = shalt.err (!%p8039_p4)
}
  0x73   : > { %s8125_s6 = smov 128   ;;  %s8126_s28 = smov 8  }
  0x74   : > { %7720 = dma.hbm_to_vmem [thread:$0]  (!%p8327_p11), %s8325_s11, 4096, %s8331_s13, %s8333_s16, %s8125_s6, %s8125_s6, %s8126_s28  }
  0x75   : > { %p10591_p9 = scmp.ne.s32.totalorder %s10585_s26, 0 }
  0x77   : > { %242 = sbr.rel (%p10591_p9) target bundleno = 1299 (0x513), region = 40 }
  0x7e   : > { %s8364_s29 = sand.u32 1, %s8109_s19   ;;  %p10592_p0 = scmp.ne.s32.totalorder %s10583_s24, 0 }
  0x7f   : > { %s5367_s17 = sshll.u32 %s8364_s29, 8  ;;  %s245_s10 = scalar_lea.sflag [#allocation6], %s8364_s29 }
  0x80   : > { %s8370_s8 = scalar_lea.vmem [#allocation5], %s5367_s17 }
  0x81   : > { %8088 = dma.done.wait (%p10592_p0), %s245_s10, 4096  }
  0x82   : > { %8090 = vsyncadd (%p10592_p0), %s245_s10, 4294963200  ;;  %p10593_p11 = scmp.eq.s32.totalorder %s8183_s22, 0 }
  0x84   : > { %8092 = dma.done.wait (%p10593_p11), [#allocation9], 18432   ;;  %p10594_p8 = pmov %p10593_p11 }
  0x86   : > { %8094 = vsyncadd (%p10594_p8), [#allocation9], 4294948864  ;;  %p10595_p13 = pmov %p10594_p8 }
  0x87   : > { %p10596_p6 = pmov %p10594_p8 }
  0x88   : > { %8096 = dma.done.wait (%p10595_p13), [#allocation12], 1024  }
  0x89   : > { %8098 = vsyncadd (%p10596_p6), [#allocation12], 4294966272  ;;  %v10534_v0 = vmov 0   ;;  %v7776_v1 = vld [vmem:[#allocation8 + $0x40] sm:$0xff]   ;;  %v7779_v4 = vld [vmem:[#allocation8 + $0x48] sm:$0xff]   ;;  %v289_v17 = vlaneseq  ;;  %vm8128_vm3 = vmmov 1  }
  0x8a   : > { %905 = vmatprep.mubr.bf16.mxu0 %v10534_v0  ;;  %6939 = vmatprep.mubr.bf16.mxu1 %v10534_v0  ;;  %v7777_v2 = vld [vmem:[#allocation8 + $0x80] sm:$0xff]   ;;  %v7780_v5 = vld [vmem:[#allocation8 + $0x88] sm:$0xff]   ;;  %v7782_v7 = vld [vmem:[#allocation8 + $0x50] sm:$0xff]   ;;  %s10356_s15 = scalar_lea.vmem [#allocation13], %s5367_s17  ;;  %s5530_s16 = sshll.u32 %s8183_s22, 12 }
  0x8b   : > { %6083 = vmatprep.subr.bf16.mxu0 %v7776_v1  ;;  %v7778_v3 = vld [vmem:[#allocation8] sm:$0xff]   ;;  %6923 = vmatprep.subr.bf16.mxu1 %v7777_v2  ;;  %v7781_v6 = vld [vmem:[#allocation8 + $0x8] sm:$0xff]   ;;  %v7783_v8 = vld [vmem:[#allocation8 + $0x90] sm:$0xff]   ;;  %v8386_v21 = vshrl.u32 %v289_v17, 7  ;;  %s5255_s9 = sshll.u32 %s10356_s15, 4  ;;  %s10476_s12 = scalar_lea.hbm %s10530_s5, %s5530_s16  ;;  %s10478_s9 = int_to_ptr.vmem [resolvable:$true] %s5255_s9 }
  0x8c   : > { %6084 = vmatpush3.bf16.msra.mxu0 %v7778_v3  ;;  %6924 = vmatpush3.bf16.msra.mxu1 %v7777_v2  ;;  %v7784_v9 = vld [vmem:[#allocation8 + $0x10] sm:$0xff]   ;;  %v7785_v10 = vld [vmem:[#allocation8 + $0x58] sm:$0xff]   ;;  %v7788_v13 = vld [vmem:[#allocation8 + $0x60] sm:$0xff]   ;;  %s5242_s22 = scalar_lea.sflag [#allocation7], %s8364_s29  ;;  %s8043_s6 = scalar_lea.vmem %s10478_s9, 4096 }
  0x8d   : > { %6085 = vmatprep.subr.bf16.mxu0 %v7779_v4  ;;  %6925 = vmatprep.subr.bf16.mxu1 %v7780_v5  ;;  %v7786_v11 = vld [vmem:[#allocation8 + $0x98] sm:$0xff]   ;;  %v7789_v14 = vld [vmem:[#allocation8 + $0xa0] sm:$0xff]   ;;  %v7791_v16 = vld [vmem:[#allocation8 + $0x68] sm:$0xff]   ;;  %v291_v25 = vadd.s32 8, %v8386_v21  ;;  %vm471_vm0 = vcmp.lt.s32.totalorder %v8386_v21, 7  ;;  %vm372_vm2 = vcmp.lt.s32.totalorder %v8386_v21, 1  ;;  %p8044_p10 = scmp.ne.s32.totalorder %s10478_s9, %s8043_s6 }
  0x8e   : > { %v7787_v12 = vld [vmem:[#allocation8 + $0x18] sm:$0xff]   ;;  %v7790_v15 = vld [vmem:[#allocation8 + $0x20] sm:$0xff]   ;;  %v7792_v18 = vld [vmem:[#allocation8 + $0xa8] sm:$0xff]   ;;  %vm338_vm5 = vcmp.ge.s32.totalorder %v8386_v21, 1  ;;  %s8129_s28 = smov [#allocation13]  }
  0x8f   : > { %v7793_v19 = vld [vmem:[#allocation8 + $0x28] sm:$0xff]   ;;  %v7794_v20 = vld [vmem:[#allocation8 + $0x70] sm:$0xff]   ;;  %v7797_v24 = vld [vmem:[#allocation8 + $0x78] sm:$0xff]   ;;  %vm438_vm1 = vcmp.le.s32.totalorder %v291_v25, 14  ;;  %p8045_p3 = pnand %p8044_p10, %p8316_p5  ;;  %s8047_s17 = sshll.u32 %s8129_s28, 4  ;;  %s8048_s17 = int_to_ptr.vmem [resolvable:$false] %s8047_s17 }
  0x90   : > { %6086 = vmatpush3.bf16.msra.mxu0 %v7781_v6  ;;  %6926 = vmatpush3.bf16.msra.mxu1 %v7780_v5  ;;  %v7795_v22 = vld [vmem:[#allocation8 + $0xb0] sm:$0xff]   ;;  %v8390_v26 = vld [vmem:[%s8370_s8] sm:$0xff]  ;;  %v8393_v27 = vld [vmem:[%s8370_s8 + $0x8] sm:$0xff]  ;;  %s8049_s10 = scalar_lea.vmem %s8048_s17, 8192  ;;  %p8050_p12 = scmp.lt.s32.totalorder %s10478_s9, %s8048_s17 }
  0x91   : > { %6087 = vmatprep.subr.bf16.mxu0 %v7782_v7  ;;  %6927 = vmatprep.subr.bf16.mxu1 %v7783_v8  ;;  %v7796_v23 = vld [vmem:[#allocation8 + $0x30] sm:$0xff]   ;;  %v7798_v29 = vld [vmem:[#allocation8 + $0xb8] sm:$0xff]   ;;  %v439_v30 = vrot.slane %v8390_v26, 1  ;;  %v440_v31 = vrot.slane %v8393_v27, 1  ;;  %v8406_v34 = vld [vmem:[%s8370_s8 + $0x20] sm:$0xff]  ;;  %v340_v46 = vrot.slane %v8390_v26, 7  ;;  %v8448_v52 = vpack.c.bf16 %v8393_v27, %v8390_v26  ;;  %p8046_p7 = pneg %p8045_p3  ;;  %p8051_p1 = scmp.lt.s32.totalorder %s8049_s10, %s8043_s6 }
  0x92   : > { %v8396_v28 = vld [vmem:[%s8370_s8 + $0x10] sm:$0xff]  ;;  %v8403_v33 = vld [vmem:[%s8370_s8 + $0x18] sm:$0xff]  ;;  %v7800_v38 = vld [vmem:[#allocation8 + $0x100] sm:$0xff]   ;;  %v443_v40 = vrot.slane %v8406_v34, 1  ;;  %v341_v47 = vrot.slane %v8393_v27, 7 }
  0x93   : > { %v441_v32 = vrot.slane %v8396_v28, 1  ;;  %v7799_v35 = vld [vmem:[#allocation8 + $0x38] sm:$0xff]   ;;  %v502_v37 = vsel %vm471_vm0, %v439_v30, %v440_v31  ;;  %v442_v39 = vrot.slane %v8403_v33, 1  ;;  %v8421_v42 = vld [vmem:[%s8370_s8 + $0x28] sm:$0xff]  ;;  %v8424_v43 = vld [vmem:[%s8370_s8 + $0x30] sm:$0xff]  ;;  %10599 = vst [vmem:[#allocation18_spill] sm:$0xff] %v8448_v52  ;;  %p8052_p2 = por %p8051_p1, %p8050_p12 }
  0x94   : > { %6088 = vmatpush3.bf16.msra.mxu0 %v7784_v9  ;;  %6928 = vmatpush3.bf16.msra.mxu1 %v7783_v8  ;;  %v8417_v41 = vld [vmem:[%s8370_s8 + $0xf8] sm:$0xff]  ;;  %v8436_v49 = vld [vmem:[%s8370_s8 + $0x40] sm:$0xff]  ;;  %vm8442_vm4 = vmpackc.low %vm438_vm1, %vm8128_vm3  ;;  %v444_v54 = vrot.slane %v8421_v42, 1  ;;  %v445_v55 = vrot.slane %v8424_v43, 1  ;;  %v403_v60 = vsel %vm372_vm2, %v340_v46, %v341_v47 }
  0x95   : > { %6089 = vmatprep.subr.bf16.mxu0 %v7785_v10  ;;  %6929 = vmatprep.subr.bf16.mxu1 %v7786_v11  ;;  %v501_v36 = vsel %vm471_vm0, %v440_v31, %v441_v32  ;;  %v499_v44 = vsel %vm471_vm0, %v442_v39, %v443_v40  ;;  %v500_v45 = vsel %vm471_vm0, %v441_v32, %v442_v39  ;;  %v8433_v48 = vld [vmem:[%s8370_s8 + $0x38] sm:$0xff]  ;;  %v10536_v53 = vrot.slane %v8417_v41, 7  ;;  %v7801_v59 = vld [vmem:[#allocation8 + $0xc0] sm:$0xff]   ;;  %v7802_v61 = vld [vmem:[#allocation8 + $0x108] sm:$0xff]   ;;  %p8053_p4 = pnand %p8052_p2, %p8046_p7 }
  0x96   : > { %v8438_v50 = vpack.c.bf16 %v501_v36, %v502_v37  ;;  %v8453_v56 = vpack.c.bf16 %v499_v44, %v500_v45  ;;  %v446_v57 = vrot.slane %v8433_v48, 1  ;;  %v447_v58 = vrot.slane %v8436_v49, 1  ;;  %v8473_v2 = vld [vmem:[%s8370_s8 + $0x48] sm:$0xff]  ;;  %v8484_v5 = vld [vmem:[%s8370_s8 + $0x50] sm:$0xff]  ;;  %v8487_v7 = vld [vmem:[%s8370_s8 + $0x58] sm:$0xff] }
  0x97   : > { %v404_v62 = vsel %vm372_vm2, %v10536_v53, %v340_v46  ;;  %v497_v63 = vsel %vm471_vm0, %v444_v54, %v445_v55  ;;  %v498_v1 = vsel %vm471_vm0, %v443_v40, %v444_v54  ;;  %v7803_v6 = vld [vmem:[#allocation8 + $0xc8] sm:$0xff]   ;;  %v8490_v8 = vld [vmem:[%s8370_s8 + $0x60] sm:$0xff]  ;;  %vm8504_vm6 = vmpackc.low %vm8128_vm3, %vm338_vm5  ;;  %v448_v17 = vrot.slane %v8473_v2, 1 }
  0x98   : > { %6090 = vmatpush3.bf16.msra.mxu0 %v7787_v12  ;;  %6930 = vmatpush3.bf16.msra.mxu1 %v7786_v11  ;;  %v495_v3 = vsel %vm471_vm0, %v446_v57, %v447_v58  ;;  %v496_v4 = vsel %vm471_vm0, %v445_v55, %v446_v57  ;;  %v8492_v9 = vpack.c.bf16 %v403_v60, %v404_v62  ;;  %v342_v12 = vrot.slane %v8396_v28, 7  ;;  %v8547_v36 = vld [vmem:[%s8370_s8 + $0x80] sm:$0xff]  ;;  %v7807_v37 = vld [vmem:[#allocation8 + $0xd8] sm:$0xff]   ;;  %v8577_v60 = vld [vmem:[%s8370_s8 + $0x90] sm:$0xff] }
  0x99   : > { %6091 = vmatprep.subr.bf16.mxu0 %v7788_v13  ;;  %6931 = vmatprep.subr.bf16.mxu1 %v7789_v14  ;;  %v8494_v10 = vpack.c.bf16 %v497_v63, %v498_v1  ;;  %v8498_v11 = vpack.c.bf16 %v8403_v33, %v8396_v28  ;;  %v7804_v13 = vld [vmem:[#allocation8 + $0x110] sm:$0xff]   ;;  %v494_v28 = vsel %vm471_vm0, %v447_v58, %v448_v17  ;;  %v344_v44 = vrot.slane %v8406_v34, 7  ;;  %v7808_v55 = vld [vmem:[#allocation8 + $0x120] sm:$0xff]   ;;  %v8716_v53 = vld [vmem:[%s8370_s8 + $0xe8] sm:$0xff] }
  0x9a   : > { %v8555_v40 = vpack.c.bf16 %v8421_v42, %v8406_v34  ;;  %v345_v46 = vrot.slane %v8421_v42, 7  ;;  %v455_v58 = vrot.slane %v8547_v36, 1  ;;  %v7809_v34 = vld [vmem:[#allocation8 + $0xe0] sm:$0xff]   ;;  %v8728_v26 = vpack.c.bf16 %v8487_v7, %v8484_v5 }
  0x9b   : > { %10600 = vst [vmem:[#allocation19_spill] sm:$0xff] %v8498_v11 }
  0x9c   : > { %6092 = vmatpush3.bf16.msra.mxu0 %v7790_v15  ;;  %6932 = vmatpush3.bf16.msra.mxu1 %v7789_v14  ;;  %v10601_v14 = vmov 0  ;;  %v8508_v15 = vpack.c.bf16 %v495_v3, %v496_v4  ;;  %10604 = vst [vmem:[#allocation21_spill] sm:$0xff] %v8555_v40  ;;  %v399_v62 = vsel %vm372_vm2, %v344_v44, %v345_v46  ;;  %v8590_v3 = vld [vmem:[%s8370_s8 + $0x98] sm:$0xff]  ;;  %10611 = vst [vmem:[#allocation28_spill] sm:$0xff] %v8728_v26 }
  0x9d   : > { %6093 = vmatprep.subr.bf16.mxu0 %v7791_v16  ;;  %6933 = vmatprep.subr.bf16.mxu1 %v7792_v18  ;;  %v10602_v14 = vsel %vm8504_vm6, 4294967295, %v10601_v14  ;;  %v343_v16 = vrot.slane %v8403_v33, 7  ;;  %v8541_v33 = vld [vmem:[%s8370_s8 + $0x70] sm:$0xff] }
  0x9e   : > { %10603 = vst [vmem:[#allocation20_spill] sm:$0xff] %v10602_v14  ;;  %v453_v54 = vrot.slane %v8541_v33, 1 }
  0x9f   : > { %v401_v25 = vsel %vm372_vm2, %v342_v12, %v343_v16  ;;  %v400_v42 = vsel %vm372_vm2, %v343_v16, %v344_v44  ;;  %v347_v16 = vrot.slane %v8433_v48, 7 }
  0xa0   : > { %6094 = vmatpush3.bf16.msra.mxu0 %v7793_v19  ;;  %6934 = vmatpush3.bf16.msra.mxu1 %v7792_v18  ;;  %v449_v18 = vrot.slane %v8484_v5, 1  ;;  %v450_v19 = vrot.slane %v8487_v7, 1 }
  0xa1   : > { %6095 = vmatprep.subr.bf16.mxu0 %v7794_v20  ;;  %6935 = vmatprep.subr.bf16.mxu1 %v7795_v22  ;;  %v451_v20 = vrot.slane %v8490_v8, 1 }
  0xa2   : > { %v493_v27 = vsel %vm471_vm0, %v448_v17, %v449_v18  ;;  %v492_v32 = vsel %vm471_vm0, %v449_v18, %v450_v19  ;;  %v7811_v18 = vld [vmem:[#allocation8 + $0xe8] sm:$0xff]  }
  0xa3   : > { %v491_v31 = vsel %vm471_vm0, %v450_v19, %v451_v20  ;;  %v8551_v39 = vpack.c.bf16 %v493_v27, %v494_v28  ;;  %v8602_v19 = vpack.c.bf16 %v399_v62, %v400_v42  ;;  %v8616_v28 = vld [vmem:[%s8370_s8 + $0xa8] sm:$0xff]  ;;  %v8648_v42 = vld [vmem:[%s8370_s8 + $0xc0] sm:$0xff] }
  0xa4   : > { %6096 = vmatpush3.bf16.msra.mxu0 %v7796_v23  ;;  %6936 = vmatpush3.bf16.msra.mxu1 %v7795_v22  ;;  %v7805_v22 = vld [vmem:[#allocation8 + $0xd0] sm:$0xff]   ;;  %v402_v23 = vsel %vm372_vm2, %v341_v47, %v342_v12  ;;  %v8558_v45 = vpack.c.bf16 %v491_v31, %v492_v32  ;;  %v8597_v12 = vld [vmem:[%s8370_s8 + $0xa0] sm:$0xff]  ;;  %v460_v62 = vrot.slane %v8616_v28, 1 }
  0xa5   : > { %6097 = vmatprep.subr.bf16.mxu0 %v7797_v24  ;;  %6937 = vmatprep.subr.bf16.mxu1 %v7798_v29  ;;  %v7806_v24 = vld [vmem:[#allocation8 + $0x118] sm:$0xff]   ;;  %10605 = vst [vmem:[#allocation22_spill] sm:$0xff] %v8602_v19  ;;  %v459_v27 = vrot.slane %v8597_v12, 1  ;;  %v7812_v31 = vld [vmem:[#allocation8 + $0x130] sm:$0xff]  }
  0xa6   : > { %v7813_v32 = vld [vmem:[#allocation8 + $0xf0] sm:$0xff]  }
  0xa8   : > { %6098 = vmatpush3.bf16.msra.mxu0 %v7799_v35  ;;  %6938 = vmatpush3.bf16.msra.mxu1 %v7798_v29  ;;  %v8534_v29 = vld [vmem:[%s8370_s8 + $0x68] sm:$0xff]  ;;  %v8544_v35 = vld [vmem:[%s8370_s8 + $0x78] sm:$0xff] }
  0xa9   : > { %6219 = vmatprep.subr.bf16.mxu0 %v7800_v38  ;;  %7259 = vmatprep.subr.bf16.mxu1 %v7800_v38  ;;  %v8549_v38 = vpack.c.bf16 %v401_v25, %v402_v23  ;;  %v452_v47 = vrot.slane %v8534_v29, 1  ;;  %v454_v57 = vrot.slane %v8544_v35, 1  ;;  %v458_v25 = vrot.slane %v8590_v3, 1 }
  0xab   : > { %906 = vmatmul.mubr.bf16.vlgmr.msra.gmra.mrb[0].mxu0 %v10534_v0  ;;  %6940 = vmatmul.mubr.msk.bf16.vlgmr.msra.gmra.mrb[0].mxu1 %vm8442_vm4, %v8438_v50  ;;  %v489_v63 = vsel %vm471_vm0, %v452_v47, %v453_v54  ;;  %v490_v1 = vsel %vm471_vm0, %v451_v20, %v452_v47  ;;  %v487_v4 = vsel %vm471_vm0, %v454_v57, %v455_v58 }
  0xac   : > { %6220 = vmatpush3.bf16.msra.mxu0 %v7801_v59  ;;  %913 = vmatprep.mubr.bf16.mxu0 %v8448_v52  ;;  %v8604_v20 = vpack.c.bf16 %v489_v63, %v490_v1  ;;  %v7815_v63 = vld [vmem:[#allocation8 + $0xf8] sm:$0xff]  }
  0xad   : > { %6943 = vmatprep.mubr.msk.bf16.mxu1 %vm8442_vm4, %v8453_v56  ;;  %6221 = vmatprep.subr.bf16.mxu0 %v7802_v61 }
  0xae   : > { %7267 = vmatpush3.bf16.msra.mxu1 %v7801_v59  ;;  %v8566_v59 = vld [vmem:[%s8370_s8 + $0x88] sm:$0xff] }
  0xaf   : > { %7260 = vmatprep.subr.bf16.mxu1 %v7802_v61  ;;  %v7810_v61 = vld [vmem:[#allocation8 + $0x128] sm:$0xff]   ;;  %v456_v17 = vrot.slane %v8566_v59, 1 }
  0xb0   : > { %6222 = vmatpush3.bf16.msra.mxu0 %v7803_v6 }
  0xb1   : > { %6223 = vmatprep.subr.bf16.mxu0 %v7804_v13 }
  0xb2   : > { %7268 = vmatpush3.bf16.msra.mxu1 %v7803_v6  ;;  %v488_v6 = vsel %vm471_vm0, %v453_v54, %v454_v57  ;;  %v486_v54 = vsel %vm471_vm0, %v455_v58, %v456_v17 }
  0xb3   : > { %5533 = vmatmul.mubr.msk.bf16.gmra.mrb[4].mxu0 %vm8504_vm6, %v8492_v9  ;;  %6944 = vmatmul.mubr.msk.bf16.gmra.mrb[4].mxu1 %vm8442_vm4, %v8494_v10  ;;  %v8610_v23 = vpack.c.bf16 %v487_v4, %v488_v6 }
  0xb4   : > { %921 = vmatprep.mubr.bf16.mxu0 %v8498_v11  ;;  %6947 = vmatprep.mubr.msk.bf16.mxu1 %vm8442_vm4, %v8508_v15 }
  0xb5   : > { %6224 = vmatpush3.bf16.msra.mxu0 %v7805_v22  ;;  %7261 = vmatprep.subr.bf16.mxu1 %v7804_v13  ;;  %v346_v13 = vrot.slane %v8424_v43, 7 }
  0xb6   : > { %7269 = vmatpush3.bf16.msra.mxu1 %v7805_v22  ;;  %6225 = vmatprep.subr.bf16.mxu0 %v7806_v24  ;;  %v8608_v22 = vpack.c.bf16 %v8433_v48, %v8424_v43  ;;  %v8627_v48 = vld [vmem:[%s8370_s8 + $0xb0] sm:$0xff] }
  0xb7   : > { %7262 = vmatprep.subr.bf16.mxu1 %v7806_v24  ;;  %v457_v24 = vrot.slane %v8577_v60, 1  ;;  %v398_v43 = vsel %vm372_vm2, %v345_v46, %v346_v13  ;;  %v397_v44 = vsel %vm372_vm2, %v346_v13, %v347_v16  ;;  %v483_v46 = vsel %vm471_vm0, %v458_v25, %v459_v27  ;;  %v8659_v13 = vld [vmem:[%s8370_s8 + $0xf0] sm:$0xff] }
  0xb8   : > { %10606 = vst [vmem:[#allocation23_spill] sm:$0xff] %v8608_v22  ;;  %v461_v58 = vrot.slane %v8627_v48, 1  ;;  %v8653_v1 = vpack.c.bf16 %v397_v44, %v398_v43  ;;  %v8684_v43 = vld [vmem:[%s8370_s8 + $0xd0] sm:$0xff]  ;;  %v470_v44 = vrot.slane %v8417_v41, 1 }
  0xb9   : > { %6226 = vmatpush3.bf16.msra.mxu0 %v7807_v37  ;;  %v485_v47 = vsel %vm471_vm0, %v456_v17, %v457_v24  ;;  %v484_v57 = vsel %vm471_vm0, %v457_v24, %v458_v25  ;;  %v8663_v17 = vpack.c.bf16 %v8473_v2, %v8436_v49  ;;  %v463_v24 = vrot.slane %v8648_v42, 1  ;;  %v8668_v25 = vld [vmem:[#allocation8 + $0x140] sm:$0xff]  }
  0xba   : > { %7270 = vmatpush3.bf16.msra.mxu1 %v7807_v37  ;;  %6227 = vmatprep.subr.bf16.mxu0 %v7808_v55  ;;  %v7814_v37 = vld [vmem:[#allocation8 + $0x138] sm:$0xff]   ;;  %10607 = vst [vmem:[#allocation24_spill] sm:$0xff] %v8653_v1  ;;  %v8655_v4 = vpack.c.bf16 %v485_v47, %v486_v54  ;;  %v481_v47 = vsel %vm471_vm0, %v460_v62, %v461_v58 }
  0xbb   : > { %5536 = vmatmul.mubr.msk.bf16.gmra.mrb[8].mxu0 %vm8504_vm6, %v8549_v38  ;;  %6948 = vmatmul.mubr.msk.bf16.gmra.mrb[8].mxu1 %vm8442_vm4, %v8551_v39  ;;  %10608 = vst [vmem:[#allocation25_spill] sm:$0xff] %v8663_v17 }
  0xbc   : > { %929 = vmatprep.mubr.bf16.mxu0 %v8555_v40  ;;  %6951 = vmatprep.mubr.msk.bf16.mxu1 %vm8442_vm4, %v8558_v45 }
  0xbd   : > { %7263 = vmatprep.subr.bf16.mxu1 %v7808_v55  ;;  %6228 = vmatpush3.bf16.msra.mxu0 %v7809_v34  ;;  %v8640_v55 = vld [vmem:[%s8370_s8 + $0xb8] sm:$0xff] }
  0xbe   : > { %7271 = vmatpush3.bf16.msra.mxu1 %v7809_v34  ;;  %6229 = vmatprep.subr.bf16.mxu0 %v7810_v61  ;;  %v348_v34 = vrot.slane %v8436_v49, 7  ;;  %v462_v6 = vrot.slane %v8640_v55, 1 }
  0xbf   : > { %7264 = vmatprep.subr.bf16.mxu1 %v7810_v61  ;;  %v349_v61 = vrot.slane %v8473_v2, 7 }
  0xc0   : > { %v396_v2 = vsel %vm372_vm2, %v347_v16, %v348_v34  ;;  %v482_v16 = vsel %vm471_vm0, %v459_v27, %v460_v62  ;;  %v479_v54 = vsel %vm471_vm0, %v462_v6, %v463_v24  ;;  %v503_v27 = vsel %vm471_vm0, %v470_v44, %v439_v30 }
  0xc1   : > { %6230 = vmatpush3.bf16.msra.mxu0 %v7811_v18  ;;  %v395_v49 = vsel %vm372_vm2, %v348_v34, %v349_v61  ;;  %v480_v34 = vsel %vm471_vm0, %v461_v58, %v462_v6  ;;  %v364_v62 = vrot.slane %v8648_v42, 7  ;;  %v8722_v6 = vpack.c.bf16 %v481_v47, %v482_v16 }
  0xc2   : > { %7272 = vmatpush3.bf16.msra.mxu1 %v7811_v18  ;;  %6231 = vmatprep.subr.bf16.mxu0 %v7812_v31  ;;  %v8665_v18 = vpack.c.bf16 %v483_v46, %v484_v57  ;;  %v8699_v46 = vld [vmem:[%s8370_s8 + $0xd8] sm:$0xff]  ;;  %v8720_v58 = vpack.c.bf16 %v395_v49, %v396_v2  ;;  %v352_v47 = vrot.slane %v8490_v8, 7  ;;  %v353_v16 = vrot.slane %v8534_v29, 7 }
  0xc3   : > { %5539 = vmatmul.mubr.msk.bf16.gmra.mrb[12].mxu0 %vm8504_vm6, %v8602_v19  ;;  %6952 = vmatmul.mubr.msk.bf16.gmra.mrb[12].mxu1 %vm8442_vm4, %v8604_v20  ;;  %v8770_v19 = vpack.c.bf16 %v8534_v29, %v8490_v8  ;;  %v366_v8 = vrot.slane %v8684_v43, 7  ;;  %v367_v29 = vrot.slane %v8699_v46, 7 }
  0xc4   : > { %937 = vmatprep.mubr.bf16.mxu0 %v8608_v22  ;;  %6955 = vmatprep.mubr.msk.bf16.mxu1 %vm8442_vm4, %v8610_v23  ;;  %10610 = vst [vmem:[#allocation27_spill] sm:$0xff] %v8720_v58 }
  0xc5   : > { %7265 = vmatprep.subr.bf16.mxu1 %v7812_v31  ;;  %6232 = vmatpush3.bf16.msra.mxu0 %v7813_v32  ;;  %v7824_v31 = vld [vmem:[#allocation8 + $0x1c0] sm:$0xff]   ;;  %10612 = vst [vmem:[#allocation29_spill] sm:$0xff] %v8770_v19 }
  0xc6   : > { %7273 = vmatpush3.bf16.msra.mxu1 %v7813_v32  ;;  %6233 = vmatprep.subr.bf16.mxu0 %v7814_v37  ;;  %v8681_v32 = vld [vmem:[%s8370_s8 + $0xc8] sm:$0xff] }
  0xc7   : > { %7266 = vmatprep.subr.bf16.mxu1 %v7814_v37  ;;  %v469_v37 = vrot.slane %v8659_v13, 1  ;;  %v464_v30 = vrot.slane %v8681_v32, 1  ;;  %v365_v2 = vrot.slane %v8681_v32, 7 }
  0xc9   : > { %6234 = vmatpush3.bf16.msra.mxu0 %v7815_v63  ;;  %v472_v0 = vsel %vm471_vm0, %v469_v37, %v470_v44  ;;  %v465_v44 = vrot.slane %v8684_v43, 1 }
  0xca   : > { %7274 = vmatpush3.bf16.msra.mxu1 %v7815_v63  ;;  %v8705_v63 = vld [vmem:[%s8370_s8 + $0xe0] sm:$0xff]  ;;  %6355 = vmatprep.subr.bf16.mxu0 %v7824_v31  ;;  %v8718_v57 = vpack.c.bf16 %v503_v27, %v472_v0  ;;  %v350_v31 = vrot.slane %v8484_v5, 7  ;;  %v466_v0 = vrot.slane %v8699_v46, 1  ;;  %v478_v27 = vsel %vm471_vm0, %v463_v24, %v464_v30 }
  0xcb   : > { %5542 = vmatmul.mubr.msk.bf16.gmra.mrb[16].mxu0 %vm8504_vm6, %v8653_v1  ;;  %6956 = vmatmul.mubr.msk.bf16.gmra.mrb[16].mxu1 %vm8442_vm4, %v8655_v4  ;;  %v8730_v1 = vpack.c.bf16 %v479_v54, %v480_v34  ;;  %v467_v49 = vrot.slane %v8705_v63, 1  ;;  %v468_v54 = vrot.slane %v8716_v53, 1  ;;  %v477_v34 = vsel %vm471_vm0, %v464_v30, %v465_v44 }
  0xcc   : > { %945 = vmatprep.mubr.bf16.mxu0 %v8663_v17  ;;  %6959 = vmatprep.mubr.msk.bf16.mxu1 %vm8442_vm4, %v8665_v18  ;;  %10609 = vst [vmem:[#allocation26_spill] sm:$0xff] %v8718_v57  ;;  %v351_v17 = vrot.slane %v8487_v7, 7  ;;  %v394_v7 = vsel %vm372_vm2, %v349_v61, %v350_v31  ;;  %v355_v61 = vrot.slane %v8544_v35, 7  ;;  %v8766_v22 = vpack.c.bf16 %v477_v34, %v478_v27 }
  0xcd   : > { %6971 = vmatprep.subr.bf16.mxu1 %v8668_v25  ;;  %v391_v24 = vsel %vm372_vm2, %v352_v47, %v353_v16  ;;  %v356_v30 = vrot.slane %v8547_v36, 7  ;;  %v8802_v27 = vpack.c.bf16 %v8544_v35, %v8541_v33  ;;  %v368_v35 = vrot.slane %v8705_v63, 7 }
  0xce   : > { %v393_v5 = vsel %vm372_vm2, %v350_v31, %v351_v17  ;;  %v475_v31 = vsel %vm471_vm0, %v466_v0, %v467_v49 }
  0xcf   : > { %v8764_v57 = vpack.c.bf16 %v393_v5, %v394_v7  ;;  %v474_v5 = vsel %vm471_vm0, %v467_v49, %v468_v54  ;;  %10613 = vst [vmem:[#allocation30_spill] sm:$0xff] %v8802_v27 }
  0xd3   : > { %5545 = vmatmul.mubr.msk.bf16.gmra.mrb[20].mxu0 %vm8504_vm6, %v8720_v58  ;;  %6960 = vmatmul.mubr.msk.bf16.gmra.mrb[20].mxu1 %vm8442_vm4, %v8722_v6  ;;  %v354_v58 = vrot.slane %v8541_v33, 7  ;;  %v359_v33 = vrot.slane %v8590_v3, 7 }
  0xd4   : > { %953 = vmatprep.mubr.bf16.mxu0 %v8728_v26  ;;  %6963 = vmatprep.mubr.msk.bf16.mxu1 %vm8442_vm4, %v8730_v1  ;;  %v476_v26 = vsel %vm471_vm0, %v465_v44, %v466_v0  ;;  %v357_v44 = vrot.slane %v8566_v59, 7  ;;  %v473_v0 = vsel %vm471_vm0, %v468_v54, %v469_v37  ;;  %v358_v37 = vrot.slane %v8577_v60, 7 }
  0xd5   : > { %v8772_v40 = vpack.c.bf16 %v475_v31, %v476_v26  ;;  %v392_v26 = vsel %vm372_vm2, %v351_v17, %v352_v47  ;;  %v8798_v34 = vpack.c.bf16 %v473_v0, %v474_v5  ;;  %v8806_v31 = vpack.c.bf16 %v8681_v32, %v8648_v42  ;;  %v7817_v0 = vld [vmem:[#allocation8 + $0x148] sm:$0xff]  }
  0xd6   : > { %v8796_v7 = vpack.c.bf16 %v391_v24, %v392_v26  ;;  %v379_v17 = vsel %vm372_vm2, %v364_v62, %v365_v2  ;;  %v369_v42 = vrot.slane %v8716_v53, 7  ;;  %v389_v32 = vsel %vm372_vm2, %v354_v58, %v355_v61 }
  0xd7   : > { %10614 = vst [vmem:[#allocation31_spill] sm:$0xff] %v8806_v31  ;;  %v390_v49 = vsel %vm372_vm2, %v353_v16, %v354_v58  ;;  %v10615_v47 = vrot.slane %v8640_v55, 7  ;;  %v8836_v5 = vpack.c.bf16 %v8566_v59, %v8547_v36  ;;  %v7818_v58 = vld [vmem:[#allocation8 + $0x150] sm:$0xff]   ;;  %v388_v36 = vsel %vm372_vm2, %v355_v61, %v356_v30 }
  0xd8   : > { %v8830_v24 = vpack.c.bf16 %v389_v32, %v390_v49  ;;  %v377_v59 = vsel %vm372_vm2, %v366_v8, %v367_v29  ;;  %v8869_v61 = vpack.c.bf16 %v8716_v53, %v8705_v63  ;;  %v385_v53 = vsel %vm372_vm2, %v358_v37, %v359_v33 }
  0xd9   : > { %v380_v54 = vsel %vm372_vm2, %v10615_v47, %v364_v62  ;;  %10616 = vst [vmem:[#allocation32_spill] sm:$0xff] %v8836_v5  ;;  %v387_v62 = vsel %vm372_vm2, %v356_v30, %v357_v44  ;;  %v7820_v30 = vld [vmem:[#allocation8 + $0x160] sm:$0xff]   ;;  %v375_v63 = vsel %vm372_vm2, %v368_v35, %v369_v42  ;;  %v376_v32 = vsel %vm372_vm2, %v367_v29, %v368_v35  ;;  %v7821_v47 = vld [vmem:[#allocation8 + $0x168] sm:$0xff]   ;;  %v7822_v35 = vld [vmem:[#allocation8 + $0x170] sm:$0xff]  }
  0xda   : > { %v8832_v26 = vpack.c.bf16 %v379_v17, %v380_v54  ;;  %v7819_v17 = vld [vmem:[#allocation8 + $0x158] sm:$0xff]   ;;  %10619 = vst [vmem:[#allocation35_spill] sm:$0xff] %v8869_v61  ;;  %v8892_v49 = vpack.c.bf16 %v375_v63, %v376_v32  ;;  %v8896_v54 = vpack.c.bf16 %v8616_v28, %v8597_v12  ;;  %v7829_v63 = vld [vmem:[#allocation8 + $0x1c8] sm:$0xff]  }
  0xdb   : > { %5548 = vmatmul.mubr.msk.bf16.gmra.mrb[24].mxu0 %vm8504_vm6, %v8764_v57  ;;  %6964 = vmatmul.mubr.msk.bf16.gmra.mrb[24].mxu1 %vm8442_vm4, %v8766_v22  ;;  %v7831_v32 = vld [vmem:[#allocation8 + $0x188] sm:$0xff]  }
  0xdc   : > { %961 = vmatprep.mubr.bf16.mxu0 %v8770_v19  ;;  %6967 = vmatprep.mubr.msk.bf16.mxu1 %vm8442_vm4, %v8772_v40  ;;  %10620 = vst [vmem:[#allocation36_spill] sm:$0xff] %v8896_v54 }
  0xe3   : > { %5551 = vmatmul.mubr.msk.bf16.gmra.mrb[28].mxu0 %vm8504_vm6, %v8796_v7  ;;  %6968 = vmatmul.mubr.msk.bf16.gmra.mrb[28].mxu1 %vm8442_vm4, %v8798_v34 }
  0xe4   : > { %969 = vmatprep.mubr.bf16.mxu0 %v8802_v27  ;;  %1596 = vmatprep.mubr.bf16.mxu1 %v8806_v31  ;;  %v8840_v27 = vpack.c.bf16 %v8699_v46, %v8684_v43  ;;  %v378_v43 = vsel %vm372_vm2, %v365_v2, %v366_v8  ;;  %v8859_v46 = vpack.c.bf16 %v387_v62, %v388_v36  ;;  %v370_v8 = vrot.slane %v8659_v13, 7 }
  0xe5   : > { %v8861_v16 = vpack.c.bf16 %v377_v59, %v378_v43  ;;  %v386_v2 = vsel %vm372_vm2, %v357_v44, %v358_v37  ;;  %v8900_v37 = vpack.c.bf16 %v8417_v41, %v8659_v13  ;;  %v8926_v36 = vpack.c.bf16 %v8640_v55, %v8627_v48 }
  0xe6   : > { %10617 = vst [vmem:[#allocation33_spill] sm:$0xff] %v8840_v27  ;;  %v8890_v44 = vpack.c.bf16 %v385_v53, %v386_v2  ;;  %v10624_v59 = vrot.slane %v8640_v55, 7  ;;  %v7827_v2 = vld [vmem:[#allocation8 + $0x208] sm:$0xff]   ;;  %v7830_v55 = vld [vmem:[#allocation8 + $0x218] sm:$0xff]   ;;  %v7826_v53 = vld [vmem:[#allocation8 + $0x180] sm:$0xff]  }
  0xe7   : > { %10621 = vst [vmem:[#allocation37_spill] sm:$0xff] %v8900_v37  ;;  %10623 = vst [vmem:[#allocation38_spill] sm:$0xff] %v8926_v36 }
  0xeb   : > { %5554 = vmatmul.mubr.msk.bf16.gmra.mrb[32].mxu0 %vm8504_vm6, %v8830_v24  ;;  %5659 = vmatmul.mubr.msk.bf16.vlgmr.msra.gmra.mrb[32].mxu1 %vm8504_vm6, %v8832_v26 }
  0xec   : > { %6972 = vmatpush3.bf16.msra.mxu1 %v8668_v25  ;;  %977 = vmatprep.mubr.bf16.mxu0 %v8836_v5  ;;  %v8865_v25 = vpack.c.bf16 %v8590_v3, %v8577_v60  ;;  %v360_v60 = vrot.slane %v8597_v12, 7  ;;  %v361_v3 = vrot.slane %v8616_v28, 7  ;;  %v10622_v28 = vrot.slane %v8417_v41, 7 }
  0xed   : > { %6973 = vmatprep.subr.bf16.mxu1 %v7817_v0  ;;  %1604 = vmatprep.mubr.bf16.mxu1 %v8840_v27  ;;  %v362_v41 = vrot.slane %v8627_v48, 7 }
  0xee   : > { %10618 = vst [vmem:[#allocation34_spill] sm:$0xff] %v8865_v25  ;;  %v384_v29 = vsel %vm372_vm2, %v359_v33, %v360_v60  ;;  %v383_v12 = vsel %vm372_vm2, %v360_v60, %v361_v3  ;;  %v373_v13 = vsel %vm372_vm2, %v370_v8, %v10622_v28  ;;  %v7833_v60 = vld [vmem:[#allocation8 + $0x228] sm:$0xff]   ;;  %v7840_v28 = vld [vmem:[#allocation8 + $0x1e0] sm:$0xff]  }
  0xef   : > { %v8920_v62 = vpack.c.bf16 %v383_v12, %v384_v29  ;;  %v381_v43 = vsel %vm372_vm2, %v362_v41, %v10624_v59  ;;  %v382_v48 = vsel %vm372_vm2, %v361_v3, %v362_v41  ;;  %v7835_v3 = vld [vmem:[#allocation8 + $0x230] sm:$0xff]   ;;  %v7839_v12 = vld [vmem:[#allocation8 + $0x198] sm:$0xff]   ;;  %v10627_v41 = vld [vmem:[#allocation23_spill] sm:$0xff] }
  0xf0   : > { %6974 = vmatpush3.bf16.msra.mxu1 %v7817_v0  ;;  %v374_v0 = vsel %vm372_vm2, %v369_v42, %v370_v8  ;;  %v7825_v42 = vld [vmem:[#allocation8 + $0x200] sm:$0xff]   ;;  %v7837_v8 = vld [vmem:[#allocation8 + $0x238] sm:$0xff]   ;;  %v7836_v29 = vld [vmem:[#allocation8 + $0x190] sm:$0xff]  }
  0xf1   : > { %6975 = vmatprep.subr.bf16.mxu1 %v7818_v58  ;;  %v8922_v33 = vpack.c.bf16 %v373_v13, %v374_v0  ;;  %v7841_v13 = vld [vmem:[#allocation8 + $0x1a0] sm:$0xff]   ;;  %v7842_v0 = vld [vmem:[#allocation8 + $0x1e8] sm:$0xff]   ;;  %v7844_v59 = vld [vmem:[#allocation8 + $0x1f0] sm:$0xff]  }
  0xf3   : > { %5557 = vmatmul.mubr.msk.bf16.gmra.mrb[36].mxu0 %vm8504_vm6, %v8859_v46  ;;  %5662 = vmatmul.mubr.msk.bf16.gmra.mrb[36].mxu1 %vm8504_vm6, %v8861_v16 }
  0xf4   : > { %6976 = vmatpush3.bf16.msra.mxu1 %v7818_v58  ;;  %985 = vmatprep.mubr.bf16.mxu0 %v8865_v25  ;;  %v7823_v58 = vld [vmem:[#allocation8 + $0x178] sm:$0xff]  }
  0xf5   : > { %6977 = vmatprep.subr.bf16.mxu1 %v7819_v17  ;;  %1612 = vmatprep.mubr.bf16.mxu1 %v8869_v61 }
  0xf8   : > { %6978 = vmatpush3.bf16.msra.mxu1 %v7819_v17  ;;  %v8945_v17 = vpack.c.bf16 %v381_v43, %v382_v48  ;;  %v7845_v43 = vld [vmem:[#allocation8 + $0x1b0] sm:$0xff]   ;;  %v7846_v48 = vld [vmem:[#allocation8 + $0x1f8] sm:$0xff]  }
  0xf9   : > { %6979 = vmatprep.subr.bf16.mxu1 %v7820_v30 }
  0xfb   : > { %5560 = vmatmul.mubr.msk.bf16.gmra.mrb[40].mxu0 %vm8504_vm6, %v8890_v44  ;;  %5665 = vmatmul.mubr.msk.bf16.gmra.mrb[40].mxu1 %vm8504_vm6, %v8892_v49 }
  0xfc   : > { %6980 = vmatpush3.bf16.msra.mxu1 %v7820_v30  ;;  %993 = vmatprep.mubr.bf16.mxu0 %v8896_v54  ;;  %v7832_v30 = vld [vmem:[#allocation8 + $0x220] sm:$0xff]  }
  0xfd   : > { %6981 = vmatprep.subr.bf16.mxu1 %v7821_v47  ;;  %1620 = vmatprep.mubr.bf16.mxu1 %v8900_v37 }
 0x100   : > { %6982 = vmatpush3.bf16.msra.mxu1 %v7821_v47  ;;  %v7834_v47 = vld [vmem:[#allocation8 + $0x1d0] sm:$0xff]  }
 0x101   : > { %6983 = vmatprep.subr.bf16.mxu1 %v7822_v35 }
 0x103   : > { %5563 = vmatmul.mubr.msk.bf16.gmra.mrb[44].mxu0 %vm8504_vm6, %v8920_v62  ;;  %5668 = vmatmul.mubr.msk.bf16.gmra.mrb[44].mxu1 %vm8504_vm6, %v8922_v33 }
 0x104   : > { %6984 = vmatpush3.bf16.msra.mxu1 %v7822_v35  ;;  %1001 = vmatprep.mubr.bf16.mxu0 %v8926_v36  ;;  %v7838_v35 = vld [vmem:[#allocation8 + $0x1d8] sm:$0xff]  }
 0x105   : > { %6985 = vmatprep.subr.bf16.mxu1 %v7823_v58  ;;  %6987 = vmatprep.mubr.msk.bf16.mxu1 %vm8442_vm4, %v8438_v50  ;;  %v7828_v50 = vld [vmem:[#allocation8 + $0x210] sm:$0xff]  }
 0x108   : > { %6986 = vmatpush3.bf16.msra.mxu1 %v7823_v58  ;;  %v10626_v58 = vld [vmem:[#allocation22_spill] sm:$0xff] }
 0x109   : > { %7019 = vmatprep.subr.bf16.mxu1 %v7825_v42 }
 0x10b   : > { %5566 = vmatmul.mubr.msk.bf16.gmra.mrb[48].mxu0 %vm8504_vm6, %v8945_v17  ;;  %6988 = vmatmul.mubr.msk.bf16.vlgmr.msra.gmra.mrb[0].mxu1 %vm8442_vm4, %v8453_v56 }
 0x10c   : > { %1009 = vmatprep.mubr.bf16.mxu0 %v8806_v31  ;;  %6991 = vmatprep.mubr.msk.bf16.mxu1 %vm8442_vm4, %v8494_v10 }
 0x10d   : > { %7020 = vmatpush3.bf16.msra.mxu1 %v7825_v42  ;;  %v7843_v42 = vld [vmem:[#allocation8 + $0x1a8] sm:$0xff]  }
 0x10e   : > { %7021 = vmatprep.subr.bf16.mxu1 %v7827_v2 }
 0x111   : > { %7022 = vmatpush3.bf16.msra.mxu1 %v7827_v2  ;;  %v10628_v2 = vld [vmem:[#allocation24_spill] sm:$0xff] }
 0x112   : > { %7023 = vmatprep.subr.bf16.mxu1 %v7828_v50 }
 0x113   : > { %5569 = vmatmul.mubr.msk.bf16.gmra.mrb[52].mxu0 %vm8504_vm6, %v8832_v26  ;;  %6992 = vmatmul.mubr.msk.bf16.gmra.mrb[4].mxu1 %vm8442_vm4, %v8508_v15 }
 0x114   : > { %1017 = vmatprep.mubr.bf16.mxu0 %v8840_v27  ;;  %6995 = vmatprep.mubr.msk.bf16.mxu1 %vm8442_vm4, %v8551_v39 }
 0x115   : > { %7024 = vmatpush3.bf16.msra.mxu1 %v7828_v50  ;;  %v10629_v50 = vld [vmem:[#allocation26_spill] sm:$0xff] }
 0x116   : > { %7025 = vmatprep.subr.bf16.mxu1 %v7830_v55 }
 0x119   : > { %7026 = vmatpush3.bf16.msra.mxu1 %v7830_v55  ;;  %v10630_v55 = vld [vmem:[#allocation25_spill] sm:$0xff] }
 0x11a   : > { %7027 = vmatprep.subr.bf16.mxu1 %v7832_v30 }
 0x11b   : > { %5572 = vmatmul.mubr.msk.bf16.gmra.mrb[56].mxu0 %vm8504_vm6, %v8861_v16  ;;  %6996 = vmatmul.mubr.msk.bf16.gmra.mrb[8].mxu1 %vm8442_vm4, %v8558_v45 }
 0x11c   : > { %1025 = vmatprep.mubr.bf16.mxu0 %v8869_v61  ;;  %6999 = vmatprep.mubr.msk.bf16.mxu1 %vm8442_vm4, %v8604_v20 }
 0x11d   : > { %7028 = vmatpush3.bf16.msra.mxu1 %v7832_v30  ;;  %v7847_v30 = vld [vmem:[#allocation8 + $0x1b8] sm:$0xff]  }
 0x11e   : > { %7029 = vmatprep.subr.bf16.mxu1 %v7833_v60 }
 0x121   : > { %7030 = vmatpush3.bf16.msra.mxu1 %v7833_v60  ;;  %v10631_v60 = vld [vmem:[#allocation27_spill] sm:$0xff] }
 0x122   : > { %7031 = vmatprep.subr.bf16.mxu1 %v7835_v3 }
 0x123   : > { %5575 = vmatmul.mubr.msk.bf16.gmra.mrb[60].mxu0 %vm8504_vm6, %v8892_v49  ;;  %7000 = vmatmul.mubr.msk.bf16.gmra.mrb[12].mxu1 %vm8442_vm4, %v8610_v23 }
 0x124   : > { %1500 = vmatprep.mubr.bf16.mxu0 %v8448_v52  ;;  %7003 = vmatprep.mubr.msk.bf16.mxu1 %vm8442_vm4, %v8655_v4 }
 0x125   : > { %7032 = vmatpush3.bf16.msra.mxu1 %v7835_v3  ;;  %v10632_v3 = vld [vmem:[#allocation28_spill] sm:$0xff] }
 0x126   : > { %7033 = vmatprep.subr.bf16.mxu1 %v7837_v8 }
 0x129   : > { %7034 = vmatpush3.bf16.msra.mxu1 %v7837_v8 }
 0x12b   : > { %5623 = vmatmul.mubr.msk.bf16.vlgmr.msra.gmra.mrb[64].mxu0 %vm8504_vm6, %v8492_v9  ;;  %7004 = vmatmul.mubr.msk.bf16.gmra.mrb[16].mxu1 %vm8442_vm4, %v8665_v18  ;;  %v10625_v9 = vld [vmem:[#allocation21_spill] sm:$0xff] }
 0x12c   : > { %6356 = vmatpush3.bf16.msra.mxu0 %v7826_v53  ;;  %1508 = vmatprep.mubr.bf16.mxu0 %v8498_v11 }
 0x12d   : > { %7007 = vmatprep.mubr.msk.bf16.mxu1 %vm8442_vm4, %v8722_v6  ;;  %6357 = vmatprep.subr.bf16.mxu0 %v7829_v63 }
 0x130   : > { %6358 = vmatpush3.bf16.msra.mxu0 %v7831_v32 }
 0x131   : > { %6359 = vmatprep.subr.bf16.mxu0 %v7834_v47 }
 0x133   : > { %5626 = vmatmul.mubr.msk.bf16.gmra.mrb[68].mxu0 %vm8504_vm6, %v8549_v38  ;;  %7008 = vmatmul.mubr.msk.bf16.gmra.mrb[20].mxu1 %vm8442_vm4, %v8730_v1 }
 0x134   : > { %1516 = vmatprep.mubr.bf16.mxu0 %v10625_v9  ;;  %7011 = vmatprep.mubr.msk.bf16.mxu1 %vm8442_vm4, %v8766_v22 }
 0x135   : > { %6360 = vmatpush3.bf16.msra.mxu0 %v7836_v29 }
 0x136   : > { %6361 = vmatprep.subr.bf16.mxu0 %v7838_v35 }
 0x139   : > { %6362 = vmatpush3.bf16.msra.mxu0 %v7839_v12 }
 0x13a   : > { %6363 = vmatprep.subr.bf16.mxu0 %v7840_v28 }
 0x13b   : > { %5629 = vmatmul.mubr.msk.bf16.gmra.mrb[72].mxu0 %vm8504_vm6, %v10626_v58  ;;  %7012 = vmatmul.mubr.msk.bf16.gmra.mrb[24].mxu1 %vm8442_vm4, %v8772_v40 }
 0x13c   : > { %1524 = vmatprep.mubr.bf16.mxu0 %v10627_v41  ;;  %7015 = vmatprep.mubr.msk.bf16.mxu1 %vm8442_vm4, %v8798_v34 }
 0x13d   : > { %6364 = vmatpush3.bf16.msra.mxu0 %v7841_v13 }
 0x13e   : > { %6365 = vmatprep.subr.bf16.mxu0 %v7842_v0 }
 0x141   : > { %6366 = vmatpush3.bf16.msra.mxu0 %v7843_v42 }
 0x142   : > { %6367 = vmatprep.subr.bf16.mxu0 %v7844_v59 }
 0x143   : > { %5632 = vmatmul.mubr.msk.bf16.gmra.mrb[76].mxu0 %vm8504_vm6, %v10628_v2  ;;  %7016 = vmatmul.mubr.msk.bf16.gmra.mrb[28].mxu1 %vm8442_vm4, %v10629_v50 }
 0x144   : > { %1532 = vmatprep.mubr.bf16.mxu0 %v10630_v55  ;;  %7035 = vmatprep.mubr.msk.bf16.mxu1 %vm8442_vm4, %v8453_v56  ;;  %v10633_v56 = vld [vmem:[#allocation30_spill] sm:$0xff] }
 0x145   : > { %6368 = vmatpush3.bf16.msra.mxu0 %v7845_v43 }
 0x146   : > { %6369 = vmatprep.subr.bf16.mxu0 %v7846_v48 }
 0x149   : > { %6370 = vmatpush3.bf16.msra.mxu0 %v7847_v30 }
 0x14b   : > { %5635 = vmatmul.mubr.msk.bf16.gmra.mrb[80].mxu0 %vm8504_vm6, %v10631_v60  ;;  %7036 = vmatmul.mubr.msk.bf16.vlgmr.msra.gmra.mrb[0].mxu1 %vm8442_vm4, %v8494_v10 }
 0x14c   : > { %1540 = vmatprep.mubr.bf16.mxu0 %v10632_v3  ;;  %7039 = vmatprep.mubr.msk.bf16.mxu1 %vm8442_vm4, %v8508_v15 }
 0x153   : > { %5638 = vmatmul.mubr.msk.bf16.gmra.mrb[84].mxu0 %vm8504_vm6, %v8764_v57  ;;  %7040 = vmatmul.mubr.msk.bf16.gmra.mrb[4].mxu1 %vm8442_vm4, %v8551_v39 }
 0x154   : > { %1548 = vmatprep.mubr.bf16.mxu0 %v8770_v19  ;;  %7043 = vmatprep.mubr.msk.bf16.mxu1 %vm8442_vm4, %v8558_v45 }
 0x15b   : > { %5641 = vmatmul.mubr.msk.bf16.gmra.mrb[88].mxu0 %vm8504_vm6, %v8796_v7  ;;  %7044 = vmatmul.mubr.msk.bf16.gmra.mrb[8].mxu1 %vm8442_vm4, %v8604_v20 }
 0x15c   : > { %1556 = vmatprep.mubr.bf16.mxu0 %v10633_v56  ;;  %7047 = vmatprep.mubr.msk.bf16.mxu1 %vm8442_vm4, %v8610_v23 }
 0x163   : > { %5644 = vmatmul.mubr.msk.bf16.gmra.mrb[92].mxu0 %vm8504_vm6, %v8830_v24  ;;  %7048 = vmatmul.mubr.msk.bf16.gmra.mrb[12].mxu1 %vm8442_vm4, %v8655_v4 }
 0x164   : > { %1564 = vmatprep.mubr.bf16.mxu0 %v8836_v5  ;;  %7051 = vmatprep.mubr.msk.bf16.mxu1 %vm8442_vm4, %v8665_v18 }
 0x16b   : > { %5647 = vmatmul.mubr.msk.bf16.gmra.mrb[96].mxu0 %vm8504_vm6, %v8859_v46  ;;  %7052 = vmatmul.mubr.msk.bf16.gmra.mrb[16].mxu1 %vm8442_vm4, %v8722_v6 }
 0x16c   : > { %1572 = vmatprep.mubr.bf16.mxu0 %v8865_v25  ;;  %7055 = vmatprep.mubr.msk.bf16.mxu1 %vm8442_vm4, %v8730_v1 }
 0x173   : > { %5650 = vmatmul.mubr.msk.bf16.gmra.mrb[100].mxu0 %vm8504_vm6, %v8890_v44  ;;  %7056 = vmatmul.mubr.msk.bf16.gmra.mrb[20].mxu1 %vm8442_vm4, %v8766_v22  ;;  %v10634_v22 = vmov 0  }
 0x174   : > { %1580 = vmatprep.mubr.bf16.mxu0 %v8896_v54  ;;  %7059 = vmatprep.mubr.msk.bf16.mxu1 %vm8442_vm4, %v8772_v40 }
 0x17b   : > { %5653 = vmatmul.mubr.msk.bf16.gmra.mrb[104].mxu0 %vm8504_vm6, %v8920_v62  ;;  %7060 = vmatmul.mubr.msk.bf16.gmra.mrb[24].mxu1 %vm8442_vm4, %v8798_v34 }
 0x17c   : > { %1588 = vmatprep.mubr.bf16.mxu0 %v8926_v36  ;;  %7063 = vmatprep.mubr.msk.bf16.mxu1 %vm8442_vm4, %v10629_v50 }
 0x17e   : > { %v6099_v10 = vpop.f32.mrb[0].mxu0 }
 0x17f   : > { %v6100_v15 = vpop.f32.mrb[1].mxu0 }
 0x180   : > { %v9097_v39 = vadd.f32 %v6100_v15, %v6099_v10  ;;  %v6102_v45 = vpop.f32.mrb[2].mxu0 }
 0x181   : > { %v6103_v40 = vpop.f32.mrb[3].mxu0 }
 0x182   : > { %v9099_v20 = vadd.f32 %v6103_v40, %v6102_v45 }
 0x183   : > { %5656 = vmatmul.mubr.msk.bf16.gmra.mrb[108].mxu0 %vm8504_vm6, %v8945_v17  ;;  %7064 = vmatmul.mubr.bf16.gmra.mrb[28].mxu1 %v10634_v22 }
 0x184   : > { %2160 = vmatprep.mubr.bf16.mxu0 %v8498_v11  ;;  %7083 = vmatprep.mubr.bf16.mxu1 %v10634_v22 }
 0x186   : > { %v6105_v23 = vpop.f32.mrb[4].mxu0 }
 0x187   : > { %v6106_v1 = vpop.f32.mrb[5].mxu0 }
 0x188   : > { %v9107_v4 = vadd.f32 %v6106_v1, %v6105_v23  ;;  %v6108_v18 = vpop.f32.mrb[6].mxu0 }
 0x189   : > { %v6109_v6 = vpop.f32.mrb[7].mxu0 }
 0x18a   : > { %v9109_v34 = vadd.f32 %v6109_v6, %v6108_v18 }
 0x18b   : > { %5719 = vmatmul.mubr.msk.bf16.vlgmr.msra.gmra.mrb[112].mxu0 %vm8504_vm6, %v8549_v38 }
 0x18c   : > { %2168 = vmatprep.mubr.bf16.mxu0 %v10625_v9 }
 0x18e   : > { %v6111_v8 = vpop.f32.mrb[8].mxu0 }
 0x18f   : > { %v6112_v53 = vpop.f32.mrb[9].mxu0 }
 0x190   : > { %v9115_v63 = vadd.f32 %v6112_v53, %v6111_v8  ;;  %v6114_v32 = vpop.f32.mrb[10].mxu0 }
 0x191   : > { %v6115_v47 = vpop.f32.mrb[11].mxu0 }
 0x192   : > { %v9117_v29 = vadd.f32 %v6115_v47, %v6114_v32 }
 0x193   : > { %5722 = vmatmul.mubr.msk.bf16.gmra.mrb[116].mxu0 %vm8504_vm6, %v10626_v58 }
 0x194   : > { %2176 = vmatprep.mubr.bf16.mxu0 %v10627_v41 }
 0x196   : > { %v6117_v35 = vpop.f32.mrb[12].mxu0 }
 0x197   : > { %v6118_v12 = vpop.f32.mrb[13].mxu0 }
 0x198   : > { %v9123_v28 = vadd.f32 %v6118_v12, %v6117_v35  ;;  %v6120_v38 = vpop.f32.mrb[14].mxu0 }
 0x199   : > { %v6121_v13 = vpop.f32.mrb[15].mxu0 }
 0x19a   : > { %v9125_v0 = vadd.f32 %v6121_v13, %v6120_v38 }
 0x19b   : > { %5725 = vmatmul.mubr.msk.bf16.gmra.mrb[120].mxu0 %vm8504_vm6, %v10628_v2 }
 0x19c   : > { %2184 = vmatprep.mubr.bf16.mxu0 %v10630_v55 }
 0x19e   : > { %v6123_v42 = vpop.f32.mrb[16].mxu0 }
 0x19f   : > { %v6124_v59 = vpop.f32.mrb[17].mxu0 }
 0x1a0   : > { %v9131_v43 = vadd.f32 %v6124_v59, %v6123_v42  ;;  %v6126_v58 = vpop.f32.mrb[18].mxu0 }
 0x1a1   : > { %v6127_v48 = vpop.f32.mrb[19].mxu0 }
 0x1a2   : > { %v9133_v50 = vadd.f32 %v6127_v48, %v6126_v58 }
 0x1a3   : > { %5728 = vmatmul.mubr.msk.bf16.gmra.mrb[124].mxu0 %vm8504_vm6, %v10631_v60 }
 0x1a4   : > { %2192 = vmatprep.mubr.bf16.mxu0 %v10632_v3 }
 0x1a6   : > { %v6129_v30 = vpop.f32.mrb[20].mxu0 }
 0x1a7   : > { %v6130_v10 = vpop.f32.mrb[21].mxu0 }
 0x1a8   : > { %v9139_v15 = vadd.f32 %v6130_v10, %v6129_v30  ;;  %v6132_v2 = vpop.f32.mrb[22].mxu0 }
 0x1a9   : > { %v6133_v45 = vpop.f32.mrb[23].mxu0 }
 0x1aa   : > { %v9141_v40 = vadd.f32 %v6133_v45, %v6132_v2 }
 0x1ab   : > { %5731 = vmatmul.mubr.msk.bf16.gmra.mrb[128].mxu0 %vm8504_vm6, %v8764_v57 }
 0x1ac   : > { %2200 = vmatprep.mubr.bf16.mxu0 %v8770_v19 }
 0x1ae   : > { %v6135_v23 = vpop.f32.mrb[24].mxu0 }
 0x1af   : > { %v6136_v1 = vpop.f32.mrb[25].mxu0 }
 0x1b0   : > { %v9147_v18 = vadd.f32 %v6136_v1, %v6135_v23  ;;  %v6138_v60 = vpop.f32.mrb[26].mxu0 }
 0x1b1   : > { %v6139_v6 = vpop.f32.mrb[27].mxu0 }
 0x1b2   : > { %v9149_v8 = vadd.f32 %v6139_v6, %v6138_v60 }
 0x1b3   : > { %5734 = vmatmul.mubr.msk.bf16.gmra.mrb[132].mxu0 %vm8504_vm6, %v8796_v7 }
 0x1b4   : > { %2208 = vmatprep.mubr.bf16.mxu0 %v10633_v56 }
 0x1b6   : > { %v6141_v53 = vpop.f32.mrb[28].mxu0 }
 0x1b7   : > { %v6142_v32 = vpop.f32.mrb[29].mxu0 }
 0x1b8   : > { %v9155_v47 = vadd.f32 %v6142_v32, %v6141_v53  ;;  %v6144_v57 = vpop.f32.mrb[30].mxu0 }
 0x1b9   : > { %v6145_v35 = vpop.f32.mrb[31].mxu0 }
 0x1ba   : > { %v9157_v12 = vadd.f32 %v6145_v35, %v6144_v57 }
 0x1bb   : > { %5737 = vmatmul.mubr.msk.bf16.gmra.mrb[136].mxu0 %vm8504_vm6, %v8830_v24 }
 0x1bc   : > { %2216 = vmatprep.mubr.bf16.mxu0 %v8836_v5 }
 0x1be   : > { %v6147_v38 = vpop.f32.mrb[32].mxu0  ;;  %v6307_v13 = vpop.f32.mrb[32].mxu1 }
 0x1bf   : > { %v6148_v42 = vpop.f32.mrb[33].mxu0  ;;  %v6308_v7 = vpop.f32.mrb[33].mxu1 }
 0x1c0   : > { %v9163_v59 = vadd.f32 %v6148_v42, %v6147_v38  ;;  %v6150_v58 = vpop.f32.mrb[34].mxu0  ;;  %v9165_v48 = vadd.f32 %v6308_v7, %v6307_v13  ;;  %v6310_v30 = vpop.f32.mrb[34].mxu1 }
 0x1c1   : > { %v6151_v10 = vpop.f32.mrb[35].mxu0  ;;  %v6311_v2 = vpop.f32.mrb[35].mxu1 }
 0x1c2   : > { %v9167_v45 = vadd.f32 %v6151_v10, %v6150_v58  ;;  %v9169_v23 = vadd.f32 %v6311_v2, %v6310_v30  ;;  %v7849_v58 = vld [vmem:[#allocation10] sm:$0xff]  }
 0x1c3   : > { %5740 = vmatmul.mubr.msk.bf16.gmra.mrb[140].mxu0 %vm8504_vm6, %v8859_v46  ;;  %v7848_v46 = vld [vmem:[#allocation10 + $0x40] sm:$0xff]  }
 0x1c4   : > { %2224 = vmatprep.mubr.bf16.mxu0 %v8865_v25  ;;  %6491 = vmatprep.subr.bf16.mxu0 %v7848_v46  ;;  %v7852_v46 = vld [vmem:[#allocation10 + $0x50] sm:$0xff]  }
 0x1c5   : > { %6492 = vmatpush3.bf16.msra.mxu0 %v7849_v58  ;;  %v7853_v58 = vld [vmem:[#allocation10 + $0x10] sm:$0xff]  }
 0x1c6   : > { %v6153_v24 = vpop.f32.mrb[36].mxu0  ;;  %v6313_v1 = vpop.f32.mrb[36].mxu1 }
 0x1c7   : > { %v6154_v60 = vpop.f32.mrb[37].mxu0  ;;  %v6314_v6 = vpop.f32.mrb[37].mxu1 }
 0x1c8   : > { %v9175_v53 = vadd.f32 %v6154_v60, %v6153_v24  ;;  %v6156_v32 = vpop.f32.mrb[38].mxu0  ;;  %v9177_v57 = vadd.f32 %v6314_v6, %v6313_v1  ;;  %v6316_v35 = vpop.f32.mrb[38].mxu1  ;;  %v7850_v1 = vld [vmem:[#allocation10 + $0x48] sm:$0xff]  }
 0x1c9   : > { %v6157_v38 = vpop.f32.mrb[39].mxu0  ;;  %v6317_v13 = vpop.f32.mrb[39].mxu1  ;;  %6493 = vmatprep.subr.bf16.mxu0 %v7850_v1 }
 0x1ca   : > { %v9179_v42 = vadd.f32 %v6157_v38, %v6156_v32  ;;  %v9181_v7 = vadd.f32 %v6317_v13, %v6316_v35  ;;  %v7851_v38 = vld [vmem:[#allocation10 + $0x8] sm:$0xff]  }
 0x1cb   : > { %5743 = vmatmul.mubr.msk.bf16.gmra.mrb[144].mxu0 %vm8504_vm6, %v8890_v44 }
 0x1cc   : > { %2232 = vmatprep.mubr.bf16.mxu0 %v8896_v54  ;;  %6494 = vmatpush3.bf16.msra.mxu0 %v7851_v38 }
 0x1cd   : > { %6495 = vmatprep.subr.bf16.mxu0 %v7852_v46  ;;  %v7857_v46 = vld [vmem:[#allocation10 + $0x88] sm:$0xff]  }
 0x1ce   : > { %v6159_v30 = vpop.f32.mrb[40].mxu0  ;;  %v6319_v10 = vpop.f32.mrb[40].mxu1 }
 0x1cf   : > { %v6160_v2 = vpop.f32.mrb[41].mxu0  ;;  %v6320_v24 = vpop.f32.mrb[41].mxu1 }
 0x1d0   : > { %v9187_v60 = vadd.f32 %v6160_v2, %v6159_v30  ;;  %v6162_v6 = vpop.f32.mrb[42].mxu0  ;;  %v9189_v32 = vadd.f32 %v6320_v24, %v6319_v10  ;;  %v6322_v35 = vpop.f32.mrb[42].mxu1  ;;  %v7854_v30 = vld [vmem:[#allocation10 + $0x80] sm:$0xff]   ;;  %6496 = vmatpush3.bf16.msra.mxu0 %v7853_v58 }
 0x1d1   : > { %v6163_v13 = vpop.f32.mrb[43].mxu0  ;;  %v6323_v44 = vpop.f32.mrb[43].mxu1  ;;  %7067 = vmatprep.subr.bf16.mxu1 %v7854_v30  ;;  %v7858_v58 = vld [vmem:[#allocation10 + $0x60] sm:$0xff]  }
 0x1d2   : > { %v9191_v25 = vadd.f32 %v6163_v13, %v6162_v6  ;;  %v9193_v54 = vadd.f32 %v6323_v44, %v6322_v35  ;;  %v7855_v6 = vld [vmem:[#allocation10 + $0x58] sm:$0xff]   ;;  %7068 = vmatpush3.bf16.msra.mxu1 %v7854_v30  ;;  %v7859_v30 = vld [vmem:[#allocation10 + $0x20] sm:$0xff]  }
 0x1d3   : > { %5746 = vmatmul.mubr.msk.bf16.gmra.mrb[148].mxu0 %vm8504_vm6, %v8920_v62  ;;  %v7856_v62 = vld [vmem:[#allocation10 + $0x18] sm:$0xff]   ;;  %6497 = vmatprep.subr.bf16.mxu0 %v7855_v6  ;;  %v7862_v6 = vld [vmem:[#allocation10 + $0x28] sm:$0xff]  }
 0x1d4   : > { %2240 = vmatprep.mubr.bf16.mxu0 %v8926_v36  ;;  %6498 = vmatpush3.bf16.msra.mxu0 %v7856_v62 }
 0x1d5   : > { %7069 = vmatprep.subr.bf16.mxu1 %v7857_v46  ;;  %6499 = vmatprep.subr.bf16.mxu0 %v7858_v58 }
 0x1d6   : > { %v6165_v10 = vpop.f32.mrb[44].mxu0  ;;  %v6325_v2 = vpop.f32.mrb[44].mxu1  ;;  %7070 = vmatpush3.bf16.msra.mxu1 %v7857_v46  ;;  %v7864_v46 = vld [vmem:[#allocation10 + $0x70] sm:$0xff]  }
 0x1d7   : > { %v6166_v24 = vpop.f32.mrb[45].mxu0  ;;  %v6326_v1 = vpop.f32.mrb[45].mxu1 }
 0x1d8   : > { %v9199_v35 = vadd.f32 %v6166_v24, %v6165_v10  ;;  %v6168_v38 = vpop.f32.mrb[46].mxu0  ;;  %v9201_v13 = vadd.f32 %v6326_v1, %v6325_v2  ;;  %v6328_v44 = vpop.f32.mrb[46].mxu1  ;;  %v7860_v10 = vld [vmem:[#allocation10 + $0x90] sm:$0xff]   ;;  %6500 = vmatpush3.bf16.msra.mxu0 %v7859_v30 }
 0x1d9   : > { %v6169_v5 = vpop.f32.mrb[47].mxu0  ;;  %v6329_v36 = vpop.f32.mrb[47].mxu1  ;;  %7071 = vmatprep.subr.bf16.mxu1 %v7860_v10  ;;  %v7865_v30 = vld [vmem:[#allocation10 + $0x30] sm:$0xff]  }
 0x1da   : > { %v9203_v56 = vadd.f32 %v6169_v5, %v6168_v38  ;;  %v9205_v19 = vadd.f32 %v6329_v36, %v6328_v44  ;;  %v7861_v5 = vld [vmem:[#allocation10 + $0x68] sm:$0xff]   ;;  %7072 = vmatpush3.bf16.msra.mxu1 %v7860_v10  ;;  %v7866_v10 = vld [vmem:[#allocation10 + $0xa0] sm:$0xff]  }
 0x1db   : > { %5749 = vmatmul.mubr.msk.bf16.gmra.mrb[152].mxu0 %vm8504_vm6, %v8945_v17  ;;  %6501 = vmatprep.subr.bf16.mxu0 %v7861_v5  ;;  %v7863_v17 = vld [vmem:[#allocation10 + $0x98] sm:$0xff]  }
 0x1dc   : > { %2248 = vmatprep.mubr.bf16.mxu0 %v8806_v31  ;;  %6502 = vmatpush3.bf16.msra.mxu0 %v7862_v6 }
 0x1dd   : > { %7073 = vmatprep.subr.bf16.mxu1 %v7863_v17  ;;  %6503 = vmatprep.subr.bf16.mxu0 %v7864_v46  ;;  %v7870_v46 = vld [vmem:[#allocation10 + $0xb0] sm:$0xff]  }
 0x1de   : > { %v6171_v2 = vpop.f32.mrb[48].mxu0  ;;  %7074 = vmatpush3.bf16.msra.mxu1 %v7863_v17 }
 0x1df   : > { %v6172_v24 = vpop.f32.mrb[49].mxu0  ;;  %7075 = vmatprep.subr.bf16.mxu1 %v7866_v10 }
 0x1e0   : > { %v6173_v36 = vadd.f32 %v6172_v24, %v6171_v2  ;;  %v6174_v1 = vpop.f32.mrb[50].mxu0  ;;  %6504 = vmatpush3.bf16.msra.mxu0 %v7865_v30 }
 0x1e1   : > { %v6175_v38 = vpop.f32.mrb[51].mxu0 }
 0x1e2   : > { %v9212_v44 = vadd.f32 %v9165_v48, %v6173_v36  ;;  %v6176_v62 = vadd.f32 %v6175_v38, %v6174_v1  ;;  %7076 = vmatpush3.bf16.msra.mxu1 %v7866_v10  ;;  %v7867_v36 = vld [vmem:[#allocation10 + $0x78] sm:$0xff]   ;;  %v7869_v38 = vld [vmem:[#allocation10 + $0xa8] sm:$0xff]  }
 0x1e3   : > { %5752 = vmatmul.mubr.msk.bf16.gmra.mrb[156].mxu0 %vm8504_vm6, %v8832_v26  ;;  %v7868_v1 = vld [vmem:[#allocation10 + $0x38] sm:$0xff]   ;;  %6505 = vmatprep.subr.bf16.mxu0 %v7867_v36 }
 0x1e4   : > { %10635 = vst [vmem:[#allocation22_spill] sm:$0xff] %v9212_v44  ;;  %v9218_v58 = vadd.f32 %v9169_v23, %v6176_v62  ;;  %2256 = vmatprep.mubr.bf16.mxu0 %v8840_v27  ;;  %6506 = vmatpush3.bf16.msra.mxu0 %v7868_v1 }
 0x1e5   : > { %7077 = vmatprep.subr.bf16.mxu1 %v7869_v38 }
 0x1e6   : > { %10636 = vst [vmem:[#allocation24_spill] sm:$0xff] %v9218_v58  ;;  %v6177_v2 = vpop.f32.mrb[52].mxu0  ;;  %7078 = vmatpush3.bf16.msra.mxu1 %v7869_v38 }
 0x1e7   : > { %v6178_v48 = vpop.f32.mrb[53].mxu0  ;;  %7079 = vmatprep.subr.bf16.mxu1 %v7870_v46 }
 0x1e8   : > { %v6179_v24 = vadd.f32 %v6178_v48, %v6177_v2  ;;  %v6180_v5 = vpop.f32.mrb[54].mxu0 }
 0x1e9   : > { %v6181_v26 = vpop.f32.mrb[55].mxu0 }
 0x1ea   : > { %v9222_v6 = vadd.f32 %v9177_v57, %v6179_v24  ;;  %v6182_v23 = vadd.f32 %v6181_v26, %v6180_v5  ;;  %7080 = vmatpush3.bf16.msra.mxu1 %v7870_v46 }
 0x1eb   : > { %5755 = vmatmul.mubr.msk.bf16.gmra.mrb[160].mxu0 %vm8504_vm6, %v8861_v16  ;;  %v7871_v16 = vld [vmem:[#allocation10 + $0xb8] sm:$0xff]  }
 0x1ec   : > { %10637 = vst [vmem:[#allocation26_spill] sm:$0xff] %v9222_v6  ;;  %v9228_v17 = vadd.f32 %v9181_v7, %v6182_v23  ;;  %2264 = vmatprep.mubr.bf16.mxu0 %v8869_v61  ;;  %7081 = vmatprep.subr.bf16.mxu1 %v7871_v16 }
 0x1ee   : > { %10638 = vst [vmem:[#allocation27_spill] sm:$0xff] %v9228_v17  ;;  %v6183_v62 = vpop.f32.mrb[56].mxu0  ;;  %7082 = vmatpush3.bf16.msra.mxu1 %v7871_v16 }
 0x1ef   : > { %v6184_v30 = vpop.f32.mrb[57].mxu0 }
 0x1f0   : > { %v6185_v57 = vadd.f32 %v6184_v30, %v6183_v62  ;;  %v6186_v10 = vpop.f32.mrb[58].mxu0 }
 0x1f1   : > { %v6187_v2 = vpop.f32.mrb[59].mxu0 }
 0x1f2   : > { %v9232_v48 = vadd.f32 %v9189_v32, %v6185_v57  ;;  %v6188_v24 = vadd.f32 %v6187_v2, %v6186_v10 }
 0x1f3   : > { %5758 = vmatmul.mubr.msk.bf16.gmra.mrb[164].mxu0 %vm8504_vm6, %v8892_v49 }
 0x1f4   : > { %10639 = vst [vmem:[#allocation39_spill] sm:$0xff] %v9232_v48  ;;  %v9238_v7 = vadd.f32 %v9193_v54, %v6188_v24  ;;  %2272 = vmatprep.mubr.bf16.mxu0 %v8900_v37 }
 0x1f6   : > { %10640 = vst [vmem:[#allocation40_spill] sm:$0xff] %v9238_v7  ;;  %v6189_v5 = vpop.f32.mrb[60].mxu0 }
 0x1f7   : > { %v6190_v36 = vpop.f32.mrb[61].mxu0 }
 0x1f8   : > { %v6191_v26 = vadd.f32 %v6190_v36, %v6189_v5  ;;  %v6192_v1 = vpop.f32.mrb[62].mxu0 }
 0x1f9   : > { %v6193_v32 = vpop.f32.mrb[63].mxu0 }
 0x1fa   : > { %v9242_v23 = vadd.f32 %v9201_v13, %v6191_v26  ;;  %v6194_v38 = vadd.f32 %v6193_v32, %v6192_v1 }
 0x1fb   : > { %5761 = vmatmul.mubr.msk.bf16.gmra.mrb[168].mxu0 %vm8504_vm6, %v8922_v33 }
 0x1fc   : > { %10641 = vst [vmem:[#allocation41_spill] sm:$0xff] %v9242_v23  ;;  %v9248_v49 = vadd.f32 %v9205_v19, %v6194_v38  ;;  %2280 = vmatprep.mubr.bf16.mxu0 %v10634_v22 }
 0x1fe   : > { %10642 = vst [vmem:[#allocation42_spill] sm:$0xff] %v9248_v49  ;;  %v6235_v54 = vpop.f32.mrb[64].mxu0 }
 0x1ff   : > { %v6236_v62 = vpop.f32.mrb[65].mxu0 }
 0x200   : > { %v6237_v46 = vadd.f32 %v6236_v62, %v6235_v54  ;;  %v6238_v30 = vpop.f32.mrb[66].mxu0 }
 0x201   : > { %v6239_v57 = vpop.f32.mrb[67].mxu0 }
 0x202   : > { %v9252_v10 = vadd.f32 %v6237_v46, %v9097_v39  ;;  %v6240_v13 = vadd.f32 %v6239_v57, %v6238_v30 }
 0x203   : > { %2281 = vmatmul.mubr.bf16.gmra.mrb[172].mxu0 %v10634_v22 }
 0x204   : > { %v9256_v2 = vadd.f32 %v6240_v13, %v9099_v20  ;;  %3207 = vmatprep.mubr.bf16.mxu0 %v10634_v22 }
 0x206   : > { %v6241_v19 = vpop.f32.mrb[68].mxu0 }
 0x207   : > { %v6242_v33 = vpop.f32.mrb[69].mxu0 }
 0x208   : > { %v6243_v24 = vadd.f32 %v6242_v33, %v6241_v19  ;;  %v6244_v16 = vpop.f32.mrb[70].mxu0 }
 0x209   : > { %v6245_v5 = vpop.f32.mrb[71].mxu0 }
 0x20a   : > { %v9260_v36 = vadd.f32 %v6243_v24, %v9107_v4  ;;  %v6246_v26 = vadd.f32 %v6245_v5, %v6244_v16 }
 0x20b   : > { %3208 = vmatmul.mubr.bf16.vlgmr.msra.gmra.mrb[176].mxu0 %v10634_v22 }
 0x20c   : > { %v9264_v39 = vadd.f32 %v6246_v26, %v9109_v34 }
 0x20e   : > { %v6247_v1 = vpop.f32.mrb[72].mxu0 }
 0x20f   : > { %v6248_v32 = vpop.f32.mrb[73].mxu0 }
 0x210   : > { %v6249_v20 = vadd.f32 %v6248_v32, %v6247_v1  ;;  %v6250_v38 = vpop.f32.mrb[74].mxu0 }
 0x211   : > { %v6251_v54 = vpop.f32.mrb[75].mxu0 }
 0x212   : > { %v9267_v62 = vadd.f32 %v6249_v20, %v9115_v63  ;;  %v6252_v46 = vadd.f32 %v6251_v54, %v6250_v38 }
 0x214   : > { %v9270_v30 = vadd.f32 %v6252_v46, %v9117_v29 }
 0x216   : > { %v6253_v4 = vpop.f32.mrb[76].mxu0 }
 0x217   : > { %v6254_v57 = vpop.f32.mrb[77].mxu0 }
 0x218   : > { %v6255_v13 = vadd.f32 %v6254_v57, %v6253_v4  ;;  %v6256_v19 = vpop.f32.mrb[78].mxu0 }
 0x219   : > { %v6257_v33 = vpop.f32.mrb[79].mxu0 }
 0x21a   : > { %v9273_v34 = vadd.f32 %v6255_v13, %v9123_v28  ;;  %v6258_v24 = vadd.f32 %v6257_v33, %v6256_v19 }
 0x21c   : > { %v9276_v16 = vadd.f32 %v6258_v24, %v9125_v0 }
 0x21e   : > { %v6259_v5 = vpop.f32.mrb[80].mxu0  ;;  %v9278_v26 = vpop.f32.mrb[0].mxu1 }
 0x21f   : > { %v6260_v63 = vpop.f32.mrb[81].mxu0  ;;  %v9280_v1 = vpop.f32.mrb[1].mxu1 }
 0x220   : > { %v6261_v29 = vadd.f32 %v6260_v63, %v6259_v5  ;;  %v6262_v32 = vpop.f32.mrb[82].mxu0  ;;  %v9282_v20 = vpop.f32.mrb[2].mxu1 }
 0x221   : > { %v6263_v38 = vpop.f32.mrb[83].mxu0  ;;  %v9284_v54 = vpop.f32.mrb[3].mxu1 }
 0x222   : > { %v9287_v28 = vadd.f32 %v6261_v29, %v9131_v43  ;;  %v6264_v46 = vadd.f32 %v6263_v38, %v6262_v32 }
 0x224   : > { %v9290_v0 = vadd.f32 %v6264_v46, %v9133_v50 }
 0x226   : > { %v6265_v4 = vpop.f32.mrb[84].mxu0  ;;  %v9292_v57 = vpop.f32.mrb[4].mxu1 }
 0x227   : > { %v6266_v13 = vpop.f32.mrb[85].mxu0  ;;  %v9294_v19 = vpop.f32.mrb[5].mxu1 }
 0x228   : > { %v6267_v33 = vadd.f32 %v6266_v13, %v6265_v4  ;;  %v6268_v24 = vpop.f32.mrb[86].mxu0  ;;  %v9296_v5 = vpop.f32.mrb[6].mxu1 }
 0x229   : > { %v6269_v63 = vpop.f32.mrb[87].mxu0  ;;  %v9298_v37 = vpop.f32.mrb[7].mxu1 }
 0x22a   : > { %v9301_v43 = vadd.f32 %v6267_v33, %v9139_v15  ;;  %v6270_v29 = vadd.f32 %v6269_v63, %v6268_v24 }
 0x22c   : > { %v9304_v50 = vadd.f32 %v6270_v29, %v9141_v40 }
 0x22e   : > { %v6271_v32 = vpop.f32.mrb[88].mxu0  ;;  %v9306_v38 = vpop.f32.mrb[8].mxu1 }
 0x22f   : > { %v6272_v46 = vpop.f32.mrb[89].mxu0  ;;  %v9308_v61 = vpop.f32.mrb[9].mxu1 }
 0x230   : > { %v6273_v4 = vadd.f32 %v6272_v46, %v6271_v32  ;;  %v6274_v13 = vpop.f32.mrb[90].mxu0  ;;  %v9310_v27 = vpop.f32.mrb[10].mxu1 }
 0x231   : > { %v6275_v31 = vpop.f32.mrb[91].mxu0  ;;  %v9312_v3 = vpop.f32.mrb[11].mxu1 }
 0x232   : > { %v9315_v15 = vadd.f32 %v6273_v4, %v9147_v18  ;;  %v6276_v33 = vadd.f32 %v6275_v31, %v6274_v13  ;;  %v9331_v4 = vld [vmem:[#allocation10 + $0x140] sm:$0xff]  }
 0x233   : > { %7115 = vmatprep.subr.bf16.mxu1 %v9331_v4 }
 0x234   : > { %v9318_v40 = vadd.f32 %v6276_v33, %v9149_v8 }
 0x236   : > { %v6277_v24 = vpop.f32.mrb[92].mxu0  ;;  %v9320_v63 = vpop.f32.mrb[12].mxu1 }
 0x237   : > { %v6278_v29 = vpop.f32.mrb[93].mxu0  ;;  %v9322_v55 = vpop.f32.mrb[13].mxu1 }
 0x238   : > { %v6279_v32 = vadd.f32 %v6278_v29, %v6277_v24  ;;  %v6280_v46 = vpop.f32.mrb[94].mxu0  ;;  %v9324_v41 = vpop.f32.mrb[14].mxu1 }
 0x239   : > { %v6281_v9 = vpop.f32.mrb[95].mxu0  ;;  %v9326_v11 = vpop.f32.mrb[15].mxu1 }
 0x23a   : > { %v9329_v18 = vadd.f32 %v6279_v32, %v9155_v47  ;;  %v6282_v31 = vadd.f32 %v6281_v9, %v6280_v46 }
 0x23c   : > { %v9334_v8 = vadd.f32 %v6282_v31, %v9157_v12 }
 0x23e   : > { %v6283_v13 = vpop.f32.mrb[96].mxu0  ;;  %v9337_v33 = vpop.f32.mrb[16].mxu1 }
 0x23f   : > { %v6284_v24 = vpop.f32.mrb[97].mxu0  ;;  %v9339_v29 = vpop.f32.mrb[17].mxu1 }
 0x240   : > { %v6285_v52 = vadd.f32 %v6284_v24, %v6283_v13  ;;  %v6286_v22 = vpop.f32.mrb[98].mxu0  ;;  %v9341_v14 = vpop.f32.mrb[18].mxu1 }
 0x241   : > { %v6287_v47 = vpop.f32.mrb[99].mxu0  ;;  %v9343_v32 = vpop.f32.mrb[19].mxu1 }
 0x242   : > { %v9346_v9 = vadd.f32 %v6285_v52, %v9163_v59  ;;  %v6288_v12 = vadd.f32 %v6287_v47, %v6286_v22 }
 0x244   : > { %v9349_v46 = vadd.f32 %v6288_v12, %v9167_v45 }
 0x246   : > { %v6289_v31 = vpop.f32.mrb[100].mxu0  ;;  %v9351_v49 = vpop.f32.mrb[20].mxu1 }
 0x247   : > { %10643 = vst [vmem:[#allocation43_spill] sm:$0xff] %v9351_v49  ;;  %v6290_v23 = vpop.f32.mrb[101].mxu0  ;;  %v9353_v7 = vpop.f32.mrb[21].mxu1 }
 0x248   : > { %v6291_v13 = vadd.f32 %v6290_v23, %v6289_v31  ;;  %v6292_v24 = vpop.f32.mrb[102].mxu0  ;;  %v9355_v48 = vpop.f32.mrb[22].mxu1 }
 0x249   : > { %10644 = vst [vmem:[#allocation44_spill] sm:$0xff] %v9355_v48  ;;  %v6293_v17 = vpop.f32.mrb[103].mxu0  ;;  %v9357_v6 = vpop.f32.mrb[23].mxu1 }
 0x24a   : > { %10645 = vst [vmem:[#allocation45_spill] sm:$0xff] %v9357_v6  ;;  %v9360_v52 = vadd.f32 %v6291_v13, %v9175_v53  ;;  %v6294_v22 = vadd.f32 %v6293_v17, %v6292_v24 }
 0x24c   : > { %v9363_v59 = vadd.f32 %v6294_v22, %v9179_v42 }
 0x24e   : > { %v6295_v45 = vpop.f32.mrb[104].mxu0  ;;  %v9365_v47 = vpop.f32.mrb[24].mxu1 }
 0x24f   : > { %10646 = vst [vmem:[#allocation46_spill] sm:$0xff] %v9365_v47  ;;  %v6296_v12 = vpop.f32.mrb[105].mxu0  ;;  %v9367_v58 = vpop.f32.mrb[25].mxu1 }
 0x250   : > { %10647 = vst [vmem:[#allocation47_spill] sm:$0xff] %v9367_v58  ;;  %v6297_v23 = vadd.f32 %v6296_v12, %v6295_v45  ;;  %v6298_v31 = vpop.f32.mrb[106].mxu0  ;;  %v9369_v44 = vpop.f32.mrb[26].mxu1 }
 0x251   : > { %10648 = vst [vmem:[#allocation48_spill] sm:$0xff] %v9369_v44  ;;  %v6299_v48 = vpop.f32.mrb[107].mxu0  ;;  %v9371_v49 = vpop.f32.mrb[27].mxu1 }
 0x252   : > { %10649 = vst [vmem:[#allocation49_spill] sm:$0xff] %v9371_v49  ;;  %v9374_v53 = vadd.f32 %v6297_v23, %v9187_v60  ;;  %v6300_v17 = vadd.f32 %v6299_v48, %v6298_v31  ;;  %v2580_v31 = vsub.s32 0, %v8386_v21 }
 0x254   : > { %v9377_v42 = vadd.f32 %v6300_v17, %v9191_v25  ;;  %v288_v17 = vld [vmem:[%s10529_s4] sm:$0x7] }
 0x256   : > { %v6301_v13 = vpop.f32.mrb[108].mxu0  ;;  %v9379_v24 = vpop.f32.mrb[28].mxu1 }
 0x257   : > { %10650 = vst [vmem:[#allocation50_spill] sm:$0xff] %v9379_v24  ;;  %v6302_v22 = vpop.f32.mrb[109].mxu0  ;;  %v9381_v47 = vpop.f32.mrb[29].mxu1 }
 0x258   : > { %10651 = vst [vmem:[#allocation51_spill] sm:$0xff] %v9381_v47  ;;  %v6303_v45 = vadd.f32 %v6302_v22, %v6301_v13  ;;  %v6304_v12 = vpop.f32.mrb[110].mxu0  ;;  %v9383_v58 = vpop.f32.mrb[30].mxu1  ;;  %v9398_v47 = vrot.slane %v288_v17, %v2580_v31 }
 0x259   : > { %10652 = vst [vmem:[#allocation52_spill] sm:$0xff] %v9383_v58  ;;  %v6305_v44 = vpop.f32.mrb[111].mxu0  ;;  %v9385_v6 = vpop.f32.mrb[31].mxu1 }
 0x25a   : > { %10653 = vst [vmem:[#allocation53_spill] sm:$0xff] %v9385_v6  ;;  %v9388_v60 = vadd.f32 %v6303_v45, %v9199_v35  ;;  %v6306_v48 = vadd.f32 %v6305_v44, %v6304_v12 }
 0x25c   : > { %10654 = vst [vmem:[#allocation54_spill] sm:$0xff] %v9388_v60  ;;  %v9391_v25 = vadd.f32 %v6306_v48, %v9203_v56 }
 0x25e   : > { %10655 = vst [vmem:[#allocation55_spill] sm:$0xff] %v9391_v25  ;;  %v6371_v23 = vpop.f32.mrb[112].mxu0 }
 0x25f   : > { %v6372_v13 = vpop.f32.mrb[113].mxu0 }
 0x260   : > { %v6373_v22 = vadd.f32 %v6372_v13, %v6371_v23  ;;  %v6374_v58 = vpop.f32.mrb[114].mxu0 }
 0x261   : > { %v6375_v24 = vpop.f32.mrb[115].mxu0 }
 0x262   : > { %v7279_v6 = vadd.f32 %v9252_v10, %v6373_v22  ;;  %v6376_v35 = vadd.f32 %v6375_v24, %v6374_v58 }
 0x264   : > { %v7280_v44 = vadd.f32 %v7279_v6, %v9280_v1  ;;  %v7285_v56 = vadd.f32 %v9256_v2, %v6376_v35 }
 0x266   : > { %v2582_v45 = vadd.f32 %v7280_v44, %v9398_v47  ;;  %v7286_v12 = vadd.f32 %v7285_v56, %v9284_v54  ;;  %v6377_v48 = vpop.f32.mrb[116].mxu0 }
 0x267   : > { %v6378_v49 = vpop.f32.mrb[117].mxu0 }
 0x268   : > { %v9404_v25 = vmax.f32 %v2582_v45, 0.0  ;;  %v2583_v23 = vadd.f32 %v7286_v12, %v9398_v47  ;;  %v6379_v13 = vadd.f32 %v6378_v49, %v6377_v48  ;;  %v6380_v60 = vpop.f32.mrb[118].mxu0 }
 0x269   : > { %v6381_v10 = vpop.f32.mrb[119].mxu0 }
 0x26a   : > { %v2615_v31 = vmax.f32 %v2583_v23, 0.0  ;;  %v7276_v58 = vadd.f32 %v9260_v36, %v6379_v13  ;;  %v6382_v24 = vadd.f32 %v6381_v10, %v6380_v60  ;;  %v10574_v6 = vrot.slane %v9404_v25, 7 }
 0x26c   : > { %v2647_v2 = vrot.slane %v2615_v31, 7  ;;  %v7277_v1 = vadd.f32 %v7276_v58, %v9278_v26  ;;  %v9411_v54 = vpack.c.bf16 %v2615_v31, %v9404_v25  ;;  %v7282_v17 = vadd.f32 %v9264_v39, %v6382_v24 }
 0x26d   : > { %v2743_v36 = vrot.slane %v2615_v31, 1  ;;  %v10573_v39 = vrot.slane %v9404_v25, 1 }
 0x26e   : > { %10656 = vst [vmem:[#allocation56_spill] sm:$0xff] %v9411_v54  ;;  %v2584_v22 = vadd.f32 %v7277_v1, %v9398_v47  ;;  %v6383_v35 = vpop.f32.mrb[120].mxu0  ;;  %3215 = vmatprep.mubr.bf16.mxu0 %v9411_v54  ;;  %v9420_v49 = vsel %vm372_vm2, %v10574_v6, %v2647_v2  ;;  %v7283_v60 = vadd.f32 %v7282_v17, %v9282_v20  ;;  %v10670_v54 = vld [vmem:[#allocation46_spill] sm:$0xff] }
 0x26f   : > { %v6384_v26 = vpop.f32.mrb[121].mxu0  ;;  %v2804_v31 = vsel %vm471_vm0, %v10573_v39, %v2743_v36 }
 0x270   : > { %v2616_v44 = vmax.f32 %v2584_v22, 0.0  ;;  %v6385_v56 = vadd.f32 %v6384_v26, %v6383_v35  ;;  %v6386_v45 = vpop.f32.mrb[122].mxu0  ;;  %v2585_v12 = vadd.f32 %v7283_v60, %v9398_v47  ;;  %v7873_v26 = vld [vmem:[#allocation10 + $0x148] sm:$0xff]  }
 0x271   : > { %v6387_v48 = vpop.f32.mrb[123].mxu0 }
 0x272   : > { %v2648_v23 = vrot.slane %v2616_v44, 7  ;;  %v2744_v13 = vrot.slane %v2616_v44, 1  ;;  %v7291_v10 = vadd.f32 %v9267_v62, %v6385_v56  ;;  %v6388_v58 = vadd.f32 %v6387_v48, %v6386_v45 }
 0x273   : > { %v2617_v20 = vmax.f32 %v2585_v12, 0.0 }
 0x274   : > { %v2803_v24 = vsel %vm471_vm0, %v2743_v36, %v2744_v13  ;;  %v7292_v1 = vadd.f32 %v7291_v10, %v9294_v19  ;;  %v7297_v17 = vadd.f32 %v9270_v30, %v6388_v58  ;;  %v2707_v22 = vsel %vm372_vm2, %v2647_v2, %v2648_v23 }
 0x275   : > { %v9436_v35 = vpack.c.bf16 %v2803_v24, %v2804_v31  ;;  %v2649_v62 = vrot.slane %v2617_v20, 7  ;;  %v2745_v60 = vrot.slane %v2617_v20, 1  ;;  %v9438_v56 = vpack.c.bf16 %v2617_v20, %v2616_v44  ;;  %v7874_v20 = vld [vmem:[#allocation10 + $0x150] sm:$0xff]  }
 0x276   : > { %v2586_v45 = vadd.f32 %v7292_v1, %v9398_v47  ;;  %v7298_v12 = vadd.f32 %v7297_v17, %v9298_v37  ;;  %v6389_v48 = vpop.f32.mrb[124].mxu0 }
 0x277   : > { %v6390_v36 = vpop.f32.mrb[125].mxu0  ;;  %7084 = vmatmul.mubr.msk.bf16.vlgmr.msra.gmra.mrb[48].mxu1 %vm8442_vm4, %v9436_v35  ;;  %v2802_v30 = vsel %vm471_vm0, %v2744_v13, %v2745_v60  ;;  %v2706_v19 = vsel %vm372_vm2, %v2648_v23, %v2649_v62 }
 0x278   : > { %v2618_v2 = vmax.f32 %v2586_v45, 0.0  ;;  %v2587_v44 = vadd.f32 %v7298_v12, %v9398_v47  ;;  %v6391_v10 = vadd.f32 %v6390_v36, %v6389_v48  ;;  %v6392_v58 = vpop.f32.mrb[126].mxu0  ;;  %7116 = vmatpush3.bf16.msra.mxu1 %v9331_v4  ;;  %v9451_v37 = vpack.c.bf16 %v2706_v19, %v2707_v22  ;;  %v7875_v48 = vld [vmem:[#allocation10 + $0x158] sm:$0xff]  }
 0x279   : > { %v6393_v31 = vpop.f32.mrb[127].mxu0  ;;  %7117 = vmatprep.subr.bf16.mxu1 %v7873_v26 }
 0x27a   : > { %v2650_v24 = vrot.slane %v2618_v2, 7  ;;  %v2746_v1 = vrot.slane %v2618_v2, 1  ;;  %v2619_v17 = vmax.f32 %v2587_v44, 0.0  ;;  %v7288_v13 = vadd.f32 %v9273_v34, %v6391_v10 }
 0x27b   : > { %v6394_v39 = vadd.f32 %v6393_v31, %v6392_v58  ;;  %v7876_v31 = vld [vmem:[#allocation10 + $0x160] sm:$0xff]  }
 0x27c   : > { %v2651_v6 = vrot.slane %v2619_v17, 7  ;;  %v2747_v23 = vrot.slane %v2619_v17, 1  ;;  %v7289_v45 = vadd.f32 %v7288_v13, %v9292_v57  ;;  %v2801_v12 = vsel %vm471_vm0, %v2745_v60, %v2746_v1  ;;  %7118 = vmatpush3.bf16.msra.mxu1 %v7873_v26 }
 0x27d   : > { %v7294_v4 = vadd.f32 %v9276_v16, %v6394_v39  ;;  %v9458_v22 = vpack.c.bf16 %v2801_v12, %v2802_v30  ;;  %7119 = vmatprep.subr.bf16.mxu1 %v7874_v20  ;;  %v9460_v36 = vpack.c.bf16 %v2619_v17, %v2618_v2  ;;  %v2705_v34 = vsel %vm372_vm2, %v2649_v62, %v2650_v24 }
 0x27e   : > { %v2588_v19 = vadd.f32 %v7289_v45, %v9398_v47  ;;  %v6395_v44 = vpop.f32.mrb[128].mxu0  ;;  %v2800_v57 = vsel %vm471_vm0, %v2746_v1, %v2747_v23  ;;  %v2704_v60 = vsel %vm372_vm2, %v2650_v24, %v2651_v6 }
 0x27f   : > { %v7295_v16 = vadd.f32 %v7294_v4, %v9296_v5  ;;  %v6396_v39 = vpop.f32.mrb[129].mxu0  ;;  %7087 = vmatprep.mubr.msk.bf16.mxu1 %vm8442_vm4, %v9458_v22  ;;  %v9473_v26 = vpack.c.bf16 %v2704_v60, %v2705_v34  ;;  %v7877_v60 = vld [vmem:[#allocation10 + $0x168] sm:$0xff]  }
 0x280   : > { %v2620_v30 = vmax.f32 %v2588_v19, 0.0  ;;  %v6397_v62 = vadd.f32 %v6396_v39, %v6395_v44  ;;  %v6398_v2 = vpop.f32.mrb[130].mxu0  ;;  %7120 = vmatpush3.bf16.msra.mxu1 %v7874_v20 }
 0x281   : > { %v2589_v10 = vadd.f32 %v7295_v16, %v9398_v47  ;;  %v6399_v58 = vpop.f32.mrb[131].mxu0  ;;  %7121 = vmatprep.subr.bf16.mxu1 %v7875_v48 }
 0x282   : > { %v2652_v1 = vrot.slane %v2620_v30, 7  ;;  %v2748_v24 = vrot.slane %v2620_v30, 1  ;;  %v7303_v5 = vadd.f32 %v9287_v28, %v6397_v62  ;;  %v6400_v17 = vadd.f32 %v6399_v58, %v6398_v2 }
 0x283   : > { %v2621_v13 = vmax.f32 %v2589_v10, 0.0  ;;  %v7878_v10 = vld [vmem:[#allocation10 + $0x170] sm:$0xff]  }
 0x284   : > { %v7304_v45 = vadd.f32 %v7303_v5, %v9308_v61  ;;  %v7309_v12 = vadd.f32 %v9290_v0, %v6400_v17  ;;  %v2799_v4 = vsel %vm471_vm0, %v2747_v23, %v2748_v24  ;;  %7122 = vmatpush3.bf16.msra.mxu1 %v7875_v48  ;;  %v2703_v20 = vsel %vm372_vm2, %v2651_v6, %v2652_v1 }
 0x285   : > { %v2653_v34 = vrot.slane %v2621_v13, 7  ;;  %v2749_v19 = vrot.slane %v2621_v13, 1  ;;  %v9483_v44 = vpack.c.bf16 %v2799_v4, %v2800_v57  ;;  %7123 = vmatprep.subr.bf16.mxu1 %v7876_v31  ;;  %v9485_v28 = vpack.c.bf16 %v2621_v13, %v2620_v30 }
 0x286   : > { %v2590_v16 = vadd.f32 %v7304_v45, %v9398_v47  ;;  %v7310_v61 = vadd.f32 %v7309_v12, %v9312_v3  ;;  %v6401_v0 = vpop.f32.mrb[132].mxu0 }
 0x287   : > { %v6402_v39 = vpop.f32.mrb[133].mxu0  ;;  %7088 = vmatmul.mubr.msk.bf16.gmra.mrb[52].mxu1 %vm8442_vm4, %v9483_v44  ;;  %v2798_v6 = vsel %vm471_vm0, %v2748_v24, %v2749_v19  ;;  %v2702_v23 = vsel %vm372_vm2, %v2652_v1, %v2653_v34 }
 0x288   : > { %v2622_v48 = vmax.f32 %v2590_v16, 0.0  ;;  %v2591_v57 = vadd.f32 %v7310_v61, %v9398_v47  ;;  %v6403_v30 = vadd.f32 %v6402_v39, %v6401_v0  ;;  %v6404_v62 = vpop.f32.mrb[134].mxu0  ;;  %7124 = vmatpush3.bf16.msra.mxu1 %v7876_v31  ;;  %v9497_v2 = vpack.c.bf16 %v2702_v23, %v2703_v20  ;;  %v7879_v16 = vld [vmem:[#allocation10 + $0x178] sm:$0xff]  }
 0x289   : > { %v6405_v3 = vpop.f32.mrb[135].mxu0  ;;  %7125 = vmatprep.subr.bf16.mxu1 %v7877_v60 }
 0x28a   : > { %v2654_v58 = vrot.slane %v2622_v48, 7  ;;  %v2750_v5 = vrot.slane %v2622_v48, 1  ;;  %v2623_v17 = vmax.f32 %v2591_v57, 0.0  ;;  %v7300_v13 = vadd.f32 %v9301_v43, %v6403_v30 }
 0x28b   : > { %v6406_v24 = vadd.f32 %v6405_v3, %v6404_v62  ;;  %v7880_v62 = vld [vmem:[#allocation10 + $0x1c0] sm:$0xff]  }
 0x28c   : > { %v2655_v45 = vrot.slane %v2623_v17, 7  ;;  %v2751_v12 = vrot.slane %v2623_v17, 1  ;;  %v7301_v1 = vadd.f32 %v7300_v13, %v9306_v38  ;;  %v2797_v4 = vsel %vm471_vm0, %v2749_v19, %v2750_v5  ;;  %7126 = vmatpush3.bf16.msra.mxu1 %v7877_v60 }
 0x28d   : > { %v7306_v31 = vadd.f32 %v9304_v50, %v6406_v24  ;;  %v9504_v20 = vpack.c.bf16 %v2797_v4, %v2798_v6  ;;  %7127 = vmatprep.subr.bf16.mxu1 %v7878_v10  ;;  %v9506_v61 = vpack.c.bf16 %v2623_v17, %v2622_v48  ;;  %v2701_v43 = vsel %vm372_vm2, %v2653_v34, %v2654_v58 }
 0x28e   : > { %v2592_v0 = vadd.f32 %v7301_v1, %v9398_v47  ;;  %v6407_v39 = vpop.f32.mrb[136].mxu0  ;;  %v2796_v38 = vsel %vm471_vm0, %v2750_v5, %v2751_v12  ;;  %v2700_v19 = vsel %vm372_vm2, %v2654_v58, %v2655_v45 }
 0x28f   : > { %v7307_v50 = vadd.f32 %v7306_v31, %v9310_v27  ;;  %v6408_v60 = vpop.f32.mrb[137].mxu0  ;;  %7091 = vmatprep.mubr.msk.bf16.mxu1 %vm8442_vm4, %v9504_v20  ;;  %v9519_v6 = vpack.c.bf16 %v2700_v19, %v2701_v43 }
 0x290   : > { %v2624_v23 = vmax.f32 %v2592_v0, 0.0  ;;  %v6409_v34 = vadd.f32 %v6408_v60, %v6407_v39  ;;  %v6410_v48 = vpop.f32.mrb[138].mxu0  ;;  %7128 = vmatpush3.bf16.msra.mxu1 %v7878_v10 }
 0x291   : > { %v2593_v57 = vadd.f32 %v7307_v50, %v9398_v47  ;;  %v6411_v30 = vpop.f32.mrb[139].mxu0  ;;  %7129 = vmatprep.subr.bf16.mxu1 %v7879_v16 }
 0x292   : > { %v2656_v3 = vrot.slane %v2624_v23, 7  ;;  %v2752_v58 = vrot.slane %v2624_v23, 1  ;;  %v7315_v27 = vadd.f32 %v9315_v15, %v6409_v34  ;;  %v6412_v5 = vadd.f32 %v6411_v30, %v6410_v48 }
 0x293   : > { %v2625_v17 = vmax.f32 %v2593_v57, 0.0 }
 0x294   : > { %v7316_v13 = vadd.f32 %v7315_v27, %v9322_v55  ;;  %v7321_v24 = vadd.f32 %v9318_v40, %v6412_v5  ;;  %v2795_v1 = vsel %vm471_vm0, %v2751_v12, %v2752_v58  ;;  %7130 = vmatpush3.bf16.msra.mxu1 %v7879_v16  ;;  %v2699_v10 = vsel %vm372_vm2, %v2655_v45, %v2656_v3 }
 0x295   : > { %v2657_v4 = vrot.slane %v2625_v17, 7  ;;  %v2753_v31 = vrot.slane %v2625_v17, 1  ;;  %v9529_v43 = vpack.c.bf16 %v2795_v1, %v2796_v38  ;;  %6763 = vmatprep.subr.bf16.mxu1 %v7880_v62  ;;  %v9531_v0 = vpack.c.bf16 %v2625_v17, %v2624_v23 }
 0x296   : > { %v2594_v15 = vadd.f32 %v7316_v13, %v9398_v47  ;;  %v7322_v55 = vadd.f32 %v7321_v24, %v9326_v11  ;;  %v6413_v39 = vpop.f32.mrb[140].mxu0 }
 0x297   : > { %v6414_v40 = vpop.f32.mrb[141].mxu0  ;;  %7092 = vmatmul.mubr.msk.bf16.gmra.mrb[56].mxu1 %vm8442_vm4, %v9529_v43  ;;  %v2794_v45 = vsel %vm471_vm0, %v2752_v58, %v2753_v31  ;;  %v2698_v12 = vsel %vm372_vm2, %v2656_v3, %v2657_v4 }
 0x298   : > { %v2626_v16 = vmax.f32 %v2594_v15, 0.0  ;;  %v2595_v38 = vadd.f32 %v7322_v55, %v9398_v47  ;;  %v6415_v19 = vadd.f32 %v6414_v40, %v6413_v39  ;;  %v6416_v50 = vpop.f32.mrb[142].mxu0  ;;  %v9543_v60 = vpack.c.bf16 %v2698_v12, %v2699_v10 }
 0x299   : > { %v6417_v11 = vpop.f32.mrb[143].mxu0 }
 0x29a   : > { %v2658_v23 = vrot.slane %v2626_v16, 7  ;;  %v2754_v34 = vrot.slane %v2626_v16, 1  ;;  %v2627_v48 = vmax.f32 %v2595_v38, 0.0  ;;  %v7312_v57 = vadd.f32 %v9329_v18, %v6415_v19 }
 0x29b   : > { %v6418_v30 = vadd.f32 %v6417_v11, %v6416_v50 }
 0x29c   : > { %v2659_v62 = vrot.slane %v2627_v48, 7  ;;  %v2755_v27 = vrot.slane %v2627_v48, 1  ;;  %v7313_v58 = vadd.f32 %v7312_v57, %v9320_v63  ;;  %v2793_v3 = vsel %vm471_vm0, %v2753_v31, %v2754_v34 }
 0x29d   : > { %v7318_v5 = vadd.f32 %v9334_v8, %v6418_v30  ;;  %v9550_v17 = vpack.c.bf16 %v2793_v3, %v2794_v45  ;;  %v9552_v13 = vpack.c.bf16 %v2627_v48, %v2626_v16  ;;  %v2697_v24 = vsel %vm372_vm2, %v2657_v4, %v2658_v23 }
 0x29e   : > { %v2596_v1 = vadd.f32 %v7313_v58, %v9398_v47  ;;  %v6419_v18 = vpop.f32.mrb[144].mxu0  ;;  %v2792_v10 = vsel %vm471_vm0, %v2754_v34, %v2755_v27  ;;  %v2696_v63 = vsel %vm372_vm2, %v2658_v23, %v2659_v62 }
 0x29f   : > { %v7319_v31 = vadd.f32 %v7318_v5, %v9324_v41  ;;  %v6420_v15 = vpop.f32.mrb[145].mxu0  ;;  %7095 = vmatprep.mubr.msk.bf16.mxu1 %vm8442_vm4, %v9550_v17  ;;  %v9565_v8 = vpack.c.bf16 %v2696_v63, %v2697_v24  ;;  %v7894_v41 = vld [vmem:[#allocation10 + $0x100] sm:$0xff]  }
 0x2a0   : > { %v2628_v55 = vmax.f32 %v2596_v1, 0.0  ;;  %v6421_v4 = vadd.f32 %v6420_v15, %v6419_v18  ;;  %v6422_v39 = vpop.f32.mrb[146].mxu0  ;;  %6627 = vmatprep.subr.bf16.mxu0 %v7894_v41 }
 0x2a1   : > { %v2597_v40 = vadd.f32 %v7319_v31, %v9398_v47  ;;  %v6423_v45 = vpop.f32.mrb[147].mxu0 }
 0x2a2   : > { %v2660_v12 = vrot.slane %v2628_v55, 7  ;;  %v2756_v16 = vrot.slane %v2628_v55, 1  ;;  %v7327_v38 = vadd.f32 %v9346_v9, %v6421_v4  ;;  %v6424_v19 = vadd.f32 %v6423_v45, %v6422_v39 }
 0x2a3   : > { %v2629_v50 = vmax.f32 %v2597_v40, 0.0 }
 0x2a4   : > { %v7328_v11 = vadd.f32 %v7327_v38, %v9339_v29  ;;  %v7333_v23 = vadd.f32 %v9349_v46, %v6424_v19  ;;  %v2791_v34 = vsel %vm471_vm0, %v2755_v27, %v2756_v16  ;;  %v2695_v48 = vsel %vm372_vm2, %v2659_v62, %v2660_v12  ;;  %v7896_v27 = vld [vmem:[#allocation10 + $0xc0] sm:$0xff]  }
 0x2a5   : > { %v2661_v57 = vrot.slane %v2629_v50, 7  ;;  %v2757_v30 = vrot.slane %v2629_v50, 1  ;;  %v9575_v58 = vpack.c.bf16 %v2791_v34, %v2792_v10  ;;  %v9577_v3 = vpack.c.bf16 %v2629_v50, %v2628_v55  ;;  %6628 = vmatpush3.bf16.msra.mxu0 %v7896_v27 }
 0x2a6   : > { %v2598_v9 = vadd.f32 %v7328_v11, %v9398_v47  ;;  %v7334_v5 = vadd.f32 %v7333_v23, %v9343_v32  ;;  %v6425_v29 = vpop.f32.mrb[148].mxu0 }
 0x2a7   : > { %v6426_v24 = vpop.f32.mrb[149].mxu0  ;;  %7096 = vmatmul.mubr.msk.bf16.gmra.mrb[60].mxu1 %vm8442_vm4, %v9575_v58  ;;  %v2790_v46 = vsel %vm471_vm0, %v2756_v16, %v2757_v30  ;;  %v2694_v62 = vsel %vm372_vm2, %v2660_v12, %v2661_v57 }
 0x2a8   : > { %v2630_v1 = vmax.f32 %v2598_v9, 0.0  ;;  %v2599_v18 = vadd.f32 %v7334_v5, %v9398_v47  ;;  %v6427_v10 = vadd.f32 %v6426_v24, %v6425_v29  ;;  %v6428_v63 = vpop.f32.mrb[150].mxu0  ;;  %v9589_v31 = vpack.c.bf16 %v2694_v62, %v2695_v48 }
 0x2a9   : > { %v6429_v32 = vpop.f32.mrb[151].mxu0 }
 0x2aa   : > { %v2662_v15 = vrot.slane %v2630_v1, 7  ;;  %v2758_v55 = vrot.slane %v2630_v1, 1  ;;  %v2631_v4 = vmax.f32 %v2599_v18, 0.0  ;;  %v7324_v39 = vadd.f32 %v9360_v52, %v6427_v10 }
 0x2ab   : > { %v6430_v40 = vadd.f32 %v6429_v32, %v6428_v63 }
 0x2ac   : > { %v2663_v45 = vrot.slane %v2631_v4, 7  ;;  %v2759_v16 = vrot.slane %v2631_v4, 1  ;;  %v7325_v12 = vadd.f32 %v7324_v39, %v9337_v33  ;;  %v2789_v38 = vsel %vm471_vm0, %v2757_v30, %v2758_v55 }
 0x2ad   : > { %v7330_v19 = vadd.f32 %v9363_v59, %v6430_v40  ;;  %v9596_v50 = vpack.c.bf16 %v2789_v38, %v2790_v46  ;;  %v9598_v41 = vpack.c.bf16 %v2631_v4, %v2630_v1  ;;  %v2693_v11 = vsel %vm372_vm2, %v2661_v57, %v2662_v15 }
 0x2ae   : > { %v2600_v23 = vadd.f32 %v7325_v12, %v9398_v47  ;;  %v6431_v52 = vpop.f32.mrb[152].mxu0  ;;  %v2788_v34 = vsel %vm471_vm0, %v2758_v55, %v2759_v16  ;;  %v2692_v33 = vsel %vm372_vm2, %v2662_v15, %v2663_v45  ;;  %v10657_v12 = vld [vmem:[#allocation45_spill] sm:$0xff] }
 0x2af   : > { %v7331_v48 = vadd.f32 %v7330_v19, %v9341_v14  ;;  %v6432_v30 = vpop.f32.mrb[153].mxu0  ;;  %7099 = vmatprep.mubr.msk.bf16.mxu1 %vm8442_vm4, %v9596_v50  ;;  %v9611_v59 = vpack.c.bf16 %v2692_v33, %v2693_v11  ;;  %v7899_v14 = vld [vmem:[#allocation10 + $0x108] sm:$0xff]  }
 0x2b0   : > { %v2632_v9 = vmax.f32 %v2600_v23, 0.0  ;;  %v6433_v57 = vadd.f32 %v6432_v30, %v6431_v52  ;;  %v6434_v5 = vpop.f32.mrb[154].mxu0  ;;  %6629 = vmatprep.subr.bf16.mxu0 %v7899_v14  ;;  %v10660_v14 = vld [vmem:[#allocation55_spill] sm:$0xff] }
 0x2b1   : > { %v2601_v29 = vadd.f32 %v7331_v48, %v9398_v47  ;;  %v6435_v24 = vpop.f32.mrb[155].mxu0 }
 0x2b2   : > { %v2664_v46 = vrot.slane %v2632_v9, 7  ;;  %v2760_v62 = vrot.slane %v2632_v9, 1  ;;  %v7339_v27 = vadd.f32 %v9374_v53, %v6433_v57  ;;  %v6436_v1 = vadd.f32 %v6435_v24, %v6434_v5  ;;  %v10658_v5 = vld [vmem:[#allocation54_spill] sm:$0xff] }
 0x2b3   : > { %v2633_v18 = vmax.f32 %v2601_v29, 0.0 }
 0x2b4   : > { %v7340_v10 = vadd.f32 %v7339_v27, %v9353_v7  ;;  %v7345_v63 = vadd.f32 %v9377_v42, %v6436_v1  ;;  %v2787_v32 = vsel %vm471_vm0, %v2759_v16, %v2760_v62  ;;  %v2691_v15 = vsel %vm372_vm2, %v2663_v45, %v2664_v46  ;;  %v7900_v16 = vld [vmem:[#allocation10 + $0xc8] sm:$0xff]  }
 0x2b5   : > { %v2665_v55 = vrot.slane %v2633_v18, 7  ;;  %v2761_v4 = vrot.slane %v2633_v18, 1  ;;  %v9621_v39 = vpack.c.bf16 %v2787_v32, %v2788_v34  ;;  %v9623_v40 = vpack.c.bf16 %v2633_v18, %v2632_v9  ;;  %6630 = vmatpush3.bf16.msra.mxu0 %v7900_v16  ;;  %v10659_v1 = vld [vmem:[#allocation43_spill] sm:$0xff] }
 0x2b6   : > { %v2602_v53 = vadd.f32 %v7340_v10, %v9398_v47  ;;  %v7346_v38 = vadd.f32 %v7345_v63, %v10657_v12  ;;  %v6437_v7 = vpop.f32.mrb[156].mxu0 }
 0x2b7   : > { %v6438_v19 = vpop.f32.mrb[157].mxu0  ;;  %7100 = vmatmul.mubr.msk.bf16.gmra.mrb[64].mxu1 %vm8442_vm4, %v9621_v39  ;;  %v2786_v42 = vsel %vm471_vm0, %v2760_v62, %v2761_v4  ;;  %v2690_v45 = vsel %vm372_vm2, %v2664_v46, %v2665_v55 }
 0x2b8   : > { %v2634_v11 = vmax.f32 %v2602_v53, 0.0  ;;  %v2603_v23 = vadd.f32 %v7346_v38, %v9398_v47  ;;  %v6439_v52 = vadd.f32 %v6438_v19, %v6437_v7  ;;  %v6440_v34 = vpop.f32.mrb[158].mxu0  ;;  %v9635_v33 = vpack.c.bf16 %v2690_v45, %v2691_v15  ;;  %v10661_v19 = vld [vmem:[#allocation44_spill] sm:$0xff] }
 0x2b9   : > { %v6441_v48 = vpop.f32.mrb[159].mxu0 }
 0x2ba   : > { %v2666_v30 = vrot.slane %v2634_v11, 7  ;;  %v2762_v9 = vrot.slane %v2634_v11, 1  ;;  %v2635_v57 = vmax.f32 %v2603_v23, 0.0  ;;  %v7336_v29 = vadd.f32 %v10658_v5, %v6439_v52 }
 0x2bb   : > { %v6442_v24 = vadd.f32 %v6441_v48, %v6440_v34 }
 0x2bc   : > { %v2667_v62 = vrot.slane %v2635_v57, 7  ;;  %v2763_v27 = vrot.slane %v2635_v57, 1  ;;  %v7337_v46 = vadd.f32 %v7336_v29, %v10659_v1  ;;  %v2785_v18 = vsel %vm471_vm0, %v2761_v4, %v2762_v9  ;;  %v7902_v29 = vld [vmem:[#allocation10 + $0x110] sm:$0xff]  }
 0x2bd   : > { %v7342_v10 = vadd.f32 %v10660_v14, %v6442_v24  ;;  %v9642_v63 = vpack.c.bf16 %v2785_v18, %v2786_v42  ;;  %v9644_v32 = vpack.c.bf16 %v2635_v57, %v2634_v11  ;;  %v2689_v15 = vsel %vm372_vm2, %v2665_v55, %v2666_v30  ;;  %v10664_v24 = vld [vmem:[#allocation47_spill] sm:$0xff]  ;;  %6631 = vmatprep.subr.bf16.mxu0 %v7902_v29 }
 0x2be   : > { %v2604_v53 = vadd.f32 %v7337_v46, %v9398_v47  ;;  %v6443_v12 = vpop.f32.mrb[160].mxu0  ;;  %v2784_v38 = vsel %vm471_vm0, %v2762_v9, %v2763_v27  ;;  %v2688_v7 = vsel %vm372_vm2, %v2666_v30, %v2667_v62  ;;  %v10663_v9 = vld [vmem:[#allocation22_spill] sm:$0xff]  ;;  %v10665_v46 = vld [vmem:[#allocation24_spill] sm:$0xff] }
 0x2bf   : > { %v7343_v4 = vadd.f32 %v7342_v10, %v10661_v19  ;;  %v6444_v45 = vpop.f32.mrb[161].mxu0  ;;  %7103 = vmatprep.mubr.msk.bf16.mxu1 %vm8442_vm4, %v9642_v63  ;;  %v9657_v42 = vpack.c.bf16 %v2688_v7, %v2689_v15 }
 0x2c0   : > { %v2636_v16 = vmax.f32 %v2604_v53, 0.0  ;;  %v6445_v55 = vadd.f32 %v6444_v45, %v6443_v12  ;;  %v6446_v11 = vpop.f32.mrb[162].mxu0 }
 0x2c1   : > { %10662 = vst [vmem:[#allocation45_spill] sm:$0xff] %v9657_v42  ;;  %v2605_v23 = vadd.f32 %v7343_v4, %v9398_v47  ;;  %v6447_v52 = vpop.f32.mrb[163].mxu0  ;;  %v10667_v4 = vld [vmem:[#allocation49_spill] sm:$0xff] }
 0x2c2   : > { %v2668_v34 = vrot.slane %v2636_v16, 7  ;;  %v2764_v48 = vrot.slane %v2636_v16, 1  ;;  %v7351_v57 = vadd.f32 %v10663_v9, %v6445_v55  ;;  %v6448_v30 = vadd.f32 %v6447_v52, %v6446_v11 }
 0x2c3   : > { %v2637_v5 = vmax.f32 %v2605_v23, 0.0 }
 0x2c4   : > { %v7352_v1 = vadd.f32 %v7351_v57, %v10664_v24  ;;  %v7357_v18 = vadd.f32 %v10665_v46, %v6448_v30  ;;  %v2783_v14 = vsel %vm471_vm0, %v2763_v27, %v2764_v48  ;;  %v2687_v10 = vsel %vm372_vm2, %v2667_v62, %v2668_v34 }
 0x2c5   : > { %v2669_v15 = vrot.slane %v2637_v5, 7  ;;  %v2765_v53 = vrot.slane %v2637_v5, 1  ;;  %v9667_v12 = vpack.c.bf16 %v2783_v14, %v2784_v38  ;;  %v9669_v7 = vpack.c.bf16 %v2637_v5, %v2636_v16  ;;  %v7903_v38 = vld [vmem:[#allocation10 + $0xd0] sm:$0xff]   ;;  %v7905_v14 = vld [vmem:[#allocation10 + $0xd8] sm:$0xff]  }
 0x2c6   : > { %v2606_v19 = vadd.f32 %v7352_v1, %v9398_v47  ;;  %v7358_v45 = vadd.f32 %v7357_v18, %v10667_v4  ;;  %v6449_v55 = vpop.f32.mrb[164].mxu0  ;;  %6632 = vmatpush3.bf16.msra.mxu0 %v7903_v38  ;;  %v10669_v1 = vld [vmem:[#allocation26_spill] sm:$0xff] }
 0x2c7   : > { %10666 = vst [vmem:[#allocation54_spill] sm:$0xff] %v9669_v7  ;;  %v6450_v11 = vpop.f32.mrb[165].mxu0  ;;  %7104 = vmatmul.mubr.msk.bf16.gmra.mrb[68].mxu1 %vm8442_vm4, %v9667_v12  ;;  %v2782_v62 = vsel %vm471_vm0, %v2764_v48, %v2765_v53  ;;  %v2686_v27 = vsel %vm372_vm2, %v2668_v34, %v2669_v15  ;;  %v7904_v48 = vld [vmem:[#allocation10 + $0x118] sm:$0xff]  }
 0x2c8   : > { %v2638_v16 = vmax.f32 %v2606_v19, 0.0  ;;  %v2607_v23 = vadd.f32 %v7358_v45, %v9398_v47  ;;  %v6451_v52 = vadd.f32 %v6450_v11, %v6449_v55  ;;  %v6452_v9 = vpop.f32.mrb[166].mxu0  ;;  %v9681_v57 = vpack.c.bf16 %v2686_v27, %v2687_v10  ;;  %v10671_v55 = vld [vmem:[#allocation27_spill] sm:$0xff]  ;;  %6633 = vmatprep.subr.bf16.mxu0 %v7904_v48  ;;  %v7908_v48 = vld [vmem:[#allocation10 + $0xe0] sm:$0xff]  }
 0x2c9   : > { %v6453_v30 = vpop.f32.mrb[167].mxu0 }
 0x2ca   : > { %10668 = vst [vmem:[#allocation43_spill] sm:$0xff] %v9681_v57  ;;  %v2670_v5 = vrot.slane %v2638_v16, 7  ;;  %v2766_v29 = vrot.slane %v2638_v16, 1  ;;  %v2639_v24 = vmax.f32 %v2607_v23, 0.0  ;;  %v7348_v46 = vadd.f32 %v10669_v1, %v6451_v52  ;;  %6634 = vmatpush3.bf16.msra.mxu0 %v7905_v14  ;;  %v10675_v14 = vld [vmem:[#allocation39_spill] sm:$0xff] }
 0x2cb   : > { %v6454_v18 = vadd.f32 %v6453_v30, %v6452_v9 }
 0x2cc   : > { %v2671_v4 = vrot.slane %v2639_v24, 7  ;;  %v2767_v34 = vrot.slane %v2639_v24, 1  ;;  %v7349_v19 = vadd.f32 %v7348_v46, %v10670_v54  ;;  %v2781_v45 = vsel %vm471_vm0, %v2765_v53, %v2766_v29  ;;  %v10673_v53 = vld [vmem:[#allocation48_spill] sm:$0xff]  ;;  %v7907_v46 = vld [vmem:[#allocation10 + $0x120] sm:$0xff]  }
 0x2cd   : > { %v7354_v10 = vadd.f32 %v10671_v55, %v6454_v18  ;;  %v9688_v11 = vpack.c.bf16 %v2781_v45, %v2782_v62  ;;  %v9690_v27 = vpack.c.bf16 %v2639_v24, %v2638_v16  ;;  %v2685_v38 = vsel %vm372_vm2, %v2669_v15, %v2670_v5  ;;  %6635 = vmatprep.subr.bf16.mxu0 %v7907_v46  ;;  %v10679_v46 = vld [vmem:[#allocation53_spill] sm:$0xff] }
 0x2ce   : > { %v2608_v23 = vadd.f32 %v7349_v19, %v9398_v47  ;;  %v6455_v52 = vpop.f32.mrb[168].mxu0  ;;  %v2780_v9 = vsel %vm471_vm0, %v2766_v29, %v2767_v34  ;;  %v2684_v54 = vsel %vm372_vm2, %v2670_v5, %v2671_v4  ;;  %6636 = vmatpush3.bf16.msra.mxu0 %v7908_v48 }
 0x2cf   : > { %10672 = vst [vmem:[#allocation55_spill] sm:$0xff] %v9690_v27  ;;  %v7355_v30 = vadd.f32 %v7354_v10, %v10673_v53  ;;  %v6456_v62 = vpop.f32.mrb[169].mxu0  ;;  %7107 = vmatprep.mubr.msk.bf16.mxu1 %vm8442_vm4, %v9688_v11  ;;  %v9703_v16 = vpack.c.bf16 %v2684_v54, %v2685_v38  ;;  %v7909_v53 = vld [vmem:[#allocation10 + $0x128] sm:$0xff]  }
 0x2d0   : > { %v2640_v15 = vmax.f32 %v2608_v23, 0.0  ;;  %v6457_v24 = vadd.f32 %v6456_v62, %v6455_v52  ;;  %v6458_v1 = vpop.f32.mrb[170].mxu0  ;;  %v7910_v27 = vld [vmem:[#allocation10 + $0xe8] sm:$0xff]   ;;  %v10677_v23 = vld [vmem:[#allocation40_spill] sm:$0xff]  ;;  %6637 = vmatprep.subr.bf16.mxu0 %v7909_v53 }
 0x2d1   : > { %10674 = vst [vmem:[#allocation44_spill] sm:$0xff] %v9703_v16  ;;  %v2609_v18 = vadd.f32 %v7355_v30, %v9398_v47  ;;  %v6459_v29 = vpop.f32.mrb[171].mxu0  ;;  %v10676_v38 = vld [vmem:[#allocation51_spill] sm:$0xff] }
 0x2d2   : > { %v2672_v19 = vrot.slane %v2640_v15, 7  ;;  %v2768_v5 = vrot.slane %v2640_v15, 1  ;;  %v7363_v45 = vadd.f32 %v10675_v14, %v6457_v24  ;;  %v6460_v55 = vadd.f32 %v6459_v29, %v6458_v1  ;;  %6638 = vmatpush3.bf16.msra.mxu0 %v7910_v27  ;;  %v7914_v27 = vld [vmem:[#allocation10 + $0xf8] sm:$0xff]  }
 0x2d3   : > { %v2641_v10 = vmax.f32 %v2609_v18, 0.0 }
 0x2d4   : > { %v7364_v54 = vadd.f32 %v7363_v45, %v10676_v38  ;;  %v7369_v52 = vadd.f32 %v10677_v23, %v6460_v55  ;;  %v2779_v62 = vsel %vm471_vm0, %v2767_v34, %v2768_v5  ;;  %v2683_v30 = vsel %vm372_vm2, %v2671_v4, %v2672_v19  ;;  %v7912_v38 = vld [vmem:[#allocation10 + $0xf0] sm:$0xff]  }
 0x2d5   : > { %v2673_v16 = vrot.slane %v2641_v10, 7  ;;  %v2769_v57 = vrot.slane %v2641_v10, 1  ;;  %v9713_v7 = vpack.c.bf16 %v2779_v62, %v2780_v9  ;;  %v9715_v24 = vpack.c.bf16 %v2641_v10, %v2640_v15  ;;  %v7911_v10 = vld [vmem:[#allocation10 + $0x130] sm:$0xff]   ;;  %v10681_v62 = vld [vmem:[#allocation41_spill] sm:$0xff] }
 0x2d6   : > { %v2610_v1 = vadd.f32 %v7364_v54, %v9398_v47  ;;  %v7370_v18 = vadd.f32 %v7369_v52, %v10679_v46  ;;  %v6461_v29 = vpop.f32.mrb[172].mxu0  ;;  %6639 = vmatprep.subr.bf16.mxu0 %v7911_v10 }
 0x2d7   : > { %10678 = vst [vmem:[#allocation22_spill] sm:$0xff] %v9715_v24  ;;  %v6462_v48 = vpop.f32.mrb[173].mxu0  ;;  %7108 = vmatmul.mubr.msk.bf16.gmra.mrb[72].mxu1 %vm8442_vm4, %v9713_v7  ;;  %v2778_v4 = vsel %vm471_vm0, %v2768_v5, %v2769_v57  ;;  %v2682_v34 = vsel %vm372_vm2, %v2672_v19, %v2673_v16  ;;  %6640 = vmatpush3.bf16.msra.mxu0 %v7912_v38  ;;  %v7913_v19 = vld [vmem:[#allocation10 + $0x138] sm:$0xff]  }
 0x2d8   : > { %v2642_v9 = vmax.f32 %v2610_v1, 0.0  ;;  %v2611_v15 = vadd.f32 %v7370_v18, %v9398_v47  ;;  %v6463_v14 = vadd.f32 %v6462_v48, %v6461_v29  ;;  %v6464_v45 = vpop.f32.mrb[174].mxu0  ;;  %v9727_v55 = vpack.c.bf16 %v2682_v34, %v2683_v30  ;;  %v10682_v18 = vld [vmem:[#allocation50_spill] sm:$0xff]  ;;  %6641 = vmatprep.subr.bf16.mxu0 %v7913_v19 }
 0x2d9   : > { %v6465_v53 = vpop.f32.mrb[175].mxu0  ;;  %v10683_v48 = vld [vmem:[#allocation42_spill] sm:$0xff] }
 0x2da   : > { %10680 = vst [vmem:[#allocation47_spill] sm:$0xff] %v9727_v55  ;;  %v2674_v54 = vrot.slane %v2642_v9, 7  ;;  %v2770_v23 = vrot.slane %v2642_v9, 1  ;;  %v2643_v52 = vmax.f32 %v2611_v15, 0.0  ;;  %v7360_v46 = vadd.f32 %v10681_v62, %v6463_v14 }
 0x2db   : > { %v6466_v5 = vadd.f32 %v6465_v53, %v6464_v45  ;;  %v10684_v53 = vld [vmem:[#allocation52_spill] sm:$0xff]  ;;  %6642 = vmatpush3.bf16.msra.mxu0 %v7914_v27 }
 0x2dc   : > { %v2675_v1 = vrot.slane %v2643_v52, 7  ;;  %v2771_v24 = vrot.slane %v2643_v52, 1  ;;  %v7361_v29 = vadd.f32 %v7360_v46, %v10682_v18  ;;  %v2777_v30 = vsel %vm471_vm0, %v2769_v57, %v2770_v23 }
 0x2dd   : > { %v7366_v34 = vadd.f32 %v10683_v48, %v6466_v5  ;;  %v9734_v55 = vpack.c.bf16 %v2777_v30, %v2778_v4  ;;  %v9736_v42 = vpack.c.bf16 %v2643_v52, %v2642_v9  ;;  %v2681_v15 = vsel %vm372_vm2, %v2673_v16, %v2674_v54 }
 0x2de   : > { %v2612_v14 = vadd.f32 %v7361_v29, %v9398_v47  ;;  %v2776_v45 = vsel %vm471_vm0, %v2770_v23, %v2771_v24  ;;  %v2680_v10 = vsel %vm372_vm2, %v2674_v54, %v2675_v1 }
 0x2df   : > { %v7367_v57 = vadd.f32 %v7366_v34, %v10684_v53  ;;  %7111 = vmatprep.mubr.msk.bf16.mxu1 %vm8442_vm4, %v9734_v55  ;;  %v9749_v4 = vpack.c.bf16 %v2680_v10, %v2681_v15  ;;  %v7885_v10 = vld [vmem:[#allocation10 + $0x190] sm:$0xff]   ;;  %v7886_v53 = vld [vmem:[#allocation10 + $0x1d8] sm:$0xff]  }
 0x2e0   : > { %v2644_v9 = vmax.f32 %v2612_v14, 0.0 }
 0x2e1   : > { %v2613_v16 = vadd.f32 %v7367_v57, %v9398_v47  ;;  %v10685_v47 = vrot.slane %v9404_v25, 7  ;;  %v7887_v57 = vld [vmem:[#allocation10 + $0x198] sm:$0xff]  }
 0x2e2   : > { %v2676_v38 = vrot.slane %v2644_v9, 7  ;;  %v2772_v52 = vrot.slane %v2644_v9, 1 }
 0x2e3   : > { %v2645_v62 = vmax.f32 %v2613_v16, 0.0  ;;  %v7889_v16 = vld [vmem:[#allocation10 + $0x1a0] sm:$0xff]  }
 0x2e4   : > { %v2775_v23 = vsel %vm471_vm0, %v2771_v24, %v2772_v52  ;;  %v2679_v54 = vsel %vm372_vm2, %v2675_v1, %v2676_v38  ;;  %v10686_v1 = vrot.slane %v9404_v25, 1  ;;  %v7881_v25 = vld [vmem:[#allocation10 + $0x180] sm:$0xff]  }
 0x2e5   : > { %v2677_v46 = vrot.slane %v2645_v62, 7  ;;  %v2773_v5 = vrot.slane %v2645_v62, 1  ;;  %v9756_v19 = vpack.c.bf16 %v2775_v23, %v2776_v45  ;;  %v9758_v18 = vpack.c.bf16 %v2645_v62, %v2644_v9  ;;  %v7882_v45 = vld [vmem:[#allocation10 + $0x1c8] sm:$0xff]   ;;  %v7888_v9 = vld [vmem:[#allocation10 + $0x1e0] sm:$0xff]   ;;  %v7892_v62 = vld [vmem:[#allocation10 + $0x1f0] sm:$0xff]  }
 0x2e6   : > { %v7893_v23 = vld [vmem:[#allocation10 + $0x1b0] sm:$0xff]  }
 0x2e7   : > { %7112 = vmatmul.mubr.msk.bf16.gmra.mrb[76].mxu1 %vm8442_vm4, %v9756_v19  ;;  %v2709_v27 = vsel %vm372_vm2, %v2677_v46, %v10685_v47  ;;  %v2774_v24 = vsel %vm471_vm0, %v2772_v52, %v2773_v5  ;;  %v2805_v29 = vsel %vm471_vm0, %v2773_v5, %v10686_v1  ;;  %v2678_v30 = vsel %vm372_vm2, %v2676_v38, %v2677_v46  ;;  %v7890_v38 = vld [vmem:[#allocation10 + $0x1e8] sm:$0xff]   ;;  %v7897_v46 = vld [vmem:[#allocation10 + $0x1b8] sm:$0xff]   ;;  %v7898_v5 = vld [vmem:[#allocation10 + $0x200] sm:$0xff]   ;;  %v6507_v1 = vpop.f32.mrb[176].mxu0 }
 0x2e8   : > { %7131 = vmatprep.mubr.msk.bf16.mxu1 %vm8442_vm4, %v9436_v35  ;;  %v9779_v48 = vpack.c.bf16 %v9420_v49, %v2709_v27  ;;  %v9781_v34 = vpack.c.bf16 %v2805_v29, %v2774_v24  ;;  %v9783_v15 = vpack.c.bf16 %v2678_v30, %v2679_v54  ;;  %v7883_v49 = vld [vmem:[#allocation10 + $0x188] sm:$0xff]   ;;  %v7884_v35 = vld [vmem:[#allocation10 + $0x1d0] sm:$0xff]   ;;  %v7895_v54 = vld [vmem:[#allocation10 + $0x1f8] sm:$0xff]   ;;  %v6508_v29 = vpop.f32.mrb[177].mxu0 }
 0x2e9   : > { %v7891_v52 = vld [vmem:[#allocation10 + $0x1a8] sm:$0xff]   ;;  %v7906_v27 = vld [vmem:[#allocation10 + $0x210] sm:$0xff]   ;;  %v7915_v24 = vld [vmem:[#allocation10 + $0x218] sm:$0xff]  }
 0x2ea   : > { %5809 = vmatmul.mubr.msk.bf16.gmra.mrb[180].mxu0 %vm8504_vm6, %v9779_v48  ;;  %v7901_v47 = vld [vmem:[#allocation10 + $0x208] sm:$0xff]   ;;  %v7916_v30 = vld [vmem:[#allocation10 + $0x220] sm:$0xff]  }
 0x2eb   : > { %3223 = vmatprep.mubr.bf16.mxu0 %v9438_v56 }
 0x2ef   : > { %7132 = vmatmul.mubr.msk.bf16.vlgmr.msra.gmra.mrb[48].mxu1 %vm8442_vm4, %v9458_v22 }
 0x2f0   : > { %7135 = vmatprep.mubr.msk.bf16.mxu1 %vm8442_vm4, %v9483_v44  ;;  %6764 = vmatpush3.bf16.msra.mxu1 %v7881_v25  ;;  %v9879_v25 = vadd.f32 %v6508_v29, %v6507_v1 }
 0x2f1   : > { %6765 = vmatprep.subr.bf16.mxu1 %v7882_v45  ;;  %v10688_v45 = vld [vmem:[#allocation45_spill] sm:$0xff] }
 0x2f2   : > { %5812 = vmatmul.mubr.msk.bf16.gmra.mrb[184].mxu0 %vm8504_vm6, %v9451_v37 }
 0x2f3   : > { %3231 = vmatprep.mubr.bf16.mxu0 %v9460_v36 }
 0x2f4   : > { %6766 = vmatpush3.bf16.msra.mxu1 %v7883_v49  ;;  %v6510_v49 = vpop.f32.mrb[178].mxu0 }
 0x2f5   : > { %6767 = vmatprep.subr.bf16.mxu1 %v7884_v35  ;;  %v10689_v35 = vld [vmem:[#allocation54_spill] sm:$0xff] }
 0x2f7   : > { %7136 = vmatmul.mubr.msk.bf16.gmra.mrb[52].mxu1 %vm8442_vm4, %v9504_v20 }
 0x2f8   : > { %7139 = vmatprep.mubr.msk.bf16.mxu1 %vm8442_vm4, %v9529_v43  ;;  %6768 = vmatpush3.bf16.msra.mxu1 %v7885_v10  ;;  %v6511_v10 = vpop.f32.mrb[179].mxu0 }
 0x2f9   : > { %6769 = vmatprep.subr.bf16.mxu1 %v7886_v53  ;;  %v9885_v53 = vadd.f32 %v6511_v10, %v6510_v49 }
 0x2fa   : > { %5815 = vmatmul.mubr.msk.bf16.gmra.mrb[188].mxu0 %vm8504_vm6, %v9473_v26 }
 0x2fb   : > { %3239 = vmatprep.mubr.bf16.mxu0 %v9485_v28 }
 0x2fc   : > { %6770 = vmatpush3.bf16.msra.mxu1 %v7887_v57  ;;  %v7917_v57 = vld [vmem:[#allocation10 + $0x228] sm:$0xff]  }
 0x2fd   : > { %6771 = vmatprep.subr.bf16.mxu1 %v7888_v9  ;;  %v7918_v9 = vld [vmem:[#allocation10 + $0x230] sm:$0xff]  }
 0x2ff   : > { %7140 = vmatmul.mubr.msk.bf16.gmra.mrb[56].mxu1 %vm8442_vm4, %v9550_v17 }
 0x300   : > { %7143 = vmatprep.mubr.msk.bf16.mxu1 %vm8442_vm4, %v9575_v58  ;;  %6772 = vmatpush3.bf16.msra.mxu1 %v7889_v16  ;;  %v10690_v16 = vld [vmem:[#allocation43_spill] sm:$0xff] }
 0x301   : > { %6773 = vmatprep.subr.bf16.mxu1 %v7890_v38  ;;  %v10691_v38 = vld [vmem:[#allocation55_spill] sm:$0xff] }
 0x302   : > { %5818 = vmatmul.mubr.msk.bf16.gmra.mrb[192].mxu0 %vm8504_vm6, %v9497_v2 }
 0x303   : > { %3247 = vmatprep.mubr.bf16.mxu0 %v9506_v61 }
 0x304   : > { %6774 = vmatpush3.bf16.msra.mxu1 %v7891_v52  ;;  %v7919_v52 = vld [vmem:[#allocation10 + $0x238] sm:$0xff]  }
 0x305   : > { %6775 = vmatprep.subr.bf16.mxu1 %v7892_v62  ;;  %v7920_v62 = vld [vmem:[#allocation11] sm:$0xff]  }
 0x307   : > { %7144 = vmatmul.mubr.msk.bf16.gmra.mrb[60].mxu1 %vm8442_vm4, %v9596_v50 }
 0x308   : > { %7147 = vmatprep.mubr.msk.bf16.mxu1 %vm8442_vm4, %v9621_v39  ;;  %6776 = vmatpush3.bf16.msra.mxu1 %v7893_v23  ;;  %v10692_v23 = vld [vmem:[#allocation44_spill] sm:$0xff] }
 0x309   : > { %6777 = vmatprep.subr.bf16.mxu1 %v7895_v54  ;;  %v10693_v54 = vld [vmem:[#allocation22_spill] sm:$0xff] }
 0x30a   : > { %5821 = vmatmul.mubr.msk.bf16.gmra.mrb[196].mxu0 %vm8504_vm6, %v9519_v6 }
 0x30b   : > { %3255 = vmatprep.mubr.bf16.mxu0 %v9531_v0 }
 0x30c   : > { %6778 = vmatpush3.bf16.msra.mxu1 %v7897_v46  ;;  %v10694_v46 = vld [vmem:[#allocation47_spill] sm:$0xff] }
 0x30d   : > { %7163 = vmatprep.subr.bf16.mxu1 %v7898_v5 }
 0x30f   : > { %7148 = vmatmul.mubr.msk.bf16.gmra.mrb[64].mxu1 %vm8442_vm4, %v9642_v63 }
 0x310   : > { %7151 = vmatprep.mubr.msk.bf16.mxu1 %vm8442_vm4, %v9667_v12 }
 0x312   : > { %5824 = vmatmul.mubr.msk.bf16.gmra.mrb[200].mxu0 %vm8504_vm6, %v9543_v60 }
 0x313   : > { %3263 = vmatprep.mubr.bf16.mxu0 %v9552_v13 }
 0x317   : > { %7152 = vmatmul.mubr.msk.bf16.gmra.mrb[68].mxu1 %vm8442_vm4, %v9688_v11 }
 0x318   : > { %7155 = vmatprep.mubr.msk.bf16.mxu1 %vm8442_vm4, %v9713_v7 }
 0x31a   : > { %5827 = vmatmul.mubr.msk.bf16.gmra.mrb[204].mxu0 %vm8504_vm6, %v9565_v8 }
 0x31b   : > { %3271 = vmatprep.mubr.bf16.mxu0 %v9577_v3 }
 0x31f   : > { %7156 = vmatmul.mubr.msk.bf16.gmra.mrb[72].mxu1 %vm8442_vm4, %v9734_v55 }
 0x320   : > { %7159 = vmatprep.mubr.msk.bf16.mxu1 %vm8442_vm4, %v9756_v19 }
 0x322   : > { %5830 = vmatmul.mubr.msk.bf16.gmra.mrb[208].mxu0 %vm8504_vm6, %v9589_v31 }
 0x323   : > { %3279 = vmatprep.mubr.bf16.mxu0 %v9598_v41 }
 0x327   : > { %7160 = vmatmul.mubr.msk.bf16.gmra.mrb[76].mxu1 %vm8442_vm4, %v9781_v34 }
 0x328   : > { %4462 = vmatprep.mubr.bf16.mxu1 %v9438_v56 }
 0x32a   : > { %5833 = vmatmul.mubr.msk.bf16.gmra.mrb[212].mxu0 %vm8504_vm6, %v9611_v59 }
 0x32b   : > { %3287 = vmatprep.mubr.bf16.mxu0 %v9623_v40 }
 0x32f   : > { %5995 = vmatmul.mubr.msk.bf16.vlgmr.msra.gmra.mrb[80].mxu1 %vm8504_vm6, %v9451_v37 }
 0x330   : > { %4470 = vmatprep.mubr.bf16.mxu1 %v9460_v36  ;;  %7164 = vmatpush3.bf16.msra.mxu1 %v7898_v5  ;;  %v10695_v5 = vld [vmem:[#allocation56_spill] sm:$0xff] }
 0x331   : > { %7165 = vmatprep.subr.bf16.mxu1 %v7901_v47 }
 0x332   : > { %5836 = vmatmul.mubr.msk.bf16.gmra.mrb[216].mxu0 %vm8504_vm6, %v9635_v33 }
 0x333   : > { %3295 = vmatprep.mubr.bf16.mxu0 %v9644_v32 }
 0x334   : > { %7166 = vmatpush3.bf16.msra.mxu1 %v7901_v47 }
 0x335   : > { %7167 = vmatprep.subr.bf16.mxu1 %v7906_v27 }
 0x337   : > { %5998 = vmatmul.mubr.msk.bf16.gmra.mrb[84].mxu1 %vm8504_vm6, %v9473_v26 }
 0x338   : > { %4478 = vmatprep.mubr.bf16.mxu1 %v9485_v28  ;;  %7168 = vmatpush3.bf16.msra.mxu1 %v7906_v27 }
 0x339   : > { %7169 = vmatprep.subr.bf16.mxu1 %v7915_v24 }
 0x33a   : > { %5839 = vmatmul.mubr.msk.bf16.gmra.mrb[220].mxu0 %vm8504_vm6, %v10688_v45 }
 0x33b   : > { %3303 = vmatprep.mubr.bf16.mxu0 %v10689_v35 }
 0x33c   : > { %7170 = vmatpush3.bf16.msra.mxu1 %v7915_v24 }
 0x33d   : > { %7171 = vmatprep.subr.bf16.mxu1 %v7916_v30 }
 0x33f   : > { %6001 = vmatmul.mubr.msk.bf16.gmra.mrb[88].mxu1 %vm8504_vm6, %v9497_v2 }
 0x340   : > { %4486 = vmatprep.mubr.bf16.mxu1 %v9506_v61  ;;  %7172 = vmatpush3.bf16.msra.mxu1 %v7916_v30  ;;  %v10697_v30 = vld [vmem:[#allocation18_spill] sm:$0xff] }
 0x341   : > { %7173 = vmatprep.subr.bf16.mxu1 %v7917_v57 }
 0x342   : > { %5842 = vmatmul.mubr.msk.bf16.gmra.mrb[224].mxu0 %vm8504_vm6, %v10690_v16 }
 0x343   : > { %3311 = vmatprep.mubr.bf16.mxu0 %v10691_v38 }
 0x344   : > { %7174 = vmatpush3.bf16.msra.mxu1 %v7917_v57  ;;  %v10699_v57 = vld [vmem:[#allocation21_spill] sm:$0xff] }
 0x345   : > { %7175 = vmatprep.subr.bf16.mxu1 %v7918_v9 }
 0x347   : > { %6004 = vmatmul.mubr.msk.bf16.gmra.mrb[92].mxu1 %vm8504_vm6, %v9519_v6 }
 0x348   : > { %4494 = vmatprep.mubr.bf16.mxu1 %v9531_v0  ;;  %7176 = vmatpush3.bf16.msra.mxu1 %v7918_v9 }
 0x349   : > { %7177 = vmatprep.subr.bf16.mxu1 %v7919_v52 }
 0x34a   : > { %5845 = vmatmul.mubr.msk.bf16.gmra.mrb[228].mxu0 %vm8504_vm6, %v10692_v23 }
 0x34b   : > { %3319 = vmatprep.mubr.bf16.mxu0 %v10693_v54 }
 0x34c   : > { %7178 = vmatpush3.bf16.msra.mxu1 %v7919_v52 }
 0x34d   : > { %7211 = vmatprep.subr.bf16.mxu1 %v7920_v62 }
 0x34f   : > { %6007 = vmatmul.mubr.msk.bf16.gmra.mrb[96].mxu1 %vm8504_vm6, %v9543_v60 }
 0x350   : > { %4502 = vmatprep.mubr.bf16.mxu1 %v9552_v13 }
 0x352   : > { %5848 = vmatmul.mubr.msk.bf16.gmra.mrb[232].mxu0 %vm8504_vm6, %v10694_v46 }
 0x353   : > { %3327 = vmatprep.mubr.bf16.mxu0 %v9736_v42 }
 0x357   : > { %6010 = vmatmul.mubr.msk.bf16.gmra.mrb[100].mxu1 %vm8504_vm6, %v9565_v8 }
 0x358   : > { %4510 = vmatprep.mubr.bf16.mxu1 %v9577_v3 }
 0x35a   : > { %5851 = vmatmul.mubr.msk.bf16.gmra.mrb[236].mxu0 %vm8504_vm6, %v9749_v4 }
 0x35b   : > { %3802 = vmatprep.mubr.bf16.mxu0 %v10695_v5 }
 0x35f   : > { %6013 = vmatmul.mubr.msk.bf16.gmra.mrb[104].mxu1 %vm8504_vm6, %v9589_v31 }
 0x360   : > { %4518 = vmatprep.mubr.bf16.mxu1 %v9598_v41 }
 0x362   : > { %5899 = vmatmul.mubr.msk.bf16.vlgmr.msra.gmra.mrb[240].mxu0 %vm8504_vm6, %v9779_v48 }
 0x363   : > { %3810 = vmatprep.mubr.bf16.mxu0 %v9438_v56  ;;  %v10696_v56 = vmov 0  }
 0x367   : > { %6016 = vmatmul.mubr.msk.bf16.gmra.mrb[108].mxu1 %vm8504_vm6, %v9611_v59 }
 0x368   : > { %4526 = vmatprep.mubr.bf16.mxu1 %v9623_v40 }
 0x36a   : > { %5902 = vmatmul.mubr.msk.bf16.gmra.mrb[244].mxu0 %vm8504_vm6, %v9451_v37  ;;  %v7921_v37 = vld [vmem:[#allocation11 + $0x8] sm:$0xff]  }
 0x36b   : > { %3818 = vmatprep.mubr.bf16.mxu0 %v9460_v36  ;;  %v7922_v36 = vld [vmem:[#allocation11 + $0x10] sm:$0xff]  }
 0x36f   : > { %6019 = vmatmul.mubr.msk.bf16.gmra.mrb[112].mxu1 %vm8504_vm6, %v9635_v33 }
 0x370   : > { %4534 = vmatprep.mubr.bf16.mxu1 %v9644_v32 }
 0x372   : > { %5905 = vmatmul.mubr.msk.bf16.gmra.mrb[248].mxu0 %vm8504_vm6, %v9473_v26  ;;  %v7924_v26 = vld [vmem:[#allocation11 + $0x20] sm:$0xff]  }
 0x373   : > { %3826 = vmatprep.mubr.bf16.mxu0 %v9485_v28  ;;  %v7925_v28 = vld [vmem:[#allocation11 + $0x28] sm:$0xff]  }
 0x377   : > { %6022 = vmatmul.mubr.msk.bf16.gmra.mrb[116].mxu1 %vm8504_vm6, %v10688_v45 }
 0x378   : > { %4542 = vmatprep.mubr.bf16.mxu1 %v10689_v35 }
 0x37a   : > { %5908 = vmatmul.mubr.msk.bf16.gmra.mrb[252].mxu0 %vm8504_vm6, %v9497_v2 }
 0x37b   : > { %3834 = vmatprep.mubr.bf16.mxu0 %v9506_v61 }
 0x37f   : > { %6025 = vmatmul.mubr.msk.bf16.gmra.mrb[120].mxu1 %vm8504_vm6, %v10690_v16 }
 0x380   : > { %4550 = vmatprep.mubr.bf16.mxu1 %v10691_v38 }
 0x382   : > { %5911 = vmatmul.mubr.msk.bf16.gmra.mrb[0].mxu0 %vm8504_vm6, %v9519_v6 }
 0x383   : > { %3842 = vmatprep.mubr.bf16.mxu0 %v9531_v0  ;;  %v7926_v0 = vld [vmem:[#allocation11 + $0x30] sm:$0xff]  }
 0x387   : > { %6028 = vmatmul.mubr.msk.bf16.gmra.mrb[124].mxu1 %vm8504_vm6, %v10692_v23 }
 0x388   : > { %4558 = vmatprep.mubr.bf16.mxu1 %v10693_v54 }
 0x38a   : > { %5914 = vmatmul.mubr.msk.bf16.gmra.mrb[4].mxu0 %vm8504_vm6, %v9543_v60 }
 0x38b   : > { %3850 = vmatprep.mubr.bf16.mxu0 %v9552_v13 }
 0x38f   : > { %6031 = vmatmul.mubr.msk.bf16.gmra.mrb[128].mxu1 %vm8504_vm6, %v10694_v46 }
 0x390   : > { %4566 = vmatprep.mubr.bf16.mxu1 %v9736_v42 }
 0x392   : > { %5917 = vmatmul.mubr.msk.bf16.gmra.mrb[8].mxu0 %vm8504_vm6, %v9565_v8 }
 0x393   : > { %3858 = vmatprep.mubr.bf16.mxu0 %v9577_v3 }
 0x397   : > { %6034 = vmatmul.mubr.msk.bf16.gmra.mrb[132].mxu1 %vm8504_vm6, %v9749_v4 }
 0x398   : > { %4574 = vmatprep.mubr.bf16.mxu1 %v9758_v18 }
 0x39a   : > { %5920 = vmatmul.mubr.msk.bf16.gmra.mrb[12].mxu0 %vm8504_vm6, %v9589_v31 }
 0x39b   : > { %3866 = vmatprep.mubr.bf16.mxu0 %v9598_v41 }
 0x39f   : > { %6037 = vmatmul.mubr.msk.bf16.gmra.mrb[136].mxu1 %vm8504_vm6, %v9783_v15 }
 0x3a0   : > { %4582 = vmatprep.mubr.bf16.mxu1 %v10696_v56 }
 0x3a2   : > { %5923 = vmatmul.mubr.msk.bf16.gmra.mrb[16].mxu0 %vm8504_vm6, %v9611_v59 }
 0x3a3   : > { %3874 = vmatprep.mubr.bf16.mxu0 %v9623_v40 }
 0x3a7   : > { %4583 = vmatmul.mubr.bf16.gmra.mrb[140].mxu1 %v10696_v56 }
 0x3a8   : > { %7179 = vmatprep.mubr.msk.bf16.mxu1 %vm8442_vm4, %v9458_v22  ;;  %v7923_v22 = vld [vmem:[#allocation11 + $0x18] sm:$0xff]  }
 0x3aa   : > { %5926 = vmatmul.mubr.msk.bf16.gmra.mrb[20].mxu0 %vm8504_vm6, %v9635_v33 }
 0x3ab   : > { %3882 = vmatprep.mubr.bf16.mxu0 %v9644_v32 }
 0x3af   : > { %7180 = vmatmul.mubr.msk.bf16.vlgmr.msra.gmra.mrb[48].mxu1 %vm8442_vm4, %v9483_v44 }
 0x3b0   : > { %7183 = vmatprep.mubr.msk.bf16.mxu1 %vm8442_vm4, %v9504_v20  ;;  %7212 = vmatpush3.bf16.msra.mxu1 %v7920_v62 }
 0x3b1   : > { %7213 = vmatprep.subr.bf16.mxu1 %v7921_v37 }
 0x3b2   : > { %5929 = vmatmul.mubr.msk.bf16.gmra.mrb[24].mxu0 %vm8504_vm6, %v10688_v45 }
 0x3b3   : > { %3890 = vmatprep.mubr.bf16.mxu0 %v10689_v35 }
 0x3b4   : > { %7214 = vmatpush3.bf16.msra.mxu1 %v7921_v37 }
 0x3b5   : > { %7215 = vmatprep.subr.bf16.mxu1 %v7922_v36 }
 0x3b7   : > { %7184 = vmatmul.mubr.msk.bf16.gmra.mrb[52].mxu1 %vm8442_vm4, %v9529_v43 }
 0x3b8   : > { %7187 = vmatprep.mubr.msk.bf16.mxu1 %vm8442_vm4, %v9550_v17  ;;  %7216 = vmatpush3.bf16.msra.mxu1 %v7922_v36  ;;  %v7927_v17 = vld [vmem:[#allocation11 + $0x38] sm:$0xff]  }
 0x3b9   : > { %7217 = vmatprep.subr.bf16.mxu1 %v7923_v22 }
 0x3ba   : > { %5932 = vmatmul.mubr.msk.bf16.gmra.mrb[28].mxu0 %vm8504_vm6, %v10690_v16 }
 0x3bb   : > { %3898 = vmatprep.mubr.bf16.mxu0 %v10691_v38 }
 0x3bc   : > { %7218 = vmatpush3.bf16.msra.mxu1 %v7923_v22 }
 0x3bd   : > { %v6513_v44 = vpop.f32.mrb[180].mxu0  ;;  %7219 = vmatprep.subr.bf16.mxu1 %v7924_v26 }
 0x3be   : > { %v6514_v2 = vpop.f32.mrb[181].mxu0 }
 0x3bf   : > { %v10019_v20 = vadd.f32 %v6514_v2, %v6513_v44  ;;  %v6516_v61 = vpop.f32.mrb[182].mxu0  ;;  %7188 = vmatmul.mubr.msk.bf16.gmra.mrb[56].mxu1 %vm8442_vm4, %v9575_v58 }
 0x3c0   : > { %v6517_v6 = vpop.f32.mrb[183].mxu0  ;;  %7191 = vmatprep.mubr.msk.bf16.mxu1 %vm8442_vm4, %v9596_v50  ;;  %7220 = vmatpush3.bf16.msra.mxu1 %v7924_v26  ;;  %v10702_v26 = vld [vmem:[#allocation28_spill] sm:$0xff] }
 0x3c1   : > { %v10027_v43 = vadd.f32 %v6517_v6, %v6516_v61  ;;  %7221 = vmatprep.subr.bf16.mxu1 %v7925_v28 }
 0x3c2   : > { %5935 = vmatmul.mubr.msk.bf16.gmra.mrb[32].mxu0 %vm8504_vm6, %v10692_v23  ;;  %v10700_v23 = vld [vmem:[#allocation23_spill] sm:$0xff] }
 0x3c3   : > { %3906 = vmatprep.mubr.bf16.mxu0 %v10693_v54 }
 0x3c4   : > { %7222 = vmatpush3.bf16.msra.mxu1 %v7925_v28  ;;  %v10703_v28 = vld [vmem:[#allocation29_spill] sm:$0xff] }
 0x3c5   : > { %v6519_v60 = vpop.f32.mrb[184].mxu0  ;;  %7223 = vmatprep.subr.bf16.mxu1 %v7926_v0 }
 0x3c6   : > { %v6520_v13 = vpop.f32.mrb[185].mxu0 }
 0x3c7   : > { %v10033_v8 = vadd.f32 %v6520_v13, %v6519_v60  ;;  %v6522_v58 = vpop.f32.mrb[186].mxu0  ;;  %7192 = vmatmul.mubr.msk.bf16.gmra.mrb[60].mxu1 %vm8442_vm4, %v9621_v39 }
 0x3c8   : > { %v6523_v3 = vpop.f32.mrb[187].mxu0  ;;  %7195 = vmatprep.mubr.msk.bf16.mxu1 %vm8442_vm4, %v9642_v63  ;;  %7224 = vmatpush3.bf16.msra.mxu1 %v7926_v0 }
 0x3c9   : > { %v10041_v31 = vadd.f32 %v6523_v3, %v6522_v58  ;;  %7225 = vmatprep.subr.bf16.mxu1 %v7927_v17 }
 0x3ca   : > { %5938 = vmatmul.mubr.msk.bf16.gmra.mrb[36].mxu0 %vm8504_vm6, %v10694_v46  ;;  %v10701_v46 = vld [vmem:[#allocation25_spill] sm:$0xff] }
 0x3cb   : > { %3914 = vmatprep.mubr.bf16.mxu0 %v9736_v42 }
 0x3cc   : > { %7226 = vmatpush3.bf16.msra.mxu1 %v7927_v17 }
 0x3cd   : > { %v6525_v50 = vpop.f32.mrb[188].mxu0 }
 0x3ce   : > { %v6526_v41 = vpop.f32.mrb[189].mxu0 }
 0x3cf   : > { %v10047_v59 = vadd.f32 %v6526_v41, %v6525_v50  ;;  %v6528_v39 = vpop.f32.mrb[190].mxu0  ;;  %7196 = vmatmul.mubr.msk.bf16.gmra.mrb[64].mxu1 %vm8442_vm4, %v9667_v12 }
 0x3d0   : > { %v6529_v40 = vpop.f32.mrb[191].mxu0  ;;  %7199 = vmatprep.mubr.msk.bf16.mxu1 %vm8442_vm4, %v9688_v11 }
 0x3d1   : > { %v10055_v33 = vadd.f32 %v6529_v40, %v6528_v39  ;;  %v10704_v39 = vld [vmem:[#allocation30_spill] sm:$0xff] }
 0x3d2   : > { %5941 = vmatmul.mubr.msk.bf16.gmra.mrb[40].mxu0 %vm8504_vm6, %v9749_v4 }
 0x3d3   : > { %3922 = vmatprep.mubr.bf16.mxu0 %v9758_v18 }
 0x3d5   : > { %v6531_v63 = vpop.f32.mrb[192].mxu0 }
 0x3d6   : > { %v6532_v32 = vpop.f32.mrb[193].mxu0 }
 0x3d7   : > { %v10061_v42 = vadd.f32 %v6532_v32, %v6531_v63  ;;  %v6534_v48 = vpop.f32.mrb[194].mxu0  ;;  %7200 = vmatmul.mubr.msk.bf16.gmra.mrb[68].mxu1 %vm8442_vm4, %v9713_v7  ;;  %v10705_v63 = vld [vmem:[#allocation32_spill] sm:$0xff] }
 0x3d8   : > { %v6535_v12 = vpop.f32.mrb[195].mxu0  ;;  %7203 = vmatprep.mubr.msk.bf16.mxu1 %vm8442_vm4, %v9734_v55 }
 0x3d9   : > { %v10069_v11 = vadd.f32 %v6535_v12, %v6534_v48 }
 0x3da   : > { %5944 = vmatmul.mubr.msk.bf16.gmra.mrb[44].mxu0 %vm8504_vm6, %v9783_v15 }
 0x3dd   : > { %v6537_v4 = vpop.f32.mrb[196].mxu0 }
 0x3de   : > { %v6538_v18 = vpop.f32.mrb[197].mxu0 }
 0x3df   : > { %v10074_v47 = vadd.f32 %v6538_v18, %v6537_v4  ;;  %v6540_v27 = vpop.f32.mrb[198].mxu0  ;;  %7204 = vmatmul.mubr.msk.bf16.gmra.mrb[72].mxu1 %vm8442_vm4, %v9756_v19 }
 0x3e0   : > { %v6541_v7 = vpop.f32.mrb[199].mxu0  ;;  %7207 = vmatprep.mubr.msk.bf16.mxu1 %vm8442_vm4, %v9781_v34  ;;  %v10698_v34 = vld [vmem:[#allocation19_spill] sm:$0xff] }
 0x3e1   : > { %v10082_v55 = vadd.f32 %v6541_v7, %v6540_v27 }
 0x3e5   : > { %v6543_v24 = vpop.f32.mrb[200].mxu0 }
 0x3e6   : > { %v6544_v1 = vpop.f32.mrb[201].mxu0 }
 0x3e7   : > { %v10084_v14 = vadd.f32 %v6544_v1, %v6543_v24  ;;  %v6546_v15 = vpop.f32.mrb[202].mxu0  ;;  %7208 = vmatmul.mubr.bf16.gmra.mrb[76].mxu1 %v10696_v56 }
 0x3e8   : > { %v6547_v29 = vpop.f32.mrb[203].mxu0  ;;  %7227 = vmatprep.mubr.bf16.mxu1 %v10697_v30  ;;  %v10706_v30 = vld [vmem:[#allocation34_spill] sm:$0xff] }
 0x3e9   : > { %v10088_v45 = vadd.f32 %v6547_v29, %v6546_v15 }
 0x3ed   : > { %v6549_v19 = vpop.f32.mrb[204].mxu0 }
 0x3ee   : > { %v6550_v49 = vpop.f32.mrb[205].mxu0 }
 0x3ef   : > { %v10090_v35 = vadd.f32 %v6550_v49, %v6549_v19  ;;  %v6552_v51 = vpop.f32.mrb[206].mxu0  ;;  %7228 = vmatmul.mubr.bf16.vlgmr.msra.gmra.mrb[48].mxu1 %v10698_v34  ;;  %v10707_v49 = vld [vmem:[#allocation36_spill] sm:$0xff] }
 0x3f0   : > { %v6553_v10 = vpop.f32.mrb[207].mxu0  ;;  %7231 = vmatprep.mubr.bf16.mxu1 %v10699_v57 }
 0x3f1   : > { %v10094_v9 = vadd.f32 %v6553_v10, %v6552_v51 }
 0x3f5   : > { %v6555_v16 = vpop.f32.mrb[208].mxu0 }
 0x3f6   : > { %v6556_v38 = vpop.f32.mrb[209].mxu0 }
 0x3f7   : > { %v10096_v52 = vadd.f32 %v6556_v38, %v6555_v16  ;;  %v6558_v62 = vpop.f32.mrb[210].mxu0  ;;  %7232 = vmatmul.mubr.bf16.gmra.mrb[52].mxu1 %v10700_v23 }
 0x3f8   : > { %v6559_v54 = vpop.f32.mrb[211].mxu0  ;;  %7235 = vmatprep.mubr.bf16.mxu1 %v10701_v46 }
 0x3f9   : > { %v10100_v5 = vadd.f32 %v6559_v54, %v6558_v62 }
 0x3fd   : > { %v6561_v56 = vpop.f32.mrb[212].mxu0 }
 0x3fe   : > { %v6562_v37 = vpop.f32.mrb[213].mxu0 }
 0x3ff   : > { %v10102_v36 = vadd.f32 %v6562_v37, %v6561_v56  ;;  %v6564_v22 = vpop.f32.mrb[214].mxu0  ;;  %7236 = vmatmul.mubr.bf16.gmra.mrb[56].mxu1 %v10702_v26  ;;  %v10708_v37 = vld [vmem:[#allocation38_spill] sm:$0xff]  ;;  %v10709_v26 = vld [vmem:[#allocation31_spill] sm:$0xff] }
 0x400   : > { %v6565_v44 = vpop.f32.mrb[215].mxu0  ;;  %7239 = vmatprep.mubr.bf16.mxu1 %v10703_v28 }
 0x401   : > { %v10106_v2 = vadd.f32 %v6565_v44, %v6564_v22 }
 0x402   : > { %v6779_v61 = vpop.f32.mrb[80].mxu1 }
 0x403   : > { %v6780_v6 = vpop.f32.mrb[81].mxu1 }
 0x404   : > { %v10108_v0 = vadd.f32 %v6780_v6, %v6779_v61  ;;  %v6782_v60 = vpop.f32.mrb[82].mxu1 }
 0x405   : > { %v6567_v17 = vpop.f32.mrb[216].mxu0  ;;  %v6783_v13 = vpop.f32.mrb[83].mxu1 }
 0x406   : > { %v6568_v58 = vpop.f32.mrb[217].mxu0  ;;  %v10110_v3 = vadd.f32 %v6783_v13, %v6782_v60 }
 0x407   : > { %v10112_v50 = vadd.f32 %v6568_v58, %v6567_v17  ;;  %v6570_v41 = vpop.f32.mrb[218].mxu0  ;;  %7240 = vmatmul.mubr.bf16.gmra.mrb[60].mxu1 %v10704_v39 }
 0x408   : > { %v6571_v40 = vpop.f32.mrb[219].mxu0  ;;  %7243 = vmatprep.mubr.bf16.mxu1 %v10705_v63  ;;  %v10710_v63 = vld [vmem:[#allocation33_spill] sm:$0xff] }
 0x409   : > { %v10116_v32 = vadd.f32 %v6571_v40, %v6570_v41 }
 0x40a   : > { %v6785_v48 = vpop.f32.mrb[84].mxu1 }
 0x40b   : > { %v6786_v12 = vpop.f32.mrb[85].mxu1 }
 0x40c   : > { %v10118_v4 = vadd.f32 %v6786_v12, %v6785_v48  ;;  %v6788_v18 = vpop.f32.mrb[86].mxu1  ;;  %v10711_v12 = vld [vmem:[#allocation35_spill] sm:$0xff] }
 0x40d   : > { %v6573_v27 = vpop.f32.mrb[220].mxu0  ;;  %v6789_v7 = vpop.f32.mrb[87].mxu1 }
 0x40e   : > { %v6574_v24 = vpop.f32.mrb[221].mxu0  ;;  %v10120_v1 = vadd.f32 %v6789_v7, %v6788_v18 }
 0x40f   : > { %v10122_v15 = vadd.f32 %v6574_v24, %v6573_v27  ;;  %v6576_v29 = vpop.f32.mrb[222].mxu0  ;;  %7244 = vmatmul.mubr.bf16.gmra.mrb[64].mxu1 %v10706_v30 }
 0x410   : > { %v6577_v19 = vpop.f32.mrb[223].mxu0  ;;  %7247 = vmatprep.mubr.bf16.mxu1 %v10707_v49 }
 0x411   : > { %v10126_v51 = vadd.f32 %v6577_v19, %v6576_v29 }
 0x412   : > { %v6791_v34 = vpop.f32.mrb[88].mxu1 }
 0x413   : > { %v6792_v10 = vpop.f32.mrb[89].mxu1 }
 0x414   : > { %v10128_v57 = vadd.f32 %v6792_v10, %v6791_v34  ;;  %v6794_v16 = vpop.f32.mrb[90].mxu1 }
 0x415   : > { %v6579_v38 = vpop.f32.mrb[224].mxu0  ;;  %v6795_v62 = vpop.f32.mrb[91].mxu1 }
 0x416   : > { %v6580_v23 = vpop.f32.mrb[225].mxu0  ;;  %v10130_v54 = vadd.f32 %v6795_v62, %v6794_v16 }
 0x417   : > { %v10132_v46 = vadd.f32 %v6580_v23, %v6579_v38  ;;  %v6582_v56 = vpop.f32.mrb[226].mxu0  ;;  %7248 = vmatmul.mubr.bf16.gmra.mrb[68].mxu1 %v10708_v37  ;;  %v10712_v38 = vld [vmem:[#allocation37_spill] sm:$0xff] }
 0x418   : > { %v6583_v22 = vpop.f32.mrb[227].mxu0  ;;  %7251 = vmatprep.mubr.bf16.mxu1 %v10709_v26 }
 0x419   : > { %v10136_v44 = vadd.f32 %v6583_v22, %v6582_v56 }
 0x41a   : > { %v6797_v28 = vpop.f32.mrb[92].mxu1 }
 0x41b   : > { %v6798_v61 = vpop.f32.mrb[93].mxu1 }
 0x41c   : > { %v10138_v6 = vadd.f32 %v6798_v61, %v6797_v28  ;;  %v6800_v60 = vpop.f32.mrb[94].mxu1 }
 0x41d   : > { %v6585_v17 = vpop.f32.mrb[228].mxu0  ;;  %v6801_v13 = vpop.f32.mrb[95].mxu1 }
 0x41e   : > { %v6586_v58 = vpop.f32.mrb[229].mxu0  ;;  %v10140_v41 = vadd.f32 %v6801_v13, %v6800_v60 }
 0x41f   : > { %v10142_v39 = vadd.f32 %v6586_v58, %v6585_v17  ;;  %v6588_v40 = vpop.f32.mrb[230].mxu0  ;;  %7252 = vmatmul.mubr.bf16.gmra.mrb[72].mxu1 %v10710_v63 }
 0x420   : > { %v6589_v48 = vpop.f32.mrb[231].mxu0  ;;  %7255 = vmatprep.mubr.bf16.mxu1 %v10711_v12 }
 0x421   : > { %v10146_v18 = vadd.f32 %v6589_v48, %v6588_v40 }
 0x422   : > { %v6803_v27 = vpop.f32.mrb[96].mxu1 }
 0x423   : > { %v6804_v7 = vpop.f32.mrb[97].mxu1 }
 0x424   : > { %v10148_v24 = vadd.f32 %v6804_v7, %v6803_v27  ;;  %v6806_v29 = vpop.f32.mrb[98].mxu1 }
 0x425   : > { %v6591_v30 = vpop.f32.mrb[232].mxu0  ;;  %v6807_v19 = vpop.f32.mrb[99].mxu1 }
 0x426   : > { %v6592_v49 = vpop.f32.mrb[233].mxu0  ;;  %v10150_v34 = vadd.f32 %v6807_v19, %v6806_v29 }
 0x427   : > { %v10152_v10 = vadd.f32 %v6592_v49, %v6591_v30  ;;  %v6594_v16 = vpop.f32.mrb[234].mxu0  ;;  %7256 = vmatmul.mubr.bf16.gmra.mrb[76].mxu1 %v10712_v38 }
 0x428   : > { %v6595_v62 = vpop.f32.mrb[235].mxu0 }
 0x429   : > { %v10155_v23 = vadd.f32 %v6595_v62, %v6594_v16 }
 0x42a   : > { %v6809_v56 = vpop.f32.mrb[100].mxu1 }
 0x42b   : > { %v6810_v37 = vpop.f32.mrb[101].mxu1 }
 0x42c   : > { %v10157_v22 = vadd.f32 %v6810_v37, %v6809_v56  ;;  %v6812_v26 = vpop.f32.mrb[102].mxu1 }
 0x42d   : > { %v6597_v28 = vpop.f32.mrb[236].mxu0  ;;  %v6813_v61 = vpop.f32.mrb[103].mxu1 }
 0x42e   : > { %v6598_v60 = vpop.f32.mrb[237].mxu0  ;;  %v10159_v17 = vadd.f32 %v6813_v61, %v6812_v26 }
 0x42f   : > { %v10161_v13 = vadd.f32 %v6598_v60, %v6597_v28  ;;  %v6600_v58 = vpop.f32.mrb[238].mxu0 }
 0x430   : > { %v6601_v40 = vpop.f32.mrb[239].mxu0 }
 0x431   : > { %v10163_v63 = vadd.f32 %v6601_v40, %v6600_v58 }
 0x432   : > { %v6815_v48 = vpop.f32.mrb[104].mxu1 }
 0x433   : > { %v6816_v12 = vpop.f32.mrb[105].mxu1 }
 0x434   : > { %v10165_v27 = vadd.f32 %v6816_v12, %v6815_v48  ;;  %v6818_v7 = vpop.f32.mrb[106].mxu1 }
 0x435   : > { %v6643_v29 = vpop.f32.mrb[240].mxu0  ;;  %v6819_v30 = vpop.f32.mrb[107].mxu1 }
 0x436   : > { %v6644_v19 = vpop.f32.mrb[241].mxu0  ;;  %v10167_v49 = vadd.f32 %v6819_v30, %v6818_v7 }
 0x437   : > { %v6645_v16 = vadd.f32 %v6644_v19, %v6643_v29  ;;  %v6646_v38 = vpop.f32.mrb[242].mxu0 }
 0x438   : > { %v6647_v62 = vpop.f32.mrb[243].mxu0 }
 0x439   : > { %v7376_v56 = vadd.f32 %v6645_v16, %v9879_v25  ;;  %v6648_v37 = vadd.f32 %v6647_v62, %v6646_v38 }
 0x43a   : > { %v6821_v26 = vpop.f32.mrb[108].mxu1 }
 0x43b   : > { %v7386_v28 = vadd.f32 %v6648_v37, %v9885_v53  ;;  %v6822_v61 = vpop.f32.mrb[109].mxu1  ;;  %v10172_v60 = vadd.f32 %v7376_v56, %v10108_v0 }
 0x43c   : > { %v10174_v58 = vadd.f32 %v6822_v61, %v6821_v26  ;;  %v6824_v40 = vpop.f32.mrb[110].mxu1 }
 0x43d   : > { %v6649_v48 = vpop.f32.mrb[244].mxu0  ;;  %v6825_v12 = vpop.f32.mrb[111].mxu1  ;;  %v10177_v7 = vadd.f32 %v7386_v28, %v10110_v3 }
 0x43e   : > { %v6650_v29 = vpop.f32.mrb[245].mxu0  ;;  %v10179_v30 = vadd.f32 %v6825_v12, %v6824_v40 }
 0x43f   : > { %v6651_v25 = vadd.f32 %v6650_v29, %v6649_v48  ;;  %v6652_v19 = vpop.f32.mrb[246].mxu0 }
 0x440   : > { %v6653_v16 = vpop.f32.mrb[247].mxu0 }
 0x441   : > { %v7371_v53 = vadd.f32 %v6651_v25, %v10019_v20  ;;  %v6654_v38 = vadd.f32 %v6653_v16, %v6652_v19 }
 0x442   : > { %v6827_v62 = vpop.f32.mrb[112].mxu1 }
 0x443   : > { %v7381_v0 = vadd.f32 %v6654_v38, %v10027_v43  ;;  %v6828_v56 = vpop.f32.mrb[113].mxu1  ;;  %v10184_v37 = vadd.f32 %v7371_v53, %v10118_v4 }
 0x444   : > { %v10186_v26 = vadd.f32 %v6828_v56, %v6827_v62  ;;  %v6830_v3 = vpop.f32.mrb[114].mxu1 }
 0x445   : > { %v6655_v28 = vpop.f32.mrb[248].mxu0  ;;  %v6831_v61 = vpop.f32.mrb[115].mxu1  ;;  %v10189_v40 = vadd.f32 %v7381_v0, %v10120_v1 }
 0x446   : > { %v6656_v48 = vpop.f32.mrb[249].mxu0  ;;  %v10191_v12 = vadd.f32 %v6831_v61, %v6830_v3 }
 0x447   : > { %v6657_v20 = vadd.f32 %v6656_v48, %v6655_v28  ;;  %v6658_v29 = vpop.f32.mrb[250].mxu0 }
 0x448   : > { %v6659_v25 = vpop.f32.mrb[251].mxu0 }
 0x449   : > { %v7396_v43 = vadd.f32 %v6657_v20, %v10033_v8  ;;  %v6660_v19 = vadd.f32 %v6659_v25, %v6658_v29 }
 0x44a   : > { %v6833_v16 = vpop.f32.mrb[116].mxu1 }
 0x44b   : > { %v7406_v4 = vadd.f32 %v6660_v19, %v10041_v31  ;;  %v6834_v53 = vpop.f32.mrb[117].mxu1  ;;  %v10196_v38 = vadd.f32 %v7396_v43, %v10128_v57 }
 0x44c   : > { %v10198_v62 = vadd.f32 %v6834_v53, %v6833_v16  ;;  %v6836_v1 = vpop.f32.mrb[118].mxu1 }
 0x44d   : > { %v6661_v0 = vpop.f32.mrb[252].mxu0  ;;  %v6837_v56 = vpop.f32.mrb[119].mxu1  ;;  %v10201_v3 = vadd.f32 %v7406_v4, %v10130_v54 }
 0x44e   : > { %v6662_v28 = vpop.f32.mrb[253].mxu0  ;;  %v10203_v61 = vadd.f32 %v6837_v56, %v6836_v1 }
 0x44f   : > { %v6663_v8 = vadd.f32 %v6662_v28, %v6661_v0  ;;  %v6664_v48 = vpop.f32.mrb[254].mxu0 }
 0x450   : > { %v6665_v20 = vpop.f32.mrb[255].mxu0 }
 0x451   : > { %v7391_v31 = vadd.f32 %v6663_v8, %v10047_v59  ;;  %v6666_v29 = vadd.f32 %v6665_v20, %v6664_v48 }
 0x452   : > { %v6839_v25 = vpop.f32.mrb[120].mxu1 }
 0x453   : > { %v7401_v57 = vadd.f32 %v6666_v29, %v10055_v33  ;;  %v6840_v43 = vpop.f32.mrb[121].mxu1  ;;  %v10208_v19 = vadd.f32 %v7391_v31, %v10138_v6 }
 0x454   : > { %v10210_v16 = vadd.f32 %v6840_v43, %v6839_v25  ;;  %v6842_v54 = vpop.f32.mrb[122].mxu1 }
 0x455   : > { %v6667_v4 = vpop.f32.mrb[0].mxu0  ;;  %v6843_v53 = vpop.f32.mrb[123].mxu1  ;;  %v10213_v1 = vadd.f32 %v7401_v57, %v10140_v41 }
 0x456   : > { %v6668_v0 = vpop.f32.mrb[1].mxu0  ;;  %v10215_v56 = vadd.f32 %v6843_v53, %v6842_v54 }
 0x457   : > { %v6669_v59 = vadd.f32 %v6668_v0, %v6667_v4  ;;  %v6670_v28 = vpop.f32.mrb[2].mxu0 }
 0x458   : > { %v6671_v8 = vpop.f32.mrb[3].mxu0 }
 0x459   : > { %v7416_v33 = vadd.f32 %v6669_v59, %v10061_v42  ;;  %v6672_v48 = vadd.f32 %v6671_v8, %v6670_v28 }
 0x45a   : > { %v6845_v20 = vpop.f32.mrb[124].mxu1 }
 0x45b   : > { %v7426_v6 = vadd.f32 %v6672_v48, %v10069_v11  ;;  %v6846_v31 = vpop.f32.mrb[125].mxu1  ;;  %v10220_v29 = vadd.f32 %v7416_v33, %v10148_v24 }
 0x45c   : > { %v10222_v25 = vadd.f32 %v6846_v31, %v6845_v20  ;;  %v6848_v41 = vpop.f32.mrb[126].mxu1 }
 0x45d   : > { %v6673_v57 = vpop.f32.mrb[4].mxu0  ;;  %v6849_v43 = vpop.f32.mrb[127].mxu1  ;;  %v10225_v54 = vadd.f32 %v7426_v6, %v10150_v34 }
 0x45e   : > { %v6674_v4 = vpop.f32.mrb[5].mxu0  ;;  %v10227_v53 = vadd.f32 %v6849_v43, %v6848_v41 }
 0x45f   : > { %v6675_v42 = vadd.f32 %v6674_v4, %v6673_v57  ;;  %v6676_v0 = vpop.f32.mrb[6].mxu0 }
 0x460   : > { %v6677_v59 = vpop.f32.mrb[7].mxu0 }
 0x461   : > { %v7411_v11 = vadd.f32 %v6675_v42, %v10074_v47  ;;  %v6678_v28 = vadd.f32 %v6677_v59, %v6676_v0 }
 0x462   : > { %v6851_v8 = vpop.f32.mrb[128].mxu1 }
 0x463   : > { %v7421_v24 = vadd.f32 %v6678_v28, %v10082_v55  ;;  %v6852_v33 = vpop.f32.mrb[129].mxu1  ;;  %v10232_v48 = vadd.f32 %v7411_v11, %v10157_v22 }
 0x464   : > { %v10234_v20 = vadd.f32 %v6852_v33, %v6851_v8  ;;  %v6854_v34 = vpop.f32.mrb[130].mxu1 }
 0x465   : > { %v6679_v6 = vpop.f32.mrb[8].mxu0  ;;  %v6855_v31 = vpop.f32.mrb[131].mxu1  ;;  %v10237_v41 = vadd.f32 %v7421_v24, %v10159_v17 }
 0x466   : > { %v6680_v57 = vpop.f32.mrb[9].mxu0  ;;  %v10239_v43 = vadd.f32 %v6855_v31, %v6854_v34 }
 0x467   : > { %v6681_v47 = vadd.f32 %v6680_v57, %v6679_v6  ;;  %v6682_v4 = vpop.f32.mrb[10].mxu0 }
 0x468   : > { %v6683_v42 = vpop.f32.mrb[11].mxu0 }
 0x469   : > { %v7436_v55 = vadd.f32 %v6681_v47, %v10084_v14  ;;  %v6684_v0 = vadd.f32 %v6683_v42, %v6682_v4 }
 0x46a   : > { %v6857_v59 = vpop.f32.mrb[132].mxu1 }
 0x46b   : > { %v7446_v22 = vadd.f32 %v6684_v0, %v10088_v45  ;;  %v6858_v11 = vpop.f32.mrb[133].mxu1  ;;  %v10244_v28 = vadd.f32 %v7436_v55, %v10165_v27 }
 0x46c   : > { %v10246_v8 = vadd.f32 %v6858_v11, %v6857_v59  ;;  %v6860_v17 = vpop.f32.mrb[134].mxu1 }
 0x46d   : > { %v6685_v24 = vpop.f32.mrb[12].mxu0  ;;  %v6861_v33 = vpop.f32.mrb[135].mxu1  ;;  %v10249_v34 = vadd.f32 %v7446_v22, %v10167_v49 }
 0x46e   : > { %v6686_v6 = vpop.f32.mrb[13].mxu0  ;;  %v10251_v31 = vadd.f32 %v6861_v33, %v6860_v17 }
 0x46f   : > { %v6687_v14 = vadd.f32 %v6686_v6, %v6685_v24  ;;  %v6688_v57 = vpop.f32.mrb[14].mxu0 }
 0x470   : > { %v6689_v47 = vpop.f32.mrb[15].mxu0 }
 0x471   : > { %v7431_v45 = vadd.f32 %v6687_v14, %v10090_v35  ;;  %v6690_v4 = vadd.f32 %v6689_v47, %v6688_v57 }
 0x472   : > { %v6863_v42 = vpop.f32.mrb[136].mxu1 }
 0x473   : > { %v7441_v27 = vadd.f32 %v6690_v4, %v10094_v9  ;;  %v6864_v55 = vpop.f32.mrb[137].mxu1  ;;  %v10256_v0 = vadd.f32 %v7431_v45, %v10174_v58 }
 0x474   : > { %v10258_v59 = vadd.f32 %v6864_v55, %v6863_v42  ;;  %v6866_v49 = vpop.f32.mrb[138].mxu1 }
 0x475   : > { %v6691_v22 = vpop.f32.mrb[16].mxu0  ;;  %v6867_v11 = vpop.f32.mrb[139].mxu1  ;;  %v10261_v17 = vadd.f32 %v7441_v27, %v10179_v30 }
 0x476   : > { %v6692_v24 = vpop.f32.mrb[17].mxu0  ;;  %v10263_v33 = vadd.f32 %v6867_v11, %v6866_v49 }
 0x477   : > { %v6693_v35 = vadd.f32 %v6692_v24, %v6691_v22  ;;  %v6694_v6 = vpop.f32.mrb[18].mxu0 }
 0x478   : > { %v6695_v14 = vpop.f32.mrb[19].mxu0 }
 0x479   : > { %v7456_v9 = vadd.f32 %v6693_v35, %v10096_v52  ;;  %v6696_v57 = vadd.f32 %v6695_v14, %v6694_v6 }
 0x47a   : > { %v6869_v47 = vpop.f32.mrb[140].mxu1 }
 0x47b   : > { %v7466_v58 = vadd.f32 %v6696_v57, %v10100_v5  ;;  %v6870_v45 = vpop.f32.mrb[141].mxu1  ;;  %v10268_v4 = vadd.f32 %v7456_v9, %v10186_v26 }
 0x47c   : > { %v10270_v42 = vadd.f32 %v6870_v45, %v6869_v47  ;;  %v6872_v30 = vpop.f32.mrb[142].mxu1 }
 0x47d   : > { %v6697_v27 = vpop.f32.mrb[20].mxu0  ;;  %v6873_v55 = vpop.f32.mrb[143].mxu1  ;;  %v10273_v49 = vadd.f32 %v7466_v58, %v10191_v12 }
 0x47e   : > { %v6698_v22 = vpop.f32.mrb[21].mxu0  ;;  %v10275_v11 = vadd.f32 %v6873_v55, %v6872_v30 }
 0x47f   : > { %v6699_v52 = vadd.f32 %v6698_v22, %v6697_v27  ;;  %v6700_v24 = vpop.f32.mrb[22].mxu0 }
 0x480   : > { %v6701_v35 = vpop.f32.mrb[23].mxu0 }
 0x481   : > { %v7451_v5 = vadd.f32 %v6699_v52, %v10102_v36  ;;  %v6702_v6 = vadd.f32 %v6701_v35, %v6700_v24 }
 0x483   : > { %v7461_v26 = vadd.f32 %v6702_v6, %v10106_v2  ;;  %v10280_v14 = vadd.f32 %v7451_v5, %v10198_v62 }
 0x485   : > { %v6703_v9 = vpop.f32.mrb[24].mxu0  ;;  %v10283_v57 = vadd.f32 %v7461_v26, %v10203_v61 }
 0x486   : > { %v6704_v12 = vpop.f32.mrb[25].mxu0 }
 0x487   : > { %v6705_v47 = vadd.f32 %v6704_v12, %v6703_v9  ;;  %v6706_v58 = vpop.f32.mrb[26].mxu0 }
 0x488   : > { %v6707_v45 = vpop.f32.mrb[27].mxu0 }
 0x489   : > { %v7476_v30 = vadd.f32 %v6705_v47, %v10112_v50  ;;  %v6708_v27 = vadd.f32 %v6707_v45, %v6706_v58 }
 0x48b   : > { %v7486_v55 = vadd.f32 %v6708_v27, %v10116_v32  ;;  %v10288_v36 = vadd.f32 %v7476_v30, %v10210_v16 }
 0x48d   : > { %v6709_v2 = vpop.f32.mrb[28].mxu0  ;;  %v10291_v62 = vadd.f32 %v7486_v55, %v10215_v56 }
 0x48e   : > { %v6710_v22 = vpop.f32.mrb[29].mxu0 }
 0x48f   : > { %v6711_v52 = vadd.f32 %v6710_v22, %v6709_v2  ;;  %v6712_v61 = vpop.f32.mrb[30].mxu0 }
 0x490   : > { %v6713_v24 = vpop.f32.mrb[31].mxu0 }
 0x491   : > { %v7471_v35 = vadd.f32 %v6711_v52, %v10122_v15  ;;  %v6714_v5 = vadd.f32 %v6713_v24, %v6712_v61 }
 0x493   : > { %v7481_v6 = vadd.f32 %v6714_v5, %v10126_v51  ;;  %v10296_v50 = vadd.f32 %v7471_v35, %v10222_v25 }
 0x495   : > { %v6715_v32 = vpop.f32.mrb[32].mxu0  ;;  %v10299_v16 = vadd.f32 %v7481_v6, %v10227_v53 }
 0x496   : > { %v6716_v26 = vpop.f32.mrb[33].mxu0 }
 0x497   : > { %v6717_v9 = vadd.f32 %v6716_v26, %v6715_v32  ;;  %v6718_v56 = vpop.f32.mrb[34].mxu0 }
 0x498   : > { %v6719_v12 = vpop.f32.mrb[35].mxu0 }
 0x499   : > { %v7496_v47 = vadd.f32 %v6717_v9, %v10132_v46  ;;  %v6720_v58 = vadd.f32 %v6719_v12, %v6718_v56 }
 0x49b   : > { %v7506_v45 = vadd.f32 %v6720_v58, %v10136_v44  ;;  %v10304_v15 = vadd.f32 %v7496_v47, %v10234_v20 }
 0x49d   : > { %v6721_v51 = vpop.f32.mrb[36].mxu0  ;;  %v10307_v25 = vadd.f32 %v7506_v45, %v10239_v43  ;;  %v7928_v45 = vld [vmem:[%s10529_s4] sm:$0x7] }
 0x49e   : > { %v6722_v30 = vpop.f32.mrb[37].mxu0 }
 0x49f   : > { %v6723_v27 = vadd.f32 %v6722_v30, %v6721_v51  ;;  %v6724_v53 = vpop.f32.mrb[38].mxu0 }
 0x4a0   : > { %v6725_v55 = vpop.f32.mrb[39].mxu0 }
 0x4a1   : > { %v7491_v2 = vadd.f32 %v6723_v27, %v10142_v39  ;;  %v6726_v22 = vadd.f32 %v6725_v55, %v6724_v53 }
 0x4a3   : > { %v7501_v52 = vadd.f32 %v6726_v22, %v10146_v18  ;;  %v10312_v46 = vadd.f32 %v7491_v2, %v10246_v8 }
 0x4a5   : > { %v6727_v44 = vpop.f32.mrb[40].mxu0  ;;  %v10315_v20 = vadd.f32 %v7501_v52, %v10251_v31 }
 0x4a6   : > { %v6728_v61 = vpop.f32.mrb[41].mxu0 }
 0x4a7   : > { %v6729_v24 = vadd.f32 %v6728_v61, %v6727_v44  ;;  %v6730_v43 = vpop.f32.mrb[42].mxu0 }
 0x4a8   : > { %v6731_v35 = vpop.f32.mrb[43].mxu0 }
 0x4a9   : > { %v7516_v5 = vadd.f32 %v6729_v24, %v10152_v10  ;;  %v6732_v6 = vadd.f32 %v6731_v35, %v6730_v43 }
 0x4ab   : > { %v7526_v32 = vadd.f32 %v6732_v6, %v10155_v23  ;;  %v10320_v39 = vadd.f32 %v7516_v5, %v10258_v59  ;;  %v4866_v59 = vsub.s32 2, %v8386_v21 }
 0x4ad   : > { %v6733_v18 = vpop.f32.mrb[44].mxu0  ;;  %v10323_v8 = vadd.f32 %v7526_v32, %v10263_v33  ;;  %v5111_v33 = vsub.s32 1, %v8386_v21  ;;  %v10338_v51 = vrot.slane %v7928_v45, %v4866_v59 }
 0x4ae   : > { %v6734_v26 = vpop.f32.mrb[45].mxu0 }
 0x4af   : > { %v6735_v9 = vadd.f32 %v6734_v26, %v6733_v18  ;;  %v6736_v31 = vpop.f32.mrb[46].mxu0  ;;  %v7383_v21 = vadd.f32 %v10189_v40, %v10338_v51  ;;  %v7388_v2 = vadd.f32 %v10177_v7, %v10338_v51  ;;  %v7393_v40 = vadd.f32 %v10208_v19, %v10338_v51 }
 0x4b0   : > { %v6737_v56 = vpop.f32.mrb[47].mxu0  ;;  %v7398_v32 = vadd.f32 %v10196_v38, %v10338_v51  ;;  %v7408_v19 = vadd.f32 %v10201_v3, %v10338_v51  ;;  %v7413_v3 = vadd.f32 %v10232_v48, %v10338_v51  ;;  %v7428_v48 = vadd.f32 %v10225_v54, %v10338_v51 }
 0x4b1   : > { %v7511_v12 = vadd.f32 %v6735_v9, %v10161_v13  ;;  %v6738_v47 = vadd.f32 %v6737_v56, %v6736_v31  ;;  %v10340_v13 = vrot.slane %v7928_v45, %v5111_v33  ;;  %v7403_v9 = vadd.f32 %v10213_v1, %v10338_v51 }
 0x4b2   : > { %v7433_v54 = vadd.f32 %v10256_v0, %v10338_v51  ;;  %v7448_v0 = vadd.f32 %v10249_v34, %v10338_v51  ;;  %v7453_v34 = vadd.f32 %v10280_v14, %v10338_v51  ;;  %v7468_v14 = vadd.f32 %v10273_v49, %v10338_v51 }
 0x4b3   : > { %v7521_v58 = vadd.f32 %v6738_v47, %v10163_v63  ;;  %v10328_v10 = vadd.f32 %v7511_v12, %v10270_v42  ;;  %v7373_v63 = vadd.f32 %v10184_v37, %v10338_v51  ;;  %v7473_v49 = vadd.f32 %v10296_v50, %v10338_v51 }
 0x4b4   : > { %v7488_v50 = vadd.f32 %v10291_v62, %v10338_v51  ;;  %v7493_v62 = vadd.f32 %v10312_v46, %v10338_v51  ;;  %v7508_v46 = vadd.f32 %v10307_v25, %v10338_v51 }
 0x4b5   : > { %v10331_v23 = vadd.f32 %v7521_v58, %v10275_v11  ;;  %v7378_v11 = vadd.f32 %v10172_v60, %v10338_v51  ;;  %v7513_v25 = vadd.f32 %v10328_v10, %v10338_v51  ;;  %v7528_v10 = vadd.f32 %v10323_v8, %v10338_v51 }
 0x4c2   : > { %v7229_v42 = vpop.f32.mrb[48].mxu1 }
 0x4c3   : > { %v7374_v30 = vadd.f32 %v7373_v63, %v7229_v42  ;;  %v4950_v27 = vpop.f32.mrb[49].mxu1 }
 0x4c4   : > { %v7379_v53 = vadd.f32 %v7378_v11, %v4950_v27  ;;  %v7230_v55 = vpop.f32.mrb[50].mxu1  ;;  %v7418_v27 = vadd.f32 %v10220_v29, %v10338_v51 }
 0x4c5   : > { %v7375_v22 = vadd.f32 %v7374_v30, %v10340_v13  ;;  %v7384_v52 = vadd.f32 %v7383_v21, %v7230_v55  ;;  %v4953_v44 = vpop.f32.mrb[51].mxu1  ;;  %v7423_v55 = vadd.f32 %v10237_v41, %v10338_v51 }
 0x4c6   : > { %v7380_v37 = vadd.f32 %v7379_v53, %v10340_v13  ;;  %v7389_v61 = vadd.f32 %v7388_v2, %v4953_v44 }
 0x4c7   : > { %v5179_v24 = vmax.f32 %v7375_v22, 0.0  ;;  %v7385_v60 = vadd.f32 %v7384_v52, %v10340_v13 }
 0x4c8   : > { %v5177_v43 = vmax.f32 %v7380_v37, 0.0  ;;  %v7390_v35 = vadd.f32 %v7389_v61, %v10340_v13 }
 0x4c9   : > { %5211 = vst [vmem:[%s10356_s15 + $0x10] sm:$0xff] %v5179_v24  ;;  %v5180_v7 = vmax.f32 %v7385_v60, 0.0 }
 0x4ca   : > { %5209 = vst [vmem:[%s10356_s15] sm:$0xff] %v5177_v43  ;;  %v5178_v5 = vmax.f32 %v7390_v35, 0.0  ;;  %v7233_v6 = vpop.f32.mrb[52].mxu1 }
 0x4cb   : > { %5212 = vst [vmem:[%s10356_s15 + $0x18] sm:$0xff] %v5180_v7  ;;  %v7394_v18 = vadd.f32 %v7393_v40, %v7233_v6  ;;  %v4966_v26 = vpop.f32.mrb[53].mxu1 }
 0x4cc   : > { %5210 = vst [vmem:[%s10356_s15 + $0x8] sm:$0xff] %v5178_v5  ;;  %v7399_v31 = vadd.f32 %v7398_v32, %v4966_v26  ;;  %v7234_v56 = vpop.f32.mrb[54].mxu1  ;;  %v7438_v5 = vadd.f32 %v10244_v28, %v10338_v51 }
 0x4cd   : > { %v7395_v12 = vadd.f32 %v7394_v18, %v10340_v13  ;;  %v7404_v47 = vadd.f32 %v7403_v9, %v7234_v56  ;;  %v4969_v58 = vpop.f32.mrb[55].mxu1  ;;  %v7443_v18 = vadd.f32 %v10261_v17, %v10338_v51 }
 0x4ce   : > { %v7400_v38 = vadd.f32 %v7399_v31, %v10340_v13  ;;  %v7409_v59 = vadd.f32 %v7408_v19, %v4969_v58 }
 0x4cf   : > { %v5183_v33 = vmax.f32 %v7395_v12, 0.0  ;;  %v7405_v45 = vadd.f32 %v7404_v47, %v10340_v13 }
 0x4d0   : > { %v5181_v1 = vmax.f32 %v7400_v38, 0.0  ;;  %v7410_v63 = vadd.f32 %v7409_v59, %v10340_v13 }
 0x4d1   : > { %5215 = vst [vmem:[%s10356_s15 + $0x30] sm:$0xff] %v5183_v33  ;;  %v5184_v42 = vmax.f32 %v7405_v45, 0.0 }
 0x4d2   : > { %5213 = vst [vmem:[%s10356_s15 + $0x20] sm:$0xff] %v5181_v1  ;;  %v5182_v11 = vmax.f32 %v7410_v63, 0.0  ;;  %v7237_v30 = vpop.f32.mrb[56].mxu1  ;;  %v7458_v1 = vadd.f32 %v10268_v4, %v10338_v51 }
 0x4d3   : > { %5216 = vst [vmem:[%s10356_s15 + $0x38] sm:$0xff] %v5184_v42  ;;  %v7414_v21 = vadd.f32 %v7413_v3, %v7237_v30  ;;  %v4982_v53 = vpop.f32.mrb[57].mxu1  ;;  %v7463_v3 = vadd.f32 %v10283_v57, %v10338_v51 }
 0x4d4   : > { %5214 = vst [vmem:[%s10356_s15 + $0x28] sm:$0xff] %v5182_v11  ;;  %v7419_v2 = vadd.f32 %v7418_v27, %v4982_v53  ;;  %v7238_v22 = vpop.f32.mrb[58].mxu1 }
 0x4d5   : > { %v7415_v52 = vadd.f32 %v7414_v21, %v10340_v13  ;;  %v7424_v44 = vadd.f32 %v7423_v55, %v7238_v22  ;;  %v4985_v37 = vpop.f32.mrb[59].mxu1 }
 0x4d6   : > { %v7420_v29 = vadd.f32 %v7419_v2, %v10340_v13  ;;  %v7429_v61 = vadd.f32 %v7428_v48, %v4985_v37 }
 0x4d7   : > { %v5187_v24 = vmax.f32 %v7415_v52, 0.0  ;;  %v7425_v60 = vadd.f32 %v7424_v44, %v10340_v13 }
 0x4d8   : > { %v5185_v41 = vmax.f32 %v7420_v29, 0.0  ;;  %v7430_v43 = vadd.f32 %v7429_v61, %v10340_v13  ;;  %v7478_v29 = vadd.f32 %v10288_v36, %v10338_v51 }
 0x4d9   : > { %5219 = vst [vmem:[%s10356_s15 + $0x50] sm:$0xff] %v5187_v24  ;;  %v5188_v35 = vmax.f32 %v7425_v60, 0.0  ;;  %v7483_v60 = vadd.f32 %v10299_v16, %v10338_v51 }
 0x4da   : > { %5217 = vst [vmem:[%s10356_s15 + $0x40] sm:$0xff] %v5185_v41  ;;  %v5186_v7 = vmax.f32 %v7430_v43, 0.0  ;;  %v7241_v40 = vpop.f32.mrb[60].mxu1 }
 0x4db   : > { %5220 = vst [vmem:[%s10356_s15 + $0x58] sm:$0xff] %v5188_v35  ;;  %v7434_v6 = vadd.f32 %v7433_v54, %v7241_v40  ;;  %v4998_v32 = vpop.f32.mrb[61].mxu1 }
 0x4dc   : > { %5218 = vst [vmem:[%s10356_s15 + $0x48] sm:$0xff] %v5186_v7  ;;  %v7439_v26 = vadd.f32 %v7438_v5, %v4998_v32  ;;  %v7242_v9 = vpop.f32.mrb[62].mxu1 }
 0x4dd   : > { %v7435_v31 = vadd.f32 %v7434_v6, %v10340_v13  ;;  %v7444_v56 = vadd.f32 %v7443_v18, %v7242_v9  ;;  %v5001_v19 = vpop.f32.mrb[63].mxu1 }
 0x4de   : > { %v7440_v28 = vadd.f32 %v7439_v26, %v10340_v13  ;;  %v7449_v12 = vadd.f32 %v7448_v0, %v5001_v19  ;;  %v7498_v0 = vadd.f32 %v10304_v15, %v10338_v51  ;;  %v7503_v19 = vadd.f32 %v10315_v20, %v10338_v51 }
 0x4df   : > { %v5191_v47 = vmax.f32 %v7435_v31, 0.0  ;;  %v7445_v58 = vadd.f32 %v7444_v56, %v10340_v13 }
 0x4e0   : > { %v5189_v17 = vmax.f32 %v7440_v28, 0.0  ;;  %v7450_v38 = vadd.f32 %v7449_v12, %v10340_v13 }
 0x4e1   : > { %5223 = vst [vmem:[%s10356_s15 + $0x70] sm:$0xff] %v5191_v47  ;;  %v5192_v59 = vmax.f32 %v7445_v58, 0.0 }
 0x4e2   : > { %5221 = vst [vmem:[%s10356_s15 + $0x60] sm:$0xff] %v5189_v17  ;;  %v5190_v33 = vmax.f32 %v7450_v38, 0.0  ;;  %v7245_v45 = vpop.f32.mrb[64].mxu1 }
 0x4e3   : > { %5224 = vst [vmem:[%s10356_s15 + $0x78] sm:$0xff] %v5192_v59  ;;  %v7454_v63 = vadd.f32 %v7453_v34, %v7245_v45  ;;  %v5014_v42 = vpop.f32.mrb[65].mxu1 }
 0x4e4   : > { %5222 = vst [vmem:[%s10356_s15 + $0x68] sm:$0xff] %v5190_v33  ;;  %v7459_v11 = vadd.f32 %v7458_v1, %v5014_v42  ;;  %v7246_v30 = vpop.f32.mrb[66].mxu1  ;;  %v7518_v42 = vadd.f32 %v10320_v39, %v10338_v51 }
 0x4e5   : > { %v7455_v27 = vadd.f32 %v7454_v63, %v10340_v13  ;;  %v7464_v21 = vadd.f32 %v7463_v3, %v7246_v30  ;;  %v5017_v53 = vpop.f32.mrb[67].mxu1  ;;  %v7523_v30 = vadd.f32 %v10331_v23, %v10338_v51 }
 0x4e6   : > { %v7460_v4 = vadd.f32 %v7459_v11, %v10340_v13  ;;  %v7469_v55 = vadd.f32 %v7468_v14, %v5017_v53 }
 0x4e7   : > { %v5195_v2 = vmax.f32 %v7455_v27, 0.0  ;;  %v7465_v22 = vadd.f32 %v7464_v21, %v10340_v13 }
 0x4e8   : > { %v5193_v57 = vmax.f32 %v7460_v4, 0.0  ;;  %v7470_v48 = vadd.f32 %v7469_v55, %v10340_v13 }
 0x4e9   : > { %5227 = vst [vmem:[%s10356_s15 + $0x90] sm:$0xff] %v5195_v2  ;;  %v5196_v52 = vmax.f32 %v7465_v22, 0.0 }
 0x4ea   : > { %5225 = vst [vmem:[%s10356_s15 + $0x80] sm:$0xff] %v5193_v57  ;;  %v5194_v44 = vmax.f32 %v7470_v48, 0.0  ;;  %v7249_v37 = vpop.f32.mrb[68].mxu1 }
 0x4eb   : > { %5228 = vst [vmem:[%s10356_s15 + $0x98] sm:$0xff] %v5196_v52  ;;  %v7474_v61 = vadd.f32 %v7473_v49, %v7249_v37  ;;  %v5030_v24 = vpop.f32.mrb[69].mxu1 }
 0x4ec   : > { %5226 = vst [vmem:[%s10356_s15 + $0x88] sm:$0xff] %v5194_v44  ;;  %v7479_v41 = vadd.f32 %v7478_v29, %v5030_v24  ;;  %v7250_v43 = vpop.f32.mrb[70].mxu1 }
 0x4ed   : > { %v7475_v35 = vadd.f32 %v7474_v61, %v10340_v13  ;;  %v7484_v54 = vadd.f32 %v7483_v60, %v7250_v43  ;;  %v5033_v7 = vpop.f32.mrb[71].mxu1 }
 0x4ee   : > { %v7480_v36 = vadd.f32 %v7479_v41, %v10340_v13  ;;  %v7489_v40 = vadd.f32 %v7488_v50, %v5033_v7 }
 0x4ef   : > { %v5199_v5 = vmax.f32 %v7475_v35, 0.0  ;;  %v7485_v6 = vadd.f32 %v7484_v54, %v10340_v13 }
 0x4f0   : > { %v5197_v16 = vmax.f32 %v7480_v36, 0.0  ;;  %v7490_v32 = vadd.f32 %v7489_v40, %v10340_v13 }
 0x4f1   : > { %5231 = vst [vmem:[%s10356_s15 + $0xb0] sm:$0xff] %v5199_v5  ;;  %v5200_v18 = vmax.f32 %v7485_v6, 0.0 }
 0x4f2   : > { %5229 = vst [vmem:[%s10356_s15 + $0xa0] sm:$0xff] %v5197_v16  ;;  %v5198_v26 = vmax.f32 %v7490_v32, 0.0  ;;  %v7253_v9 = vpop.f32.mrb[72].mxu1 }
 0x4f3   : > { %5232 = vst [vmem:[%s10356_s15 + $0xb8] sm:$0xff] %v5200_v18  ;;  %v7494_v31 = vadd.f32 %v7493_v62, %v7253_v9  ;;  %v5046_v56 = vpop.f32.mrb[73].mxu1 }
 0x4f4   : > { %5230 = vst [vmem:[%s10356_s15 + $0xa8] sm:$0xff] %v5198_v26  ;;  %v7499_v28 = vadd.f32 %v7498_v0, %v5046_v56  ;;  %v7254_v12 = vpop.f32.mrb[74].mxu1 }
 0x4f5   : > { %v7495_v47 = vadd.f32 %v7494_v31, %v10340_v13  ;;  %v7504_v58 = vadd.f32 %v7503_v19, %v7254_v12  ;;  %v5049_v17 = vpop.f32.mrb[75].mxu1 }
 0x4f6   : > { %v7500_v15 = vadd.f32 %v7499_v28, %v10340_v13  ;;  %v7509_v38 = vadd.f32 %v7508_v46, %v5049_v17 }
 0x4f7   : > { %v5203_v59 = vmax.f32 %v7495_v47, 0.0  ;;  %v7505_v34 = vadd.f32 %v7504_v58, %v10340_v13 }
 0x4f8   : > { %v5201_v20 = vmax.f32 %v7500_v15, 0.0  ;;  %v7510_v33 = vadd.f32 %v7509_v38, %v10340_v13 }
 0x4f9   : > { %5235 = vst [vmem:[%s10356_s15 + $0xd0] sm:$0xff] %v5203_v59  ;;  %v5204_v45 = vmax.f32 %v7505_v34, 0.0 }
 0x4fa   : > { %5233 = vst [vmem:[%s10356_s15 + $0xc0] sm:$0xff] %v5201_v20  ;;  %v5202_v1 = vmax.f32 %v7510_v33, 0.0  ;;  %v7257_v63 = vpop.f32.mrb[76].mxu1 }
 0x4fb   : > { %5236 = vst [vmem:[%s10356_s15 + $0xd8] sm:$0xff] %v5204_v45  ;;  %v7514_v3 = vadd.f32 %v7513_v25, %v7257_v63  ;;  %v5062_v11 = vpop.f32.mrb[77].mxu1 }
 0x4fc   : > { %5234 = vst [vmem:[%s10356_s15 + $0xc8] sm:$0xff] %v5202_v1  ;;  %v7519_v14 = vadd.f32 %v7518_v42, %v5062_v11  ;;  %v7258_v27 = vpop.f32.mrb[78].mxu1 }
 0x4fd   : > { %v7515_v21 = vadd.f32 %v7514_v3, %v10340_v13  ;;  %v7524_v53 = vadd.f32 %v7523_v30, %v7258_v27  ;;  %v5065_v4 = vpop.f32.mrb[79].mxu1 }
 0x4fe   : > { %v7520_v39 = vadd.f32 %v7519_v14, %v10340_v13  ;;  %v7529_v55 = vadd.f32 %v7528_v10, %v5065_v4 }
 0x4ff   : > { %v5207_v23 = vmax.f32 %v7515_v21, 0.0  ;;  %v7525_v2 = vadd.f32 %v7524_v53, %v10340_v13 }
 0x500   : > { %v5205_v22 = vmax.f32 %v7520_v39, 0.0  ;;  %v7530_v8 = vadd.f32 %v7529_v55, %v10340_v13 }
 0x501   : > { %5239 = vst [vmem:[%s10356_s15 + $0xf0] sm:$0xff] %v5207_v23  ;;  %v5208_v51 = vmax.f32 %v7525_v2, 0.0 }
 0x502   : > { %5237 = vst [vmem:[%s10356_s15 + $0xe0] sm:$0xff] %v5205_v22  ;;  %v5206_v57 = vmax.f32 %v7530_v8, 0.0 }
 0x503   : > { %5240 = vst [vmem:[%s10356_s15 + $0xf8] sm:$0xff] %v5208_v51 }
 0x504   : > { %5238 = vst [vmem:[%s10356_s15 + $0xe8] sm:$0xff] %v5206_v57 }
 0x505   : > { %8056 = shalt.err (!%p8053_p4)
}
 0x506   : > { %s8057_s8 = scalar_lea.hbm %s10476_s12, 4096  ;;  %s8061_s11 = scalar_lea.hbm %s10530_s5, 8192 }
 0x507   : > { %p8058_p9 = scmp.ne.s32.totalorder %s10476_s12, %s8057_s8  ;;  %p8062_p8 = scmp.lt.u32.totalorder %s10476_s12, %s10530_s5 }
 0x508   : > { %p8063_p13 = scmp.lt.u32.totalorder %s8061_s11, %s8057_s8  ;;  %p8065_p10 = scmp.lt.u32.totalorder %s8057_s8, %s10476_s12 }
 0x509   : > { %p8059_p0 = pnand %p8058_p9, %p8316_p5 }
 0x50a   : > { %p8064_p6 = por %p8063_p13, %p8062_p8 }
 0x50b   : > { %p8060_p11 = pneg %p8059_p0 }
 0x50c   : > { %p8066_p3 = por %p8065_p10, %p8064_p6 }
 0x50e   : > { %p8067_p7 = pnand %p8066_p3, %p8060_p11 }
 0x510   : > { %8070 = shalt.err (!%p8067_p7)
}
 0x511   : > { %s8130_s16 = smov 128   ;;  %s8131_s23 = smov 8  }
 0x512   : > { %7705 = dma.vmem_to_hbm [thread:$0]  (%p8316_p5), %s10478_s9, 4096, %s10476_s12, %s5242_s22, %s8130_s16, %s8130_s16, %s8131_s23  }
 0x513 PF: > { %s5270_s27 = sand.u32 1, %s8105_s18   ;;  %p10713_p12 = scmp.ne.s32.totalorder %s10584_s25, 0 }
 0x514   : > { %p10714_p1 = scmp.ge.s32.totalorder %s8117_s21, 2  ;;  %s5271_s6 = scalar_lea.sflag [#allocation7], %s5270_s27 }
 0x516   : > { %p7722_p2 = pnand %p10714_p1, %p10713_p12 }
 0x518   : > { %8100 = dma.done.wait (!%p7722_p2), %s5271_s6, 4096  }
 0x519   : > { %8102 = vsyncadd (!%p7722_p2), %s5271_s6, 4294963200  ;;  %p20_p4 = scmp.ge.s32.totalorder %s8302_s14, 4   ;;  %s10715_s18 = smov %s8109_s19 }
 0x51a   : > { %s10716_s19 = smov %s8113_s20  ;;  %s10717_s20 = smov %s8312_s30 }
 0x51b   : > { %s10718_s21 = smov %s8302_s14  ;;  %22 = sbr.rel (!%p20_p4) target bundleno = 7 (0x7), region = 107 }
 0x522   :  { %5276 = vsyncpa [#allocation6], 1 }
 0x523   :  { %5278 = vsyncpa [#allocation6 + $0x1], 1 }
 0x524   :  { %5279 = vsyncpa [#allocation9], 1 }
 0x525   :  { %5280 = vsyncpa [#allocation12], 1 }
 0x526   :  { %5281 = vsyncpa [#allocation7], 1 }
 0x527   :  { %5283 = vsyncpa [#allocation7 + $0x1], 1 }

</bundles_post_ra>
